<compile_context>
chip_gen: v7x
topology: tpu7x:2x2x1
jax: 0.10.0
libtpu: 0.0.40
codegen_flags: <defaults>
</compile_context>

<pallas_src>
import functools
import math

import numpy as np
import jax
import jax.numpy as jnp
from jax import lax
from jax.experimental import pallas as pl
from jax.experimental.pallas import tpu as pltpu


# --------------------------------------------------------------------------
# Fused forward kernel: one batch tile (TB images) per grid step.
# --------------------------------------------------------------------------
def _lenet5_kernel(x_ref, d1_ref, c1_ref, b1_ref, d2_ref, c2_ref, b2_ref,
                   g1_ref, f1_ref, bf1_ref, w2_ref, bf2_ref, w3_ref, bf3_ref,
                   o_ref):
    f32 = jnp.float32
    x0 = x_ref[...]                                            # [TB*32, 96]

    # conv1 + avgpool1 (pool folded into D1 / C1)
    acc = None
    for kh in range(5):
        z = jnp.dot(x0, d1_ref[kh], preferred_element_type=f32)    # [TB*32, 84]
        p = jnp.dot(c1_ref[kh], z, preferred_element_type=f32)     # [TB*14, 84]
        acc = p if acc is None else acc + p
    p1 = acc + b1_ref[...]                                          # [TB*14, 84]

    # conv2 + avgpool2
    acc = None
    for kh in range(5):
        z = jnp.dot(p1, d2_ref[kh], preferred_element_type=f32)    # [TB*14, 80]
        p = jnp.dot(c2_ref[kh], z, preferred_element_type=f32)     # [TB*5, 80]
        acc = p if acc is None else acc + p
    p2 = acc + b2_ref[...]                                          # [TB*5, 80]

    # NCHW flatten (folded into G1 / F1) + fc1 + ReLU
    acc = None
    for h in range(5):
        z = jnp.dot(p2, g1_ref[h], preferred_element_type=f32)     # [TB*5, 120]
        p = jnp.dot(f1_ref[h], z, preferred_element_type=f32)      # [TB, 120]
        acc = p if acc is None else acc + p
    h1 = jnp.maximum(acc + bf1_ref[...], 0.0)                       # [TB, 120]

    # fc2 + ReLU
    h2 = jnp.maximum(
        jnp.dot(h1, w2_ref[...], preferred_element_type=f32) + bf2_ref[...],
        0.0)                                                        # [TB, 84]

    # fc3 (output zero-padded to 128 lanes -> lane-dense HBM store)
    logits = jnp.dot(h2, w3_ref[...], preferred_element_type=f32) + bf3_ref[...]
    o_ref[...] = logits.astype(o_ref.dtype)                         # [TB, 128]


# --------------------------------------------------------------------------
# Parameters (PyTorch layout) and host-side constant preparation.
# --------------------------------------------------------------------------
def init_params(key):
    ks = jax.random.split(key, 10)

    def u(k, shape, fan_in):
        bound = 1.0 / math.sqrt(fan_in)
        return jax.random.uniform(k, shape, jnp.float32, -bound, bound)

    return {
        "conv1_w": u(ks[0], (6, 3, 5, 5), 3 * 25),
        "conv1_b": u(ks[1], (6,), 3 * 25),
        "conv2_w": u(ks[2], (16, 6, 5, 5), 6 * 25),
        "conv2_b": u(ks[3], (16,), 6 * 25),
        "fc1_w": u(ks[4], (120, 400), 400),
        "fc1_b": u(ks[5], (120,), 400),
        "fc2_w": u(ks[6], (84, 120), 120),
        "fc2_b": u(ks[7], (84,), 120),
        "fc3_w": u(ks[8], (10, 84), 84),
        "fc3_b": u(ks[9], (10,), 84),
    }


def prepare_params(params, tb):
    """Exact host-side refactoring of the PyTorch layers into the lane-dense
    constant matrices the fused kernel multiplies against (conv as
    block-Toeplitz matmul, avgpool folded in, NCHW flatten folded into fc1)."""
    w1 = np.asarray(params["conv1_w"], np.float32)     # [6, 3, 5, 5]
    b1 = np.asarray(params["conv1_b"], np.float32)
    w2 = np.asarray(params["conv2_w"], np.float32)     # [16, 6, 5, 5]
    b2 = np.asarray(params["conv2_b"], np.float32)
    wf1 = np.asarray(params["fc1_w"], np.float32)      # [120, 400]
    bf1 = np.asarray(params["fc1_b"], np.float32)
    wf2 = np.asarray(params["fc2_w"], np.float32)      # [84, 120]
    bf2 = np.asarray(params["fc2_b"], np.float32)
    wf3 = np.asarray(params["fc3_w"], np.float32)      # [10, 84]
    bf3 = np.asarray(params["fc3_b"], np.float32)

    def conv_toeplitz(w, w_out):
        # T[kh][(j+kw)*cin + c, j*cout + co] = w[co, c, kh, kw]
        cout, cin, kk, _ = w.shape
        w_in = w_out + kk - 1
        t = np.zeros((kk, w_in * cin, w_out * cout), np.float32)
        for kh in range(kk):
            for kw in range(kk):
                blk = w[:, :, kh, kw].T                # [cin, cout]
                for j in range(w_out):
                    r = (j + kw) * cin
                    t[kh, r:r + cin, j * cout:(j + 1) * cout] = blk
        return t

    def pool_w(w_out, cout):
        # half of the 2x2 average (the other 0.5 lives in the row-pool matrix)
        p = np.zeros((2 * w_out * cout, w_out * cout), np.float32)
        for j2 in range(w_out):
            for dj in range(2):
                for c in range(cout):
                    p[(2 * j2 + dj) * cout + c, j2 * cout + c] = 0.5
        return p

    def shift_pool_h(h_in, h_out, kk):
        # C[kh][b*h_out + i2, b*h_in + 2*i2 + di + kh] = 0.5  (row shift + H pool)
        c = np.zeros((kk, tb * h_out, tb * h_in), np.float32)
        for kh in range(kk):
            for b in range(tb):
                for i2 in range(h_out):
                    for di in range(2):
                        c[kh, b * h_out + i2, b * h_in + 2 * i2 + di + kh] = 0.5
        return c

    # conv1: 32x32x3 -> 28x28x6 -> pool -> 14x14x6
    d1 = np.einsum("kab,bc->kac", conv_toeplitz(w1, 28), pool_w(14, 6))   # [5,96,84]
    c1 = shift_pool_h(32, 14, 5)                                          # [5,tb*14,tb*32]
    b1row = np.tile(b1, 14)[None, :]                                      # [1, 84]

    # conv2: 14x14x6 -> 10x10x16 -> pool -> 5x5x16
    d2 = np.einsum("kab,bc->kac", conv_toeplitz(w2, 10), pool_w(5, 16))   # [5,84,80]
    c2 = shift_pool_h(14, 5, 5)                                           # [5,tb*5,tb*14]
    b2row = np.tile(b2, 5)[None, :]                                       # [1, 80]

    # fc1 with the PyTorch NCHW flatten folded in:
    #   G1[h][w*16 + c, n] = fc1_w[n, c*25 + h*5 + w]
    wf1_r = wf1.reshape(120, 16, 5, 5)
    g1 = np.zeros((5, 80, 120), np.float32)
    for h in range(5):
        g1[h] = np.transpose(wf1_r[:, :, h, :], (2, 1, 0)).reshape(80, 120)
    f1 = np.zeros((5, tb, tb * 5), np.float32)         # select row (b, h) -> b
    for h in range(5):
        for b in range(tb):
            f1[h, b, b * 5 + h] = 1.0
    bf1row = bf1[None, :]                              # [1, 120]

    # fc2 / fc3 (fc3 zero-padded to 128 output lanes)
    w2t = wf2.T                                        # [120, 84]
    bf2row = bf2[None, :]                              # [1, 84]
    w3t = np.zeros((84, 128), np.float32)
    w3t[:, :10] = wf3.T
    bf3row = np.zeros((1, 128), np.float32)
    bf3row[0, :10] = bf3

    consts = (d1, c1, b1row, d2, c2, b2row, g1, f1, bf1row,
              w2t, bf2row, w3t, bf3row)
    return tuple(jnp.asarray(c) for c in consts)


# --------------------------------------------------------------------------
# Host wrapper.
# --------------------------------------------------------------------------
def _flops_per_tile(tb):
    f = 5 * 2 * (tb * 32 * 96 * 84 + tb * 14 * tb * 32 * 84)    # conv1 + pool1
    f += 5 * 2 * (tb * 14 * 84 * 80 + tb * 5 * tb * 14 * 80)    # conv2 + pool2
    f += 5 * 2 * (tb * 5 * 80 * 120 + tb * tb * 5 * 120)        # flatten + fc1
    f += 2 * tb * 120 * 84 + 2 * tb * 84 * 128                  # fc2, fc3
    return f


@functools.partial(jax.jit, static_argnames=("tb",))
def lenet5_forward(consts, x, *, tb=8):
    """x: [B, 3, 32, 32] float32 (NCHW, as in the PyTorch module) -> [B, 10]."""
    b = x.shape[0]
    n_tiles = (b + tb - 1) // tb
    bp = n_tiles * tb
    if bp != b:
        x = jnp.pad(x, ((0, bp - b), (0, 0), (0, 0), (0, 0)))
    # Single host-side relayout of the *input only*: rows=(b,h), lanes=(w,c).
    x2d = jnp.transpose(x, (0, 2, 3, 1)).reshape(bp * 32, 32 * 3)

    def const_spec(a):
        zeros = (0,) * a.ndim
        return pl.BlockSpec(a.shape, lambda i, _z=zeros: _z)

    in_specs = [pl.BlockSpec((tb * 32, 96), lambda i: (i, 0))]
    in_specs += [const_spec(c) for c in consts]

    bytes_accessed = int(x2d.size * 4 + sum(int(c.size) * 4 for c in consts)
                         + bp * 128 * 4)
    out = pl.pallas_call(
        _lenet5_kernel,
        out_shape=jax.ShapeDtypeStruct((bp, 128), jnp.float32),
        grid=(n_tiles,),
        in_specs=in_specs,
        out_specs=pl.BlockSpec((tb, 128), lambda i: (i, 0)),
        compiler_params=pltpu.CompilerParams(
            dimension_semantics=("parallel",),
            vmem_limit_bytes=64 * 1024 * 1024),
        cost_estimate=pl.CostEstimate(
            flops=n_tiles * _flops_per_tile(tb),
            transcendentals=0,
            bytes_accessed=bytes_accessed),
    )(x2d, *consts)
    return out[:b, :10]


# --------------------------------------------------------------------------
# Plain-JAX reference (exact PyTorch layer semantics) for self-check.
# --------------------------------------------------------------------------
def lenet5_reference(params, x):
    def conv(y, w, bias):
        y = lax.conv_general_dilated(y, w, window_strides=(1, 1), padding="VALID",
                                     dimension_numbers=("NCHW", "OIHW", "NCHW"))
        return y + bias[None, :, None, None]

    def avgpool2(y):
        n, c, h, w = y.shape
        return y.reshape(n, c, h // 2, 2, w // 2, 2).mean(axis=(3, 5))

    y = avgpool2(conv(x, params["conv1_w"], params["conv1_b"]))
    y = avgpool2(conv(y, params["conv2_w"], params["conv2_b"]))
    y = y.reshape(x.shape[0], 16 * 5 * 5)
    y = jnp.maximum(y @ params["fc1_w"].T + params["fc1_b"], 0.0)
    y = jnp.maximum(y @ params["fc2_w"].T + params["fc2_b"], 0.0)
    return y @ params["fc3_w"].T + params["fc3_b"]


if __name__ == "__main__":
    TB = 8
    key = jax.random.PRNGKey(0)
    pkey, xkey = jax.random.split(key)
    params = init_params(pkey)
    consts = prepare_params(params, tb=TB)

    # Batch deliberately not a multiple of the batch tile (exercises padding);
    # 3x32x32 input is fixed by the 16*5*5 flatten in the module.
    x = jax.random.normal(xkey, (10, 3, 32, 32), jnp.float32)

    logits = lenet5_forward(consts, x, tb=TB)
    jax.block_until_ready(logits)
    assert logits.shape == (10, 10), logits.shape

    ref = lenet5_reference(params, x)
    np.testing.assert_allclose(np.asarray(logits), np.asarray(ref),
                               rtol=2e-2, atol=2e-3)
    print("KERNEL_OK")
</pallas_src>

<mosaic_0001>
module attributes {stable_mosaic.version = 11 : i64} {
  func.func @_lenet5_kernel(%arg0: i32, %arg1: memref<256x96xf32, #tpu.memory_space<vmem>>, %arg2: memref<5x96x84xf32, #tpu.memory_space<vmem>>, %arg3: memref<5x112x256xf32, #tpu.memory_space<vmem>>, %arg4: memref<1x84xf32, #tpu.memory_space<vmem>>, %arg5: memref<5x84x80xf32, #tpu.memory_space<vmem>>, %arg6: memref<5x40x112xf32, #tpu.memory_space<vmem>>, %arg7: memref<1x80xf32, #tpu.memory_space<vmem>>, %arg8: memref<5x80x120xf32, #tpu.memory_space<vmem>>, %arg9: memref<5x8x40xf32, #tpu.memory_space<vmem>>, %arg10: memref<1x120xf32, #tpu.memory_space<vmem>>, %arg11: memref<120x84xf32, #tpu.memory_space<vmem>>, %arg12: memref<1x84xf32, #tpu.memory_space<vmem>>, %arg13: memref<84x128xf32, #tpu.memory_space<vmem>>, %arg14: memref<1x128xf32, #tpu.memory_space<vmem>>, %arg15: memref<8x128xf32, #tpu.memory_space<vmem>>) attributes {dimension_semantics = [#tpu.dimension_semantics<parallel>], iteration_bounds = array<i64: 2>, scalar_prefetch = 0 : i64, scratch_operands = 0 : i64, tpu.core_type = #tpu.core_type<tc>, window_params = [{transform_indices = @transform_0, window_bounds = array<i64: 256, 96>}, {pipeline_mode = #tpu.pipeline_mode<synchronous>, transform_indices = @transform_1, window_bounds = array<i64: 5, 96, 84>}, {pipeline_mode = #tpu.pipeline_mode<synchronous>, transform_indices = @transform_2, window_bounds = array<i64: 5, 112, 256>}, {pipeline_mode = #tpu.pipeline_mode<synchronous>, transform_indices = @transform_3, window_bounds = array<i64: 1, 84>}, {pipeline_mode = #tpu.pipeline_mode<synchronous>, transform_indices = @transform_4, window_bounds = array<i64: 5, 84, 80>}, {pipeline_mode = #tpu.pipeline_mode<synchronous>, transform_indices = @transform_5, window_bounds = array<i64: 5, 40, 112>}, {pipeline_mode = #tpu.pipeline_mode<synchronous>, transform_indices = @transform_6, window_bounds = array<i64: 1, 80>}, {pipeline_mode = #tpu.pipeline_mode<synchronous>, transform_indices = @transform_7, window_bounds = array<i64: 5, 80, 120>}, {pipeline_mode = #tpu.pipeline_mode<synchronous>, transform_indices = @transform_8, window_bounds = array<i64: 5, 8, 40>}, {pipeline_mode = #tpu.pipeline_mode<synchronous>, transform_indices = @transform_9, window_bounds = array<i64: 1, 120>}, {pipeline_mode = #tpu.pipeline_mode<synchronous>, transform_indices = @transform_10, window_bounds = array<i64: 120, 84>}, {pipeline_mode = #tpu.pipeline_mode<synchronous>, transform_indices = @transform_11, window_bounds = array<i64: 1, 84>}, {pipeline_mode = #tpu.pipeline_mode<synchronous>, transform_indices = @transform_12, window_bounds = array<i64: 84, 128>}, {pipeline_mode = #tpu.pipeline_mode<synchronous>, transform_indices = @transform_13, window_bounds = array<i64: 1, 128>}, {transform_indices = @transform_14, window_bounds = array<i64: 8, 128>}]} {
    %c0 = arith.constant 0 : index
    %c0_0 = arith.constant 0 : index
    %0 = vector.load %arg1[%c0, %c0_0] : memref<256x96xf32, #tpu.memory_space<vmem>>, vector<256x96xf32>
    %c0_1 = arith.constant 0 : index
    %c0_2 = arith.constant 0 : index
    %c0_3 = arith.constant 0 : index
    %1 = vector.load %arg2[%c0_1, %c0_2, %c0_3] : memref<5x96x84xf32, #tpu.memory_space<vmem>>, vector<1x96x84xf32>
    %2 = vector.shape_cast %1 : vector<1x96x84xf32> to vector<96x84xf32>
    %cst = arith.constant dense<0.000000e+00> : vector<256x84xf32>
    %3 = tpu.matmul %0, %2, %cst {dimension_numbers = #tpu.dot_dimension_numbers<[1], [0], [0], [1], [0, 0, 1, 1], [], []>} : vector<256x96xf32>, vector<96x84xf32>, vector<256x84xf32> -> vector<256x84xf32>
    %c0_4 = arith.constant 0 : index
    %c0_5 = arith.constant 0 : index
    %c0_6 = arith.constant 0 : index
    %4 = vector.load %arg3[%c0_4, %c0_5, %c0_6] : memref<5x112x256xf32, #tpu.memory_space<vmem>>, vector<1x112x256xf32>
    %5 = vector.shape_cast %4 : vector<1x112x256xf32> to vector<112x256xf32>
    %cst_7 = arith.constant dense<0.000000e+00> : vector<112x84xf32>
    %6 = tpu.matmul %5, %3, %cst_7 {dimension_numbers = #tpu.dot_dimension_numbers<[1], [0], [0], [1], [0, 0, 1, 1], [], []>} : vector<112x256xf32>, vector<256x84xf32>, vector<112x84xf32> -> vector<112x84xf32>
    %c1 = arith.constant 1 : index
    %c0_8 = arith.constant 0 : index
    %c0_9 = arith.constant 0 : index
    %7 = vector.load %arg2[%c1, %c0_8, %c0_9] : memref<5x96x84xf32, #tpu.memory_space<vmem>>, vector<1x96x84xf32>
    %8 = vector.shape_cast %7 : vector<1x96x84xf32> to vector<96x84xf32>
    %cst_10 = arith.constant dense<0.000000e+00> : vector<256x84xf32>
    %9 = tpu.matmul %0, %8, %cst_10 {dimension_numbers = #tpu.dot_dimension_numbers<[1], [0], [0], [1], [0, 0, 1, 1], [], []>} : vector<256x96xf32>, vector<96x84xf32>, vector<256x84xf32> -> vector<256x84xf32>
    %c1_11 = arith.constant 1 : index
    %c0_12 = arith.constant 0 : index
    %c0_13 = arith.constant 0 : index
    %10 = vector.load %arg3[%c1_11, %c0_12, %c0_13] : memref<5x112x256xf32, #tpu.memory_space<vmem>>, vector<1x112x256xf32>
    %11 = vector.shape_cast %10 : vector<1x112x256xf32> to vector<112x256xf32>
    %cst_14 = arith.constant dense<0.000000e+00> : vector<112x84xf32>
    %12 = tpu.matmul %11, %9, %cst_14 {dimension_numbers = #tpu.dot_dimension_numbers<[1], [0], [0], [1], [0, 0, 1, 1], [], []>} : vector<112x256xf32>, vector<256x84xf32>, vector<112x84xf32> -> vector<112x84xf32>
    %13 = arith.addf %6, %12 : vector<112x84xf32>
    %c2 = arith.constant 2 : index
    %c0_15 = arith.constant 0 : index
    %c0_16 = arith.constant 0 : index
    %14 = vector.load %arg2[%c2, %c0_15, %c0_16] : memref<5x96x84xf32, #tpu.memory_space<vmem>>, vector<1x96x84xf32>
    %15 = vector.shape_cast %14 : vector<1x96x84xf32> to vector<96x84xf32>
    %cst_17 = arith.constant dense<0.000000e+00> : vector<256x84xf32>
    %16 = tpu.matmul %0, %15, %cst_17 {dimension_numbers = #tpu.dot_dimension_numbers<[1], [0], [0], [1], [0, 0, 1, 1], [], []>} : vector<256x96xf32>, vector<96x84xf32>, vector<256x84xf32> -> vector<256x84xf32>
    %c2_18 = arith.constant 2 : index
    %c0_19 = arith.constant 0 : index
    %c0_20 = arith.constant 0 : index
    %17 = vector.load %arg3[%c2_18, %c0_19, %c0_20] : memref<5x112x256xf32, #tpu.memory_space<vmem>>, vector<1x112x256xf32>
    %18 = vector.shape_cast %17 : vector<1x112x256xf32> to vector<112x256xf32>
    %cst_21 = arith.constant dense<0.000000e+00> : vector<112x84xf32>
    %19 = tpu.matmul %18, %16, %cst_21 {dimension_numbers = #tpu.dot_dimension_numbers<[1], [0], [0], [1], [0, 0, 1, 1], [], []>} : vector<112x256xf32>, vector<256x84xf32>, vector<112x84xf32> -> vector<112x84xf32>
    %20 = arith.addf %13, %19 : vector<112x84xf32>
    %c3 = arith.constant 3 : index
    %c0_22 = arith.constant 0 : index
    %c0_23 = arith.constant 0 : index
    %21 = vector.load %arg2[%c3, %c0_22, %c0_23] : memref<5x96x84xf32, #tpu.memory_space<vmem>>, vector<1x96x84xf32>
    %22 = vector.shape_cast %21 : vector<1x96x84xf32> to vector<96x84xf32>
    %cst_24 = arith.constant dense<0.000000e+00> : vector<256x84xf32>
    %23 = tpu.matmul %0, %22, %cst_24 {dimension_numbers = #tpu.dot_dimension_numbers<[1], [0], [0], [1], [0, 0, 1, 1], [], []>} : vector<256x96xf32>, vector<96x84xf32>, vector<256x84xf32> -> vector<256x84xf32>
    %c3_25 = arith.constant 3 : index
    %c0_26 = arith.constant 0 : index
    %c0_27 = arith.constant 0 : index
    %24 = vector.load %arg3[%c3_25, %c0_26, %c0_27] : memref<5x112x256xf32, #tpu.memory_space<vmem>>, vector<1x112x256xf32>
    %25 = vector.shape_cast %24 : vector<1x112x256xf32> to vector<112x256xf32>
    %cst_28 = arith.constant dense<0.000000e+00> : vector<112x84xf32>
    %26 = tpu.matmul %25, %23, %cst_28 {dimension_numbers = #tpu.dot_dimension_numbers<[1], [0], [0], [1], [0, 0, 1, 1], [], []>} : vector<112x256xf32>, vector<256x84xf32>, vector<112x84xf32> -> vector<112x84xf32>
    %27 = arith.addf %20, %26 : vector<112x84xf32>
    %c4 = arith.constant 4 : index
    %c0_29 = arith.constant 0 : index
    %c0_30 = arith.constant 0 : index
    %28 = vector.load %arg2[%c4, %c0_29, %c0_30] : memref<5x96x84xf32, #tpu.memory_space<vmem>>, vector<1x96x84xf32>
    %29 = vector.shape_cast %28 : vector<1x96x84xf32> to vector<96x84xf32>
    %cst_31 = arith.constant dense<0.000000e+00> : vector<256x84xf32>
    %30 = tpu.matmul %0, %29, %cst_31 {dimension_numbers = #tpu.dot_dimension_numbers<[1], [0], [0], [1], [0, 0, 1, 1], [], []>} : vector<256x96xf32>, vector<96x84xf32>, vector<256x84xf32> -> vector<256x84xf32>
    %c4_32 = arith.constant 4 : index
    %c0_33 = arith.constant 0 : index
    %c0_34 = arith.constant 0 : index
    %31 = vector.load %arg3[%c4_32, %c0_33, %c0_34] : memref<5x112x256xf32, #tpu.memory_space<vmem>>, vector<1x112x256xf32>
    %32 = vector.shape_cast %31 : vector<1x112x256xf32> to vector<112x256xf32>
    %cst_35 = arith.constant dense<0.000000e+00> : vector<112x84xf32>
    %33 = tpu.matmul %32, %30, %cst_35 {dimension_numbers = #tpu.dot_dimension_numbers<[1], [0], [0], [1], [0, 0, 1, 1], [], []>} : vector<112x256xf32>, vector<256x84xf32>, vector<112x84xf32> -> vector<112x84xf32>
    %34 = arith.addf %27, %33 : vector<112x84xf32>
    %c0_36 = arith.constant 0 : index
    %c0_37 = arith.constant 0 : index
    %35 = vector.load %arg4[%c0_36, %c0_37] : memref<1x84xf32, #tpu.memory_space<vmem>>, vector<1x84xf32>
    %36 = vector.broadcast %35 : vector<1x84xf32> to vector<112x84xf32>
    %37 = arith.addf %34, %36 : vector<112x84xf32>
    %c0_38 = arith.constant 0 : index
    %c0_39 = arith.constant 0 : index
    %c0_40 = arith.constant 0 : index
    %38 = vector.load %arg5[%c0_38, %c0_39, %c0_40] : memref<5x84x80xf32, #tpu.memory_space<vmem>>, vector<1x84x80xf32>
    %39 = vector.shape_cast %38 : vector<1x84x80xf32> to vector<84x80xf32>
    %cst_41 = arith.constant dense<0.000000e+00> : vector<112x80xf32>
    %40 = tpu.matmul %37, %39, %cst_41 {dimension_numbers = #tpu.dot_dimension_numbers<[1], [0], [0], [1], [0, 0, 1, 1], [], []>} : vector<112x84xf32>, vector<84x80xf32>, vector<112x80xf32> -> vector<112x80xf32>
    %c0_42 = arith.constant 0 : index
    %c0_43 = arith.constant 0 : index
    %c0_44 = arith.constant 0 : index
    %41 = vector.load %arg6[%c0_42, %c0_43, %c0_44] : memref<5x40x112xf32, #tpu.memory_space<vmem>>, vector<1x40x112xf32>
    %42 = vector.shape_cast %41 : vector<1x40x112xf32> to vector<40x112xf32>
    %cst_45 = arith.constant dense<0.000000e+00> : vector<40x80xf32>
    %43 = tpu.matmul %42, %40, %cst_45 {dimension_numbers = #tpu.dot_dimension_numbers<[1], [0], [0], [1], [0, 0, 1, 1], [], []>} : vector<40x112xf32>, vector<112x80xf32>, vector<40x80xf32> -> vector<40x80xf32>
    %c1_46 = arith.constant 1 : index
    %c0_47 = arith.constant 0 : index
    %c0_48 = arith.constant 0 : index
    %44 = vector.load %arg5[%c1_46, %c0_47, %c0_48] : memref<5x84x80xf32, #tpu.memory_space<vmem>>, vector<1x84x80xf32>
    %45 = vector.shape_cast %44 : vector<1x84x80xf32> to vector<84x80xf32>
    %cst_49 = arith.constant dense<0.000000e+00> : vector<112x80xf32>
    %46 = tpu.matmul %37, %45, %cst_49 {dimension_numbers = #tpu.dot_dimension_numbers<[1], [0], [0], [1], [0, 0, 1, 1], [], []>} : vector<112x84xf32>, vector<84x80xf32>, vector<112x80xf32> -> vector<112x80xf32>
    %c1_50 = arith.constant 1 : index
    %c0_51 = arith.constant 0 : index
    %c0_52 = arith.constant 0 : index
    %47 = vector.load %arg6[%c1_50, %c0_51, %c0_52] : memref<5x40x112xf32, #tpu.memory_space<vmem>>, vector<1x40x112xf32>
    %48 = vector.shape_cast %47 : vector<1x40x112xf32> to vector<40x112xf32>
    %cst_53 = arith.constant dense<0.000000e+00> : vector<40x80xf32>
    %49 = tpu.matmul %48, %46, %cst_53 {dimension_numbers = #tpu.dot_dimension_numbers<[1], [0], [0], [1], [0, 0, 1, 1], [], []>} : vector<40x112xf32>, vector<112x80xf32>, vector<40x80xf32> -> vector<40x80xf32>
    %50 = arith.addf %43, %49 : vector<40x80xf32>
    %c2_54 = arith.constant 2 : index
    %c0_55 = arith.constant 0 : index
    %c0_56 = arith.constant 0 : index
    %51 = vector.load %arg5[%c2_54, %c0_55, %c0_56] : memref<5x84x80xf32, #tpu.memory_space<vmem>>, vector<1x84x80xf32>
    %52 = vector.shape_cast %51 : vector<1x84x80xf32> to vector<84x80xf32>
    %cst_57 = arith.constant dense<0.000000e+00> : vector<112x80xf32>
    %53 = tpu.matmul %37, %52, %cst_57 {dimension_numbers = #tpu.dot_dimension_numbers<[1], [0], [0], [1], [0, 0, 1, 1], [], []>} : vector<112x84xf32>, vector<84x80xf32>, vector<112x80xf32> -> vector<112x80xf32>
    %c2_58 = arith.constant 2 : index
    %c0_59 = arith.constant 0 : index
    %c0_60 = arith.constant 0 : index
    %54 = vector.load %arg6[%c2_58, %c0_59, %c0_60] : memref<5x40x112xf32, #tpu.memory_space<vmem>>, vector<1x40x112xf32>
    %55 = vector.shape_cast %54 : vector<1x40x112xf32> to vector<40x112xf32>
    %cst_61 = arith.constant dense<0.000000e+00> : vector<40x80xf32>
    %56 = tpu.matmul %55, %53, %cst_61 {dimension_numbers = #tpu.dot_dimension_numbers<[1], [0], [0], [1], [0, 0, 1, 1], [], []>} : vector<40x112xf32>, vector<112x80xf32>, vector<40x80xf32> -> vector<40x80xf32>
    %57 = arith.addf %50, %56 : vector<40x80xf32>
    %c3_62 = arith.constant 3 : index
    %c0_63 = arith.constant 0 : index
    %c0_64 = arith.constant 0 : index
    %58 = vector.load %arg5[%c3_62, %c0_63, %c0_64] : memref<5x84x80xf32, #tpu.memory_space<vmem>>, vector<1x84x80xf32>
    %59 = vector.shape_cast %58 : vector<1x84x80xf32> to vector<84x80xf32>
    %cst_65 = arith.constant dense<0.000000e+00> : vector<112x80xf32>
    %60 = tpu.matmul %37, %59, %cst_65 {dimension_numbers = #tpu.dot_dimension_numbers<[1], [0], [0], [1], [0, 0, 1, 1], [], []>} : vector<112x84xf32>, vector<84x80xf32>, vector<112x80xf32> -> vector<112x80xf32>
    %c3_66 = arith.constant 3 : index
    %c0_67 = arith.constant 0 : index
    %c0_68 = arith.constant 0 : index
    %61 = vector.load %arg6[%c3_66, %c0_67, %c0_68] : memref<5x40x112xf32, #tpu.memory_space<vmem>>, vector<1x40x112xf32>
    %62 = vector.shape_cast %61 : vector<1x40x112xf32> to vector<40x112xf32>
    %cst_69 = arith.constant dense<0.000000e+00> : vector<40x80xf32>
    %63 = tpu.matmul %62, %60, %cst_69 {dimension_numbers = #tpu.dot_dimension_numbers<[1], [0], [0], [1], [0, 0, 1, 1], [], []>} : vector<40x112xf32>, vector<112x80xf32>, vector<40x80xf32> -> vector<40x80xf32>
    %64 = arith.addf %57, %63 : vector<40x80xf32>
    %c4_70 = arith.constant 4 : index
    %c0_71 = arith.constant 0 : index
    %c0_72 = arith.constant 0 : index
    %65 = vector.load %arg5[%c4_70, %c0_71, %c0_72] : memref<5x84x80xf32, #tpu.memory_space<vmem>>, vector<1x84x80xf32>
    %66 = vector.shape_cast %65 : vector<1x84x80xf32> to vector<84x80xf32>
    %cst_73 = arith.constant dense<0.000000e+00> : vector<112x80xf32>
    %67 = tpu.matmul %37, %66, %cst_73 {dimension_numbers = #tpu.dot_dimension_numbers<[1], [0], [0], [1], [0, 0, 1, 1], [], []>} : vector<112x84xf32>, vector<84x80xf32>, vector<112x80xf32> -> vector<112x80xf32>
    %c4_74 = arith.constant 4 : index
    %c0_75 = arith.constant 0 : index
    %c0_76 = arith.constant 0 : index
    %68 = vector.load %arg6[%c4_74, %c0_75, %c0_76] : memref<5x40x112xf32, #tpu.memory_space<vmem>>, vector<1x40x112xf32>
    %69 = vector.shape_cast %68 : vector<1x40x112xf32> to vector<40x112xf32>
    %cst_77 = arith.constant dense<0.000000e+00> : vector<40x80xf32>
    %70 = tpu.matmul %69, %67, %cst_77 {dimension_numbers = #tpu.dot_dimension_numbers<[1], [0], [0], [1], [0, 0, 1, 1], [], []>} : vector<40x112xf32>, vector<112x80xf32>, vector<40x80xf32> -> vector<40x80xf32>
    %71 = arith.addf %64, %70 : vector<40x80xf32>
    %c0_78 = arith.constant 0 : index
    %c0_79 = arith.constant 0 : index
    %72 = vector.load %arg7[%c0_78, %c0_79] : memref<1x80xf32, #tpu.memory_space<vmem>>, vector<1x80xf32>
    %73 = vector.broadcast %72 : vector<1x80xf32> to vector<40x80xf32>
    %74 = arith.addf %71, %73 : vector<40x80xf32>
    %c0_80 = arith.constant 0 : index
    %c0_81 = arith.constant 0 : index
    %c0_82 = arith.constant 0 : index
    %75 = vector.load %arg8[%c0_80, %c0_81, %c0_82] : memref<5x80x120xf32, #tpu.memory_space<vmem>>, vector<1x80x120xf32>
    %76 = vector.shape_cast %75 : vector<1x80x120xf32> to vector<80x120xf32>
    %cst_83 = arith.constant dense<0.000000e+00> : vector<40x120xf32>
    %77 = tpu.matmul %74, %76, %cst_83 {dimension_numbers = #tpu.dot_dimension_numbers<[1], [0], [0], [1], [0, 0, 1, 1], [], []>} : vector<40x80xf32>, vector<80x120xf32>, vector<40x120xf32> -> vector<40x120xf32>
    %c0_84 = arith.constant 0 : index
    %c0_85 = arith.constant 0 : index
    %c0_86 = arith.constant 0 : index
    %78 = vector.load %arg9[%c0_84, %c0_85, %c0_86] : memref<5x8x40xf32, #tpu.memory_space<vmem>>, vector<1x8x40xf32>
    %79 = vector.shape_cast %78 : vector<1x8x40xf32> to vector<8x40xf32>
    %cst_87 = arith.constant dense<0.000000e+00> : vector<8x120xf32>
    %80 = tpu.matmul %79, %77, %cst_87 {dimension_numbers = #tpu.dot_dimension_numbers<[1], [0], [0], [1], [0, 0, 1, 1], [], []>} : vector<8x40xf32>, vector<40x120xf32>, vector<8x120xf32> -> vector<8x120xf32>
    %c1_88 = arith.constant 1 : index
    %c0_89 = arith.constant 0 : index
    %c0_90 = arith.constant 0 : index
    %81 = vector.load %arg8[%c1_88, %c0_89, %c0_90] : memref<5x80x120xf32, #tpu.memory_space<vmem>>, vector<1x80x120xf32>
    %82 = vector.shape_cast %81 : vector<1x80x120xf32> to vector<80x120xf32>
    %cst_91 = arith.constant dense<0.000000e+00> : vector<40x120xf32>
    %83 = tpu.matmul %74, %82, %cst_91 {dimension_numbers = #tpu.dot_dimension_numbers<[1], [0], [0], [1], [0, 0, 1, 1], [], []>} : vector<40x80xf32>, vector<80x120xf32>, vector<40x120xf32> -> vector<40x120xf32>
    %c1_92 = arith.constant 1 : index
    %c0_93 = arith.constant 0 : index
    %c0_94 = arith.constant 0 : index
    %84 = vector.load %arg9[%c1_92, %c0_93, %c0_94] : memref<5x8x40xf32, #tpu.memory_space<vmem>>, vector<1x8x40xf32>
    %85 = vector.shape_cast %84 : vector<1x8x40xf32> to vector<8x40xf32>
    %cst_95 = arith.constant dense<0.000000e+00> : vector<8x120xf32>
    %86 = tpu.matmul %85, %83, %cst_95 {dimension_numbers = #tpu.dot_dimension_numbers<[1], [0], [0], [1], [0, 0, 1, 1], [], []>} : vector<8x40xf32>, vector<40x120xf32>, vector<8x120xf32> -> vector<8x120xf32>
    %87 = arith.addf %80, %86 : vector<8x120xf32>
    %c2_96 = arith.constant 2 : index
    %c0_97 = arith.constant 0 : index
    %c0_98 = arith.constant 0 : index
    %88 = vector.load %arg8[%c2_96, %c0_97, %c0_98] : memref<5x80x120xf32, #tpu.memory_space<vmem>>, vector<1x80x120xf32>
    %89 = vector.shape_cast %88 : vector<1x80x120xf32> to vector<80x120xf32>
    %cst_99 = arith.constant dense<0.000000e+00> : vector<40x120xf32>
    %90 = tpu.matmul %74, %89, %cst_99 {dimension_numbers = #tpu.dot_dimension_numbers<[1], [0], [0], [1], [0, 0, 1, 1], [], []>} : vector<40x80xf32>, vector<80x120xf32>, vector<40x120xf32> -> vector<40x120xf32>
    %c2_100 = arith.constant 2 : index
    %c0_101 = arith.constant 0 : index
    %c0_102 = arith.constant 0 : index
    %91 = vector.load %arg9[%c2_100, %c0_101, %c0_102] : memref<5x8x40xf32, #tpu.memory_space<vmem>>, vector<1x8x40xf32>
    %92 = vector.shape_cast %91 : vector<1x8x40xf32> to vector<8x40xf32>
    %cst_103 = arith.constant dense<0.000000e+00> : vector<8x120xf32>
    %93 = tpu.matmul %92, %90, %cst_103 {dimension_numbers = #tpu.dot_dimension_numbers<[1], [0], [0], [1], [0, 0, 1, 1], [], []>} : vector<8x40xf32>, vector<40x120xf32>, vector<8x120xf32> -> vector<8x120xf32>
    %94 = arith.addf %87, %93 : vector<8x120xf32>
    %c3_104 = arith.constant 3 : index
    %c0_105 = arith.constant 0 : index
    %c0_106 = arith.constant 0 : index
    %95 = vector.load %arg8[%c3_104, %c0_105, %c0_106] : memref<5x80x120xf32, #tpu.memory_space<vmem>>, vector<1x80x120xf32>
    %96 = vector.shape_cast %95 : vector<1x80x120xf32> to vector<80x120xf32>
    %cst_107 = arith.constant dense<0.000000e+00> : vector<40x120xf32>
    %97 = tpu.matmul %74, %96, %cst_107 {dimension_numbers = #tpu.dot_dimension_numbers<[1], [0], [0], [1], [0, 0, 1, 1], [], []>} : vector<40x80xf32>, vector<80x120xf32>, vector<40x120xf32> -> vector<40x120xf32>
    %c3_108 = arith.constant 3 : index
    %c0_109 = arith.constant 0 : index
    %c0_110 = arith.constant 0 : index
    %98 = vector.load %arg9[%c3_108, %c0_109, %c0_110] : memref<5x8x40xf32, #tpu.memory_space<vmem>>, vector<1x8x40xf32>
    %99 = vector.shape_cast %98 : vector<1x8x40xf32> to vector<8x40xf32>
    %cst_111 = arith.constant dense<0.000000e+00> : vector<8x120xf32>
    %100 = tpu.matmul %99, %97, %cst_111 {dimension_numbers = #tpu.dot_dimension_numbers<[1], [0], [0], [1], [0, 0, 1, 1], [], []>} : vector<8x40xf32>, vector<40x120xf32>, vector<8x120xf32> -> vector<8x120xf32>
    %101 = arith.addf %94, %100 : vector<8x120xf32>
    %c4_112 = arith.constant 4 : index
    %c0_113 = arith.constant 0 : index
    %c0_114 = arith.constant 0 : index
    %102 = vector.load %arg8[%c4_112, %c0_113, %c0_114] : memref<5x80x120xf32, #tpu.memory_space<vmem>>, vector<1x80x120xf32>
    %103 = vector.shape_cast %102 : vector<1x80x120xf32> to vector<80x120xf32>
    %cst_115 = arith.constant dense<0.000000e+00> : vector<40x120xf32>
    %104 = tpu.matmul %74, %103, %cst_115 {dimension_numbers = #tpu.dot_dimension_numbers<[1], [0], [0], [1], [0, 0, 1, 1], [], []>} : vector<40x80xf32>, vector<80x120xf32>, vector<40x120xf32> -> vector<40x120xf32>
    %c4_116 = arith.constant 4 : index
    %c0_117 = arith.constant 0 : index
    %c0_118 = arith.constant 0 : index
    %105 = vector.load %arg9[%c4_116, %c0_117, %c0_118] : memref<5x8x40xf32, #tpu.memory_space<vmem>>, vector<1x8x40xf32>
    %106 = vector.shape_cast %105 : vector<1x8x40xf32> to vector<8x40xf32>
    %cst_119 = arith.constant dense<0.000000e+00> : vector<8x120xf32>
    %107 = tpu.matmul %106, %104, %cst_119 {dimension_numbers = #tpu.dot_dimension_numbers<[1], [0], [0], [1], [0, 0, 1, 1], [], []>} : vector<8x40xf32>, vector<40x120xf32>, vector<8x120xf32> -> vector<8x120xf32>
    %108 = arith.addf %101, %107 : vector<8x120xf32>
    %c0_120 = arith.constant 0 : index
    %c0_121 = arith.constant 0 : index
    %109 = vector.load %arg10[%c0_120, %c0_121] : memref<1x120xf32, #tpu.memory_space<vmem>>, vector<1x120xf32>
    %110 = vector.broadcast %109 : vector<1x120xf32> to vector<8x120xf32>
    %111 = arith.addf %108, %110 : vector<8x120xf32>
    %cst_122 = arith.constant 0.000000e+00 : f32
    %112 = vector.broadcast %cst_122 : f32 to vector<8x120xf32>
    %113 = arith.maximumf %111, %112 : vector<8x120xf32>
    %c0_123 = arith.constant 0 : index
    %c0_124 = arith.constant 0 : index
    %114 = vector.load %arg11[%c0_123, %c0_124] : memref<120x84xf32, #tpu.memory_space<vmem>>, vector<120x84xf32>
    %cst_125 = arith.constant dense<0.000000e+00> : vector<8x84xf32>
    %115 = tpu.matmul %113, %114, %cst_125 {dimension_numbers = #tpu.dot_dimension_numbers<[1], [0], [0], [1], [0, 0, 1, 1], [], []>} : vector<8x120xf32>, vector<120x84xf32>, vector<8x84xf32> -> vector<8x84xf32>
    %c0_126 = arith.constant 0 : index
    %c0_127 = arith.constant 0 : index
    %116 = vector.load %arg12[%c0_126, %c0_127] : memref<1x84xf32, #tpu.memory_space<vmem>>, vector<1x84xf32>
    %117 = vector.broadcast %116 : vector<1x84xf32> to vector<8x84xf32>
    %118 = arith.addf %115, %117 : vector<8x84xf32>
    %cst_128 = arith.constant 0.000000e+00 : f32
    %119 = vector.broadcast %cst_128 : f32 to vector<8x84xf32>
    %120 = arith.maximumf %118, %119 : vector<8x84xf32>
    %c0_129 = arith.constant 0 : index
    %c0_130 = arith.constant 0 : index
    %121 = vector.load %arg13[%c0_129, %c0_130] : memref<84x128xf32, #tpu.memory_space<vmem>>, vector<84x128xf32>
    %cst_131 = arith.constant dense<0.000000e+00> : vector<8x128xf32>
    %122 = tpu.matmul %120, %121, %cst_131 {dimension_numbers = #tpu.dot_dimension_numbers<[1], [0], [0], [1], [0, 0, 1, 1], [], []>} : vector<8x84xf32>, vector<84x128xf32>, vector<8x128xf32> -> vector<8x128xf32>
    %c0_132 = arith.constant 0 : index
    %c0_133 = arith.constant 0 : index
    %123 = vector.load %arg14[%c0_132, %c0_133] : memref<1x128xf32, #tpu.memory_space<vmem>>, vector<1x128xf32>
    %124 = vector.broadcast %123 : vector<1x128xf32> to vector<8x128xf32>
    %125 = arith.addf %122, %124 : vector<8x128xf32>
    %c0_134 = arith.constant 0 : index
    %c0_135 = arith.constant 0 : index
    %126 = vector.load %arg15[%c0_134, %c0_135] : memref<8x128xf32, #tpu.memory_space<vmem>>, vector<8x128xf32>
    tpu.vector_store %arg15[%c0_134, %c0_135], %125 {strides = array<i32>} : memref<8x128xf32, #tpu.memory_space<vmem>>, vector<8x128xf32>,
    return
  }
  func.func @transform_0(%arg0: i32) -> (i32, i32) {
    %c0_i32 = arith.constant 0 : i32
    %c0_i32_0 = arith.constant 0 : i32
    return %arg0, %c0_i32 : i32, i32
  }
  func.func @transform_1(%arg0: i32) -> (i32, i32, i32) {
    %c0_i32 = arith.constant 0 : i32
    %c0_i32_0 = arith.constant 0 : i32
    %c0_i32_1 = arith.constant 0 : i32
    %c0_i32_2 = arith.constant 0 : i32
    return %c0_i32, %c0_i32_0, %c0_i32_1 : i32, i32, i32
  }
  func.func @transform_2(%arg0: i32) -> (i32, i32, i32) {
    %c0_i32 = arith.constant 0 : i32
    %c0_i32_0 = arith.constant 0 : i32
    %c0_i32_1 = arith.constant 0 : i32
    %c0_i32_2 = arith.constant 0 : i32
    return %c0_i32, %c0_i32_0, %c0_i32_1 : i32, i32, i32
  }
  func.func @transform_3(%arg0: i32) -> (i32, i32) {
    %c0_i32 = arith.constant 0 : i32
    %c0_i32_0 = arith.constant 0 : i32
    %c0_i32_1 = arith.constant 0 : i32
    return %c0_i32, %c0_i32_0 : i32, i32
  }
  func.func @transform_4(%arg0: i32) -> (i32, i32, i32) {
    %c0_i32 = arith.constant 0 : i32
    %c0_i32_0 = arith.constant 0 : i32
    %c0_i32_1 = arith.constant 0 : i32
    %c0_i32_2 = arith.constant 0 : i32
    return %c0_i32, %c0_i32_0, %c0_i32_1 : i32, i32, i32
  }
  func.func @transform_5(%arg0: i32) -> (i32, i32, i32) {
    %c0_i32 = arith.constant 0 : i32
    %c0_i32_0 = arith.constant 0 : i32
    %c0_i32_1 = arith.constant 0 : i32
    %c0_i32_2 = arith.constant 0 : i32
    return %c0_i32, %c0_i32_0, %c0_i32_1 : i32, i32, i32
  }
  func.func @transform_6(%arg0: i32) -> (i32, i32) {
    %c0_i32 = arith.constant 0 : i32
    %c0_i32_0 = arith.constant 0 : i32
    %c0_i32_1 = arith.constant 0 : i32
    return %c0_i32, %c0_i32_0 : i32, i32
  }
  func.func @transform_7(%arg0: i32) -> (i32, i32, i32) {
    %c0_i32 = arith.constant 0 : i32
    %c0_i32_0 = arith.constant 0 : i32
    %c0_i32_1 = arith.constant 0 : i32
    %c0_i32_2 = arith.constant 0 : i32
    return %c0_i32, %c0_i32_0, %c0_i32_1 : i32, i32, i32
  }
  func.func @transform_8(%arg0: i32) -> (i32, i32, i32) {
    %c0_i32 = arith.constant 0 : i32
    %c0_i32_0 = arith.constant 0 : i32
    %c0_i32_1 = arith.constant 0 : i32
    %c0_i32_2 = arith.constant 0 : i32
    return %c0_i32, %c0_i32_0, %c0_i32_1 : i32, i32, i32
  }
  func.func @transform_9(%arg0: i32) -> (i32, i32) {
    %c0_i32 = arith.constant 0 : i32
    %c0_i32_0 = arith.constant 0 : i32
    %c0_i32_1 = arith.constant 0 : i32
    return %c0_i32, %c0_i32_0 : i32, i32
  }
  func.func @transform_10(%arg0: i32) -> (i32, i32) {
    %c0_i32 = arith.constant 0 : i32
    %c0_i32_0 = arith.constant 0 : i32
    %c0_i32_1 = arith.constant 0 : i32
    return %c0_i32, %c0_i32_0 : i32, i32
  }
  func.func @transform_11(%arg0: i32) -> (i32, i32) {
    %c0_i32 = arith.constant 0 : i32
    %c0_i32_0 = arith.constant 0 : i32
    %c0_i32_1 = arith.constant 0 : i32
    return %c0_i32, %c0_i32_0 : i32, i32
  }
  func.func @transform_12(%arg0: i32) -> (i32, i32) {
    %c0_i32 = arith.constant 0 : i32
    %c0_i32_0 = arith.constant 0 : i32
    %c0_i32_1 = arith.constant 0 : i32
    return %c0_i32, %c0_i32_0 : i32, i32
  }
  func.func @transform_13(%arg0: i32) -> (i32, i32) {
    %c0_i32 = arith.constant 0 : i32
    %c0_i32_0 = arith.constant 0 : i32
    %c0_i32_1 = arith.constant 0 : i32
    return %c0_i32, %c0_i32_0 : i32, i32
  }
  func.func @transform_14(%arg0: i32) -> (i32, i32) {
    %c0_i32 = arith.constant 0 : i32
    %c0_i32_0 = arith.constant 0 : i32
    return %arg0, %c0_i32 : i32, i32
  }
}

</mosaic_0001>

<bundles_post_ra>
// kernel: lenet5_forward.1
= control target key start
LH: loop header
LB: loop body
LE: loop exit
PB: predicated region body
PF: predicated region fallthrough
CT: control target
= control target key end

     0   :  { %s11095_s0 = inlined_call_operand.hbm [shape: f32[512,96], index: 0, kind: input, shape index: {}]   ;;  %s11096_s1 = inlined_call_operand.hbm [shape: f32[5,96,84], index: 1, kind: input, shape index: {}]   ;;  %s11097_s2 = inlined_call_operand.hbm [shape: f32[5,112,256], index: 2, kind: input, shape index: {}]   ;;  %s11098_s3 = inlined_call_operand.hbm [shape: f32[1,84], index: 3, kind: input, shape index: {}]   ;;  %s11099_s4 = inlined_call_operand.hbm [shape: f32[5,84,80], index: 4, kind: input, shape index: {}]   ;;  %s11100_s5 = inlined_call_operand.hbm [shape: f32[5,40,112], index: 5, kind: input, shape index: {}]   ;;  %s11101_s6 = inlined_call_operand.hbm [shape: f32[1,80], index: 6, kind: input, shape index: {}]   ;;  %s11102_s7 = inlined_call_operand.hbm [shape: f32[5,80,120], index: 7, kind: input, shape index: {}]   ;;  %s11103_s8 = inlined_call_operand.hbm [shape: f32[5,8,40], index: 8, kind: input, shape index: {}]   ;;  %s11104_s9 = inlined_call_operand.hbm [shape: f32[1,120], index: 9, kind: input, shape index: {}]   ;;  %s11105_s10 = inlined_call_operand.hbm [shape: f32[120,84], index: 10, kind: input, shape index: {}]   ;;  %s11106_s11 = inlined_call_operand.hbm [shape: f32[1,84], index: 11, kind: input, shape index: {}]   ;;  %s11107_s12 = inlined_call_operand.hbm [shape: f32[84,128], index: 12, kind: input, shape index: {}]   ;;  %s11108_s13 = inlined_call_operand.hbm [shape: f32[1,128], index: 13, kind: input, shape index: {}]   ;;  %s11109_s14 = inlined_call_operand.hbm [shape: f32[16,128], index: 14, kind: output, shape index: {}]  }
   0x1   :  { %11135 = sst [smem:[#allocation50_spill]] %s11095_s0 }
   0x2   :  { %11136 = sst [smem:[#allocation51_spill]] %s11096_s1 }
   0x3   :  { %11137 = sst [smem:[#allocation52_spill]] %s11097_s2 }
   0x4   :  { %11138 = sst [smem:[#allocation53_spill]] %s11098_s3 }
   0x5   :  { %11139 = sst [smem:[#allocation54_spill]] %s11109_s14 }
   0x6   :  { %19 = vsyncpa [#allocation3], 0 }
   0x7   :  { %21 = vsyncpa [#allocation3 + $0x1], 0 }
   0x8   :  { %22 = vsyncpa [#allocation6], 0 }
   0x9   :  { %23 = vsyncpa [#allocation9], 0 }
   0xa   :  { %24 = vsyncpa [#allocation12], 0 }
   0xb   :  { %25 = vsyncpa [#allocation15], 0 }
   0xc   :  { %26 = vsyncpa [#allocation18], 0 }
   0xd   :  { %27 = vsyncpa [#allocation21], 0 }
   0xe   :  { %28 = vsyncpa [#allocation24], 0 }
   0xf   :  { %29 = vsyncpa [#allocation4], 0 }
  0x10   :  { %31 = vsyncpa [#allocation4 + $0x1], 0  ;;  %s9346_s29 = smov 0   ;;  %s9348_s30 = smov 0  }
  0x11   :  { %s9350_s15 = smov 0   ;;  %s9352_s16 = smov 0  }
  0x12 LB: > { %11140 = sst [smem:[#allocation35_spill]] %s9235_s29  ;;  %s9249_s17 = smov [#allocation5]   ;;  %s9247_s16 = sphi %s9352_s16, %s11233_s16   ;;  %s9243_s15 = sphi %s9350_s15, %s11232_s15   ;;  %s9239_s30 = sphi %s9348_s30, %s11231_s30   ;;  %s9235_s29 = sphi %s9346_s29, %s11230_s29  }
  0x13   : > { %11141 = sst [smem:[#allocation36_spill]] %s9239_s30  ;;  %s379_s18 = sshll.u32 %s9249_s17, 4  ;;  %s9372_s18 = int_to_ptr.vmem [resolvable:$true] %s379_s18 }
  0x14   : > { %s9367_s19 = sadd.s32 4294967295, %s9247_s16   ;;  %p5549_p0 = scmp.ge.s32.totalorder %s9247_s16, 1 }
  0x15   : > { %11142 = sst [smem:[#allocation37_spill]] %s9367_s19  ;;  %p11117_p1 = scmp.eq.s32.totalorder %s9367_s19, 0 }
  0x16   : > { %p367_p2 = scmp.lt.s32.totalorder %s9247_s16, 3  ;;  %s9250_s21 = smov [#allocation8]  }
  0x17   : > { %s406_s22 = sshll.u32 %s9250_s21, 4  ;;  %s9251_s24 = smov [#allocation11]   ;;  %s9387_s22 = int_to_ptr.vmem [resolvable:$true] %s406_s22 }
  0x18   : > { %p9374_p3 = pnand %p5549_p0, %p367_p2  ;;  %s429_s25 = sshll.u32 %s9251_s24, 4  ;;  %s9389_s25 = int_to_ptr.vmem [resolvable:$true] %s429_s25 }
  0x19   : > { %s11146_s1 = sld [smem:[#allocation51_spill]] }
  0x1a   : > { %s11143_s20 = scalar_select %p9374_p3, 1, 0 }
  0x1b   : > { %p8599_p5 = pneg %p9374_p3 }
  0x1c   : > { %11144 = sst [smem:[#allocation38_spill]] %s11143_s20 }
  0x1d   : > { %p9383_p6 = pnand %p8599_p5, %p11117_p1 }
  0x1f   : > { %s8759_s28 = scalar_lea.hbm %s11146_s1, 7680  ;;  %p9399_p8 = pneg %p9383_p6 }
  0x20   : > { %p8760_p7 = scmp.ne.s32.totalorder %s11146_s1, %s8759_s28  ;;  %p8766_p11 = scmp.lt.u32.totalorder %s8759_s28, %s11146_s1 }
  0x22   : > { %p8762_p9 = pnand %p9399_p8, %p8760_p7 }
  0x24   : > { %p8763_p10 = pneg %p8762_p9 }
  0x26   : > { %p8768_p12 = pnand %p8766_p11, %p8763_p10 }
  0x28   : > { %8771 = shalt.err (!%p8768_p12)
}
  0x29   : > { %s8772_s14 = scalar_lea.vmem %s9372_s18, 7680  ;;  %p8780_p5 = scmp.lt.s32.totalorder %s9372_s18, %s9372_s18 }
  0x2a   : > { %p8773_p13 = scmp.ne.s32.totalorder %s9372_s18, %s8772_s14  ;;  %p8781_p4 = scmp.lt.s32.totalorder %s8772_s14, %s8772_s14 }
  0x2c   : > { %p8775_p0 = pnand %p8773_p13, %p9399_p8  ;;  %p8782_p7 = por %p8781_p4, %p8780_p5 }
  0x2e   : > { %p8776_p2 = pneg %p8775_p0 }
  0x30   : > { %p8783_p9 = pnand %p8782_p7, %p8776_p2 }
  0x32   : > { %8786 = shalt.err (!%p8783_p9)
}
  0x33   : > { %s11119_s26 = smov 128   ;;  %s11121_s20 = smov 8  }
  0x34   : > { %8602 = dma.hbm_to_vmem [thread:$0]  (!%p9383_p6), %s11146_s1, 7680, %s9372_s18, [#allocation6], %s11119_s26, %s11119_s26, %s11121_s20  }
  0x35   : > { %s11148_s3 = sld [smem:[#allocation53_spill]] }
  0x3b   : > { %s8787_s14 = scalar_lea.hbm %s11148_s3, 16 }
  0x3c   : > { %p8788_p4 = scmp.ne.s32.totalorder %s11148_s3, %s8787_s14  ;;  %p8794_p12 = scmp.lt.u32.totalorder %s8787_s14, %s11148_s3 }
  0x3e   : > { %p8790_p10 = pnand %p8788_p4, %p9399_p8 }
  0x40   : > { %p8791_p11 = pneg %p8790_p10 }
  0x42   : > { %p8796_p13 = pnand %p8794_p12, %p8791_p11 }
  0x44   : > { %8799 = shalt.err (!%p8796_p13)
}
  0x45   : > { %s8800_s18 = scalar_lea.vmem %s9387_s22, 16  ;;  %s8807_s0 = scalar_lea.vmem %s9387_s22, 32 }
  0x46   : > { %p8801_p0 = scmp.ne.s32.totalorder %s9387_s22, %s8800_s18  ;;  %p8808_p7 = scmp.lt.s32.totalorder %s9387_s22, %s9387_s22 }
  0x47   : > { %p8809_p9 = scmp.lt.s32.totalorder %s8807_s0, %s8800_s18 }
  0x48   : > { %p8803_p2 = pnand %p8801_p0, %p9399_p8 }
  0x49   : > { %p8810_p4 = por %p8809_p9, %p8808_p7 }
  0x4a   : > { %p8804_p5 = pneg %p8803_p2 }
  0x4c   : > { %p8811_p10 = pnand %p8810_p4, %p8804_p5 }
  0x4e   : > { %8814 = shalt.err (!%p8811_p10)
}
  0x4f   : > { %8608 = dma.hbm_to_vmem [thread:$0]  (!%p9383_p6), %s11148_s3, 16, %s9387_s22, [#allocation9]  }
  0x50   : > { %s8815_s28 = scalar_lea.hbm %s11100_s5, 3200 }
  0x51   : > { %p8816_p11 = scmp.ne.s32.totalorder %s11100_s5, %s8815_s28  ;;  %p8822_p0 = scmp.lt.u32.totalorder %s8815_s28, %s11100_s5 }
  0x53   : > { %p8818_p12 = pnand %p8816_p11, %p9399_p8 }
  0x55   : > { %p8819_p13 = pneg %p8818_p12 }
  0x57   : > { %p8824_p2 = pnand %p8822_p0, %p8819_p13 }
  0x59   : > { %8827 = shalt.err (!%p8824_p2)
}
  0x5a   : > { %s8828_s22 = scalar_lea.vmem %s9389_s25, 3200  ;;  %p8836_p4 = scmp.lt.s32.totalorder %s9389_s25, %s9389_s25 }
  0x5b   : > { %p8829_p5 = scmp.ne.s32.totalorder %s9389_s25, %s8828_s22  ;;  %p8837_p10 = scmp.lt.s32.totalorder %s8828_s22, %s8828_s22 }
  0x5d   : > { %p8831_p7 = pnand %p8829_p5, %p9399_p8  ;;  %p8838_p11 = por %p8837_p10, %p8836_p4 }
  0x5f   : > { %p8832_p9 = pneg %p8831_p7 }
  0x61   : > { %p8839_p12 = pnand %p8838_p11, %p8832_p9 }
  0x63   : > { %8842 = shalt.err (!%p8839_p12)
}
  0x64   : > { %8614 = dma.hbm_to_vmem [thread:$0]  (!%p9383_p6), %s11100_s5, 3200, %s9389_s25, [#allocation12], %s11119_s26, %s11119_s26, %s11121_s20  }
  0x65   : > { %s9254_s30 = smov [#allocation14]   ;;  %s9255_s27 = smov [#allocation17]  }
  0x66   : > { %s453_s19 = sshll.u32 %s9254_s30, 4  ;;  %s480_s28 = sshll.u32 %s9255_s27, 4  ;;  %s454_s19 = int_to_ptr.vmem [resolvable:$true] %s453_s19  ;;  %s481_s28 = int_to_ptr.vmem [resolvable:$true] %s480_s28 }
  0x67   : > { %s8843_s14 = scalar_lea.hbm %s11102_s7, 6400 }
  0x68   : > { %p8844_p13 = scmp.ne.s32.totalorder %s11102_s7, %s8843_s14  ;;  %p8850_p5 = scmp.lt.u32.totalorder %s8843_s14, %s11102_s7 }
  0x6a   : > { %p8846_p0 = pnand %p8844_p13, %p9399_p8 }
  0x6c   : > { %p8847_p2 = pneg %p8846_p0 }
  0x6e   : > { %p8852_p7 = pnand %p8850_p5, %p8847_p2 }
  0x70   : > { %8855 = shalt.err (!%p8852_p7)
}
  0x71   : > { %s8856_s25 = scalar_lea.vmem %s454_s19, 6400  ;;  %p8864_p11 = scmp.lt.s32.totalorder %s454_s19, %s454_s19 }
  0x72   : > { %p8857_p9 = scmp.ne.s32.totalorder %s454_s19, %s8856_s25  ;;  %p8865_p12 = scmp.lt.s32.totalorder %s8856_s25, %s8856_s25 }
  0x74   : > { %p8859_p4 = pnand %p8857_p9, %p9399_p8  ;;  %p8866_p1 = por %p8865_p12, %p8864_p11 }
  0x76   : > { %p8860_p10 = pneg %p8859_p4 }
  0x78   : > { %p8867_p3 = pnand %p8866_p1, %p8860_p10 }
  0x7a   : > { %8870 = shalt.err (!%p8867_p3)
}
  0x7b   : > { %8620 = dma.hbm_to_vmem [thread:$0]  (!%p9383_p6), %s11102_s7, 6400, %s454_s19, [#allocation15], %s11119_s26, %s11119_s26, %s11121_s20  }
  0x7c   : > { %s8871_s17 = scalar_lea.hbm %s11104_s9, 16 }
  0x7d   : > { %p8872_p1 = scmp.ne.s32.totalorder %s11104_s9, %s8871_s17  ;;  %p8878_p0 = scmp.lt.u32.totalorder %s8871_s17, %s11104_s9 }
  0x7f   : > { %p8874_p3 = pnand %p8872_p1, %p9399_p8 }
  0x81   : > { %p8875_p13 = pneg %p8874_p3 }
  0x83   : > { %p8880_p2 = pnand %p8878_p0, %p8875_p13 }
  0x85   : > { %8883 = shalt.err (!%p8880_p2)
}
  0x86   : > { %s8884_s0 = scalar_lea.vmem %s481_s28, 16  ;;  %s8891_s19 = scalar_lea.vmem %s481_s28, 32 }
  0x87   : > { %p8885_p5 = scmp.ne.s32.totalorder %s481_s28, %s8884_s0  ;;  %p8892_p4 = scmp.lt.s32.totalorder %s481_s28, %s481_s28 }
  0x88   : > { %p8893_p10 = scmp.lt.s32.totalorder %s8891_s19, %s8884_s0 }
  0x89   : > { %p8887_p7 = pnand %p8885_p5, %p9399_p8 }
  0x8a   : > { %p8894_p11 = por %p8893_p10, %p8892_p4 }
  0x8b   : > { %p8888_p9 = pneg %p8887_p7 }
  0x8d   : > { %p8895_p12 = pnand %p8894_p11, %p8888_p9 }
  0x8f   : > { %8898 = shalt.err (!%p8895_p12)
}
  0x90   : > { %8626 = dma.hbm_to_vmem [thread:$0]  (!%p9383_p6), %s11104_s9, 16, %s481_s28, [#allocation18]  }
  0x91   : > { %s9256_s29 = smov [#allocation20]   ;;  %s9257_s27 = smov [#allocation7]  }
  0x92   : > { %s504_s30 = sshll.u32 %s9256_s29, 4  ;;  %s392_s17 = sshll.u32 %s9257_s27, 4  ;;  %s505_s30 = int_to_ptr.vmem [resolvable:$true] %s504_s30  ;;  %s393_s17 = int_to_ptr.vmem [resolvable:$true] %s392_s17 }
  0x93   : > { %s8899_s18 = scalar_lea.hbm %s11106_s11, 16 }
  0x94   : > { %p8900_p1 = scmp.ne.s32.totalorder %s11106_s11, %s8899_s18  ;;  %p8906_p0 = scmp.lt.u32.totalorder %s8899_s18, %s11106_s11 }
  0x96   : > { %p8902_p3 = pnand %p8900_p1, %p9399_p8 }
  0x98   : > { %p8903_p13 = pneg %p8902_p3 }
  0x9a   : > { %p8908_p2 = pnand %p8906_p0, %p8903_p13 }
  0x9c   : > { %8911 = shalt.err (!%p8908_p2)
}
  0x9d   : > { %s8912_s28 = scalar_lea.vmem %s505_s30, 16  ;;  %s8919_s1 = scalar_lea.vmem %s505_s30, 32 }
  0x9e   : > { %p8913_p5 = scmp.ne.s32.totalorder %s505_s30, %s8912_s28  ;;  %p8920_p4 = scmp.lt.s32.totalorder %s505_s30, %s505_s30 }
  0x9f   : > { %p8921_p10 = scmp.lt.s32.totalorder %s8919_s1, %s8912_s28 }
  0xa0   : > { %p8915_p7 = pnand %p8913_p5, %p9399_p8 }
  0xa1   : > { %p8922_p11 = por %p8921_p10, %p8920_p4 }
  0xa2   : > { %p8916_p9 = pneg %p8915_p7 }
  0xa4   : > { %p8923_p12 = pnand %p8922_p11, %p8916_p9 }
  0xa6   : > { %8926 = shalt.err (!%p8923_p12)
}
  0xa7   : > { %8632 = dma.hbm_to_vmem [thread:$0]  (!%p9383_p6), %s11106_s11, 16, %s505_s30, [#allocation21]  }
  0xa8   : > { %s11149_s2 = sld [smem:[#allocation52_spill]] }
  0xae   : > { %s8927_s18 = scalar_lea.hbm %s11149_s2, 17920 }
  0xaf   : > { %p8928_p1 = scmp.ne.s32.totalorder %s11149_s2, %s8927_s18  ;;  %p8934_p0 = scmp.lt.u32.totalorder %s8927_s18, %s11149_s2 }
  0xb1   : > { %p8930_p3 = pnand %p8928_p1, %p9399_p8 }
  0xb3   : > { %p8931_p13 = pneg %p8930_p3 }
  0xb5   : > { %p8936_p2 = pnand %p8934_p0, %p8931_p13 }
  0xb7   : > { %8939 = shalt.err (!%p8936_p2)
}
  0xb8   : > { %s8940_s28 = scalar_lea.vmem %s393_s17, 17920  ;;  %p8948_p4 = scmp.lt.s32.totalorder %s393_s17, %s393_s17 }
  0xb9   : > { %p8941_p5 = scmp.ne.s32.totalorder %s393_s17, %s8940_s28  ;;  %p8949_p10 = scmp.lt.s32.totalorder %s8940_s28, %s8940_s28 }
  0xbb   : > { %p8943_p7 = pnand %p8941_p5, %p9399_p8  ;;  %p8950_p11 = por %p8949_p10, %p8948_p4 }
  0xbd   : > { %p8944_p9 = pneg %p8943_p7 }
  0xbf   : > { %p8951_p12 = pnand %p8950_p11, %p8944_p9 }
  0xc1   : > { %8954 = shalt.err (!%p8951_p12)
}
  0xc2   : > { %s9258_s30 = smov 256   ;;  %s9259_s1 = smov 16  }
  0xc3   : > { %8605 = dma.hbm_to_vmem [thread:$0]  (!%p9383_p6), %s11149_s2, 17920, %s393_s17, [#allocation6], %s9258_s30, %s9258_s30, %s9259_s1  }
  0xc4   : > { %s9260_s24 = smov [#allocation10]   ;;  %s9261_s18 = smov [#allocation13]  }
  0xc5   : > { %s416_s14 = sshll.u32 %s9260_s24, 4  ;;  %s443_s22 = sshll.u32 %s9261_s18, 4  ;;  %s417_s14 = int_to_ptr.vmem [resolvable:$true] %s416_s14  ;;  %s444_s22 = int_to_ptr.vmem [resolvable:$true] %s443_s22 }
  0xc6   : > { %s8955_s25 = scalar_lea.hbm %s11099_s4, 7040 }
  0xc7   : > { %p8956_p1 = scmp.ne.s32.totalorder %s11099_s4, %s8955_s25  ;;  %p8962_p0 = scmp.lt.u32.totalorder %s8955_s25, %s11099_s4 }
  0xc9   : > { %p8958_p3 = pnand %p8956_p1, %p9399_p8 }
  0xcb   : > { %p8959_p13 = pneg %p8958_p3 }
  0xcd   : > { %p8964_p2 = pnand %p8962_p0, %p8959_p13 }
  0xcf   : > { %8967 = shalt.err (!%p8964_p2)
}
  0xd0   : > { %s8968_s17 = scalar_lea.vmem %s417_s14, 7040  ;;  %p8976_p4 = scmp.lt.s32.totalorder %s417_s14, %s417_s14 }
  0xd1   : > { %p8969_p5 = scmp.ne.s32.totalorder %s417_s14, %s8968_s17  ;;  %p8977_p10 = scmp.lt.s32.totalorder %s8968_s17, %s8968_s17 }
  0xd3   : > { %p8971_p7 = pnand %p8969_p5, %p9399_p8  ;;  %p8978_p11 = por %p8977_p10, %p8976_p4 }
  0xd5   : > { %p8972_p9 = pneg %p8971_p7 }
  0xd7   : > { %p8979_p12 = pnand %p8978_p11, %p8972_p9 }
  0xd9   : > { %8982 = shalt.err (!%p8979_p12)
}
  0xda   : > { %s11150_s26 = smov 8   ;;  %s11151_s30 = smov 128  }
  0xdb   : > { %8611 = dma.hbm_to_vmem [thread:$0]  (!%p9383_p6), %s11099_s4, 7040, %s417_s14, [#allocation9], %s11151_s30, %s11151_s30, %s11150_s26  }
  0xdc   : > { %s8983_s27 = scalar_lea.hbm %s11101_s6, 16 }
  0xdd   : > { %p8984_p1 = scmp.ne.s32.totalorder %s11101_s6, %s8983_s27  ;;  %p8990_p0 = scmp.lt.u32.totalorder %s8983_s27, %s11101_s6 }
  0xdf   : > { %p8986_p3 = pnand %p8984_p1, %p9399_p8 }
  0xe1   : > { %p8987_p13 = pneg %p8986_p3 }
  0xe3   : > { %p8992_p2 = pnand %p8990_p0, %p8987_p13 }
  0xe5   : > { %8995 = shalt.err (!%p8992_p2)
}
  0xe6   : > { %s8996_s25 = scalar_lea.vmem %s444_s22, 16  ;;  %s9003_s14 = scalar_lea.vmem %s444_s22, 32 }
  0xe7   : > { %p8997_p5 = scmp.ne.s32.totalorder %s444_s22, %s8996_s25  ;;  %p9004_p4 = scmp.lt.s32.totalorder %s444_s22, %s444_s22 }
  0xe8   : > { %p9005_p10 = scmp.lt.s32.totalorder %s9003_s14, %s8996_s25 }
  0xe9   : > { %p8999_p7 = pnand %p8997_p5, %p9399_p8 }
  0xea   : > { %p9006_p11 = por %p9005_p10, %p9004_p4 }
  0xeb   : > { %p9000_p9 = pneg %p8999_p7 }
  0xed   : > { %p9007_p12 = pnand %p9006_p11, %p9000_p9 }
  0xef   : > { %9010 = shalt.err (!%p9007_p12)
}
  0xf0   : > { %8617 = dma.hbm_to_vmem [thread:$0]  (!%p9383_p6), %s11101_s6, 16, %s444_s22, [#allocation12]  }
  0xf1   : > { %s9262_s3 = smov [#allocation16]   ;;  %s9263_s1 = smov [#allocation19]  }
  0xf2   : > { %s466_s20 = sshll.u32 %s9262_s3, 4  ;;  %s490_s29 = sshll.u32 %s9263_s1, 4  ;;  %s467_s20 = int_to_ptr.vmem [resolvable:$true] %s466_s20  ;;  %s491_s29 = int_to_ptr.vmem [resolvable:$true] %s490_s29 }
  0xf3   : > { %s9011_s18 = scalar_lea.hbm %s11103_s8, 640 }
  0xf4   : > { %p9012_p1 = scmp.ne.s32.totalorder %s11103_s8, %s9011_s18  ;;  %p9018_p0 = scmp.lt.u32.totalorder %s9011_s18, %s11103_s8 }
  0xf6   : > { %p9014_p3 = pnand %p9012_p1, %p9399_p8 }
  0xf8   : > { %p9015_p13 = pneg %p9014_p3 }
  0xfa   : > { %p9020_p2 = pnand %p9018_p0, %p9015_p13 }
  0xfc   : > { %9023 = shalt.err (!%p9020_p2)
}
  0xfd   : > { %s9024_s22 = scalar_lea.vmem %s467_s20, 640  ;;  %p9032_p4 = scmp.lt.s32.totalorder %s467_s20, %s467_s20 }
  0xfe   : > { %p9025_p5 = scmp.ne.s32.totalorder %s467_s20, %s9024_s22  ;;  %p9033_p10 = scmp.lt.s32.totalorder %s9024_s22, %s9024_s22 }
 0x100   : > { %p9027_p7 = pnand %p9025_p5, %p9399_p8  ;;  %p9034_p11 = por %p9033_p10, %p9032_p4 }
 0x102   : > { %p9028_p9 = pneg %p9027_p7 }
 0x104   : > { %p9035_p12 = pnand %p9034_p11, %p9028_p9 }
 0x106   : > { %9038 = shalt.err (!%p9035_p12)
}
 0x107   : > { %8623 = dma.hbm_to_vmem [thread:$0]  (!%p9383_p6), %s11103_s8, 640, %s467_s20, [#allocation15], %s11151_s30, %s11151_s30, %s11150_s26  }
 0x108   : > { %s9039_s27 = scalar_lea.hbm %s11105_s10, 1920 }
 0x109   : > { %p9040_p1 = scmp.ne.s32.totalorder %s11105_s10, %s9039_s27  ;;  %p9046_p0 = scmp.lt.u32.totalorder %s9039_s27, %s11105_s10 }
 0x10b   : > { %p9042_p3 = pnand %p9040_p1, %p9399_p8 }
 0x10d   : > { %p9043_p13 = pneg %p9042_p3 }
 0x10f   : > { %p9048_p2 = pnand %p9046_p0, %p9043_p13 }
 0x111   : > { %9051 = shalt.err (!%p9048_p2)
}
 0x112   : > { %s9052_s25 = scalar_lea.vmem %s491_s29, 1920  ;;  %p9060_p4 = scmp.lt.s32.totalorder %s491_s29, %s491_s29 }
 0x113   : > { %p9053_p5 = scmp.ne.s32.totalorder %s491_s29, %s9052_s25  ;;  %p9061_p10 = scmp.lt.s32.totalorder %s9052_s25, %s9052_s25 }
 0x115   : > { %p9055_p7 = pnand %p9053_p5, %p9399_p8  ;;  %p9062_p11 = por %p9061_p10, %p9060_p4 }
 0x117   : > { %p9056_p9 = pneg %p9055_p7 }
 0x119   : > { %p9063_p12 = pnand %p9062_p11, %p9056_p9 }
 0x11b   : > { %9066 = shalt.err (!%p9063_p12)
}
 0x11c   : > { %8629 = dma.hbm_to_vmem [thread:$0]  (!%p9383_p6), %s11105_s10, 1920, %s491_s29, [#allocation18], %s11151_s30, %s11151_s30, %s11150_s26  }
 0x11d   : > { %s9264_s22 = smov [#allocation22]   ;;  %s9265_s17 = smov [#allocation23]  }
 0x11e   : > { %s514_s28 = sshll.u32 %s9264_s22, 4  ;;  %s528_s3 = sshll.u32 %s9265_s17, 4  ;;  %s515_s28 = int_to_ptr.vmem [resolvable:$true] %s514_s28  ;;  %s529_s3 = int_to_ptr.vmem [resolvable:$true] %s528_s3 }
 0x11f   : > { %s9067_s24 = scalar_lea.hbm %s11107_s12, 1408 }
 0x120   : > { %p9068_p1 = scmp.ne.s32.totalorder %s11107_s12, %s9067_s24  ;;  %p9074_p0 = scmp.lt.u32.totalorder %s9067_s24, %s11107_s12 }
 0x122   : > { %p9070_p3 = pnand %p9068_p1, %p9399_p8 }
 0x124   : > { %p9071_p13 = pneg %p9070_p3 }
 0x126   : > { %p9076_p2 = pnand %p9074_p0, %p9071_p13 }
 0x128   : > { %9079 = shalt.err (!%p9076_p2)
}
 0x129   : > { %s9080_s29 = scalar_lea.vmem %s515_s28, 1408  ;;  %p9088_p4 = scmp.lt.s32.totalorder %s515_s28, %s515_s28 }
 0x12a   : > { %p9081_p5 = scmp.ne.s32.totalorder %s515_s28, %s9080_s29  ;;  %p9089_p10 = scmp.lt.s32.totalorder %s9080_s29, %s9080_s29 }
 0x12c   : > { %p9083_p7 = pnand %p9081_p5, %p9399_p8  ;;  %p9090_p11 = por %p9089_p10, %p9088_p4 }
 0x12e   : > { %p9084_p9 = pneg %p9083_p7 }
 0x130   : > { %p9091_p12 = pnand %p9090_p11, %p9084_p9 }
 0x132   : > { %9094 = shalt.err (!%p9091_p12)
}
 0x133   : > { %8635 = dma.hbm_to_vmem [thread:$0]  (!%p9383_p6), %s11107_s12, 1408, %s515_s28, [#allocation21], %s11151_s30, %s11151_s30, %s11150_s26  }
 0x134   : > { %s9095_s1 = scalar_lea.hbm %s11108_s13, 16 }
 0x135   : > { %p9096_p1 = scmp.ne.s32.totalorder %s11108_s13, %s9095_s1  ;;  %p9102_p0 = scmp.lt.u32.totalorder %s9095_s1, %s11108_s13 }
 0x137   : > { %p9098_p3 = pnand %p9096_p1, %p9399_p8 }
 0x139   : > { %p9099_p13 = pneg %p9098_p3 }
 0x13b   : > { %p9104_p2 = pnand %p9102_p0, %p9099_p13 }
 0x13d   : > { %9107 = shalt.err (!%p9104_p2)
}
 0x13e   : > { %s9108_s19 = scalar_lea.vmem %s529_s3, 16  ;;  %s9115_s28 = scalar_lea.vmem %s529_s3, 32 }
 0x13f   : > { %p9109_p5 = scmp.ne.s32.totalorder %s529_s3, %s9108_s19  ;;  %p9116_p4 = scmp.lt.s32.totalorder %s529_s3, %s529_s3 }
 0x140   : > { %p9117_p10 = scmp.lt.s32.totalorder %s9115_s28, %s9108_s19 }
 0x141   : > { %p9111_p7 = pnand %p9109_p5, %p9399_p8 }
 0x142   : > { %p9118_p11 = por %p9117_p10, %p9116_p4 }
 0x143   : > { %p9112_p9 = pneg %p9111_p7 }
 0x145   : > { %p9119_p12 = pnand %p9118_p11, %p9112_p9 }
 0x147   : > { %9122 = shalt.err (!%p9119_p12)
}
 0x148   : > { %s11152_s20 = sld [smem:[#allocation36_spill]]  ;;  %s11153_s21 = sld [smem:[#allocation35_spill]] }
 0x149   : > { %s11154_s14 = sld [smem:[#allocation37_spill]]  ;;  %s5548_s22 = sadd.s32 4294967294, %s9247_s16  }
 0x14a   : > { %8638 = dma.hbm_to_vmem [thread:$0]  (!%p9383_p6), %s11108_s13, 16, %s529_s3, [#allocation24]  }
 0x14b   : > { %s9670_s23 = sadd.s32 1, %s9247_s16   ;;  %s44_s17 = sadd.s32 1, %s9243_s15 }
 0x14c   : > { %s41_s1 = ssub.s32 %s9247_s16, %s9670_s23  ;;  %p52_p3 = scmp.eq.s32.totalorder %s9247_s16, 0 }
 0x14d   : > { %p42_p1 = scmp.eq.s32.totalorder %s41_s1, 0  ;;  %p360_p9 = scmp.eq.s32.totalorder %s5548_s22, 1 }
 0x14e   : > { %p51_p8 = scmp.ne.s32.totalorder %s9243_s15, %s11152_s20  ;;  %p57_p13 = scmp.ne.s32.totalorder %s11152_s20, %s11153_s21 }
 0x14f   : > { %p354_p0 = scmp.eq.s32.totalorder %s11154_s14, 1  ;;  %p11155_p5 = scmp.eq.s32.totalorder %s11154_s14, 0 }
 0x150   : > { %s9682_s27 = scalar_select %p42_p1, %s9243_s15, %s44_s17  }
 0x151   : > { %p53_p2 = por %p52_p3, %p51_p8  ;;  %p9686_p7 = por %p11155_p5, %p57_p13 }
 0x152   : > { %p9690_p6 = por %p354_p0, %p51_p8  ;;  %p8660_p4 = scmp.lt.s32.totalorder %s9247_s16, 2 }
 0x153   : > { %s539_s18 = sand.u32 1, %s9243_s15   ;;  %p9696_p10 = por %p360_p9, %p57_p13 }
 0x154   : > { %s11157_s3 = scalar_select %p9690_p6, 1, 0 }
 0x155   : > { %s11158_s0 = scalar_select %p9696_p10, 1, 0 }
 0x156   : > { %s5564_s19 = sshll.u32 %s539_s18, 8  ;;  %s5885_s28 = sshll.u32 %s9247_s16, 12 }
 0x157   : > { %s11159_s20 = sld [smem:[#allocation50_spill]]  ;;  %s543_s14 = scalar_lea.vmem [#allocation2], %s5564_s19 }
 0x158   : > { %s550_s17 = sshll.u32 %s543_s14, 4  ;;  %p9706_p11 = pnand %p8660_p4, %p53_p2  ;;  %s9710_s17 = int_to_ptr.vmem [resolvable:$true] %s550_s17 }
 0x159   : > { %s9712_s1 = scalar_lea.sflag [#allocation3], %s539_s18 }
 0x15a   : > { %p9125_p8 = pneg %p9706_p11 }
 0x15d   : > { %s9704_s21 = scalar_lea.hbm %s11159_s20, %s5885_s28  ;;  %s9128_s25 = scalar_lea.hbm %s11159_s20, 8192 }
 0x15e   : > { %s9123_s2 = scalar_lea.hbm %s9704_s21, 4096  ;;  %p9129_p13 = scmp.lt.u32.totalorder %s9704_s21, %s11159_s20 }
 0x15f   : > { %p9124_p12 = scmp.ne.s32.totalorder %s9704_s21, %s9123_s2  ;;  %p9130_p0 = scmp.lt.u32.totalorder %s9128_s25, %s9123_s2 }
 0x160   : > { %p9132_p5 = scmp.lt.u32.totalorder %s9123_s2, %s9704_s21 }
 0x161   : > { %p9126_p1 = pnand %p9125_p8, %p9124_p12  ;;  %p9131_p2 = por %p9130_p0, %p9129_p13 }
 0x163   : > { %p9127_p3 = pneg %p9126_p1  ;;  %p9133_p9 = por %p9132_p5, %p9131_p2 }
 0x165   : > { %p9134_p4 = pnand %p9133_p9, %p9127_p3 }
 0x167   : > { %9137 = shalt.err (!%p9134_p4)
}
 0x168   : > { %s9138_s18 = scalar_lea.vmem %s9710_s17, 4096  ;;  %s9266_s19 = smov [#allocation2]  }
 0x169   : > { %p9139_p12 = scmp.ne.s32.totalorder %s9710_s17, %s9138_s18  ;;  %s9143_s28 = sshll.u32 %s9266_s19, 4  ;;  %s9144_s28 = int_to_ptr.vmem [resolvable:$false] %s9143_s28 }
 0x16a   : > { %s9145_s29 = scalar_lea.vmem %s9144_s28, 8192  ;;  %p9146_p6 = scmp.lt.s32.totalorder %s9710_s17, %s9144_s28 }
 0x16b   : > { %p9141_p1 = pnand %p9139_p12, %p9125_p8  ;;  %p9147_p13 = scmp.lt.s32.totalorder %s9145_s29, %s9138_s18 }
 0x16d   : > { %p9142_p10 = pneg %p9141_p1  ;;  %p9148_p0 = por %p9147_p13, %p9146_p6 }
 0x16f   : > { %p9149_p2 = pnand %p9148_p0, %p9142_p10 }
 0x171   : > { %9152 = shalt.err (!%p9149_p2)
}
 0x172   : > { %8642 = dma.hbm_to_vmem [thread:$0]  (!%p9706_p11), %s9704_s21, 4096, %s9710_s17, %s9712_s1, %s11151_s30, %s11151_s30, %s11150_s26  }
 0x173   : > { %s11161_s2 = sld [smem:[#allocation38_spill]] }
 0x179   : > { %p11162_p8 = scmp.ne.s32.totalorder %s11161_s2, 0 }
 0x17b   : > { %562 = sbr.rel (%p11162_p8) target bundleno = 4176 (0x1050), region = 76 }
 0x182   : > { %s11163_s25 = sld [smem:[#allocation36_spill]] }
 0x188   : > { %s9746_s14 = sand.u32 1, %s11163_s25  }
 0x189   : > { %s5568_s18 = sshll.u32 %s9746_s14, 8  ;;  %s565_s19 = scalar_lea.sflag [#allocation3], %s9746_s14 }
 0x18a   : > { %s9750_s28 = scalar_lea.vmem [#allocation2], %s5568_s18 }
 0x18b   : > { %9198 = dma.done.wait (%p9686_p7), %s565_s19, 4096  }
 0x18c   : > { %9200 = vsyncadd (%p9686_p7), %s565_s19, 4294963200  ;;  %s11164_s22 = sld [smem:[#allocation37_spill]] }
 0x192   : > { %p11165_p6 = scmp.eq.s32.totalorder %s11164_s22, 0 }
 0x194   : > { %9202 = dma.done.wait (%p11165_p6), [#allocation6], 25600   ;;  %p11166_p10 = pmov %p11165_p6 }
 0x195   : > { %p11167_p11 = pmov %p11165_p6 }
 0x196   : > { %9204 = vsyncadd (%p11166_p10), [#allocation6], 4294941696 }
 0x197   : > { %9206 = dma.done.wait (%p11167_p11), [#allocation9], 7056   ;;  %p11168_p3 = pmov %p11165_p6 }
 0x199   : > { %9208 = vsyncadd (%p11168_p3), [#allocation9], 4294960240  ;;  %p11169_p5 = pmov %p11168_p3 }
 0x19a   : > { %p11170_p9 = pmov %p11168_p3 }
 0x19b   : > { %9210 = dma.done.wait (%p11169_p5), [#allocation12], 3216  }
 0x19c   : > { %9212 = vsyncadd (%p11170_p9), [#allocation12], 4294964080  ;;  %p11171_p7 = pmov %p11168_p3 }
 0x19d   : > { %p11172_p4 = pmov %p11168_p3 }
 0x19e   : > { %9214 = dma.done.wait (%p11171_p7), [#allocation15], 7040  }
 0x19f   : > { %9216 = vsyncadd (%p11172_p4), [#allocation15], 4294960256  ;;  %p11173_p12 = pmov %p11168_p3 }
 0x1a0   : > { %p11174_p1 = pmov %p11168_p3 }
 0x1a1   : > { %9218 = dma.done.wait (%p11173_p12), [#allocation18], 1936  }
 0x1a2   : > { %9220 = vsyncadd (%p11174_p1), [#allocation18], 4294965360  ;;  %p11175_p13 = pmov %p11174_p1 }
 0x1a3   : > { %p11176_p0 = pmov %p11174_p1 }
 0x1a4   : > { %9222 = dma.done.wait (%p11175_p13), [#allocation21], 1424  }
 0x1a5   : > { %9224 = vsyncadd (%p11176_p0), [#allocation21], 4294965872  ;;  %p11177_p2 = pmov %p11176_p0 }
 0x1a6   : > { %p11178_p8 = pmov %p11176_p0 }
 0x1a7   : > { %9226 = dma.done.wait (%p11177_p2), [#allocation24], 16  }
 0x1a8   : > { %9228 = vsyncadd (%p11178_p8), [#allocation24], 4294967280  ;;  %v698_v0 = vld [vmem:[#allocation5] sm:$0xff]  ;;  %v699_v1 = vld [vmem:[#allocation5 + $0x8] sm:$0xff]  ;;  %vm710_vm0 = vcmask 785408   ;;  %vm2920_vm1 = vcmask 1043456  }
 0x1a9   : > { %v1061_v2 = vld [vmem:[#allocation5 + $0x60] sm:$0xff]  ;;  %v7917_v3 = vpack.c.bf16 %v699_v1, %v698_v0  ;;  %v1062_v4 = vld [vmem:[#allocation5 + $0x68] sm:$0xff]  ;;  %v700_v5 = vld [vmem:[#allocation5 + $0x10] sm:$0xff]  ;;  %vm2877_vm2 = vcmask 687104   ;;  %vm9268_vm3 = vmmov 0   ;;  %vm3220_vm4 = vcmask 916480  }
 0x1aa   : > { %v701_v6 = vld [vmem:[#allocation5 + $0x18] sm:$0xff]  ;;  %v7941_v7 = vpack.c.bf16 %v1062_v4, %v1061_v2  ;;  %v1063_v9 = vld [vmem:[#allocation5 + $0x70] sm:$0xff]  ;;  %v702_v11 = vld [vmem:[#allocation5 + $0x20] sm:$0xff]  ;;  %vm4251_vm5 = vcmask 654336   ;;  %vm4461_vm6 = vcmask 326656   ;;  %vm5170_vm7 = vcmask 982016  }
 0x1ab   : > { %v7921_v8 = vpack.c.bf16 %v701_v6, %v700_v5  ;;  %v1064_v10 = vld [vmem:[#allocation5 + $0x78] sm:$0xff]  ;;  %7918 = vmatprep.subr.bf16.mxu0 %v7917_v3  ;;  %v703_v13 = vld [vmem:[#allocation5 + $0x28] sm:$0xff]  ;;  %v1065_v14 = vld [vmem:[#allocation5 + $0x80] sm:$0xff]  ;;  %s5582_s26 = sshll.u32 %s9746_s14, 3  ;;  %s5882_s30 = sshll.u32 %s11164_s22, 7 }
 0x1ac   : > { %v7945_v12 = vpack.c.bf16 %v1064_v10, %v1063_v9  ;;  %v1066_v15 = vld [vmem:[#allocation5 + $0x88] sm:$0xff]  ;;  %7942 = vmatprep.subr.bf16.mxu1 %v7941_v7  ;;  %7920 = vmatpush3.bf16.msra.mxu0 %v7917_v3  ;;  %v7925_v16 = vpack.c.bf16 %v703_v13, %v702_v11  ;;  %v704_v18 = vld [vmem:[#allocation5 + $0x30] sm:$0xff]  ;;  %v705_v19 = vld [vmem:[#allocation5 + $0x38] sm:$0xff]  ;;  %s664_s24 = scalar_lea.vmem [#allocation25], %s5582_s26  ;;  %s11224_s29 = sld [smem:[#allocation54_spill]] }
 0x1ad   : > { %7944 = vmatpush3.bf16.msra.mxu1 %v7941_v7  ;;  %7922 = vmatprep.subr.bf16.mxu0 %v7921_v8  ;;  %v7949_v17 = vpack.c.bf16 %v1066_v15, %v1065_v14  ;;  %v1067_v20 = vld [vmem:[#allocation5 + $0x90] sm:$0xff]  ;;  %v1068_v21 = vld [vmem:[#allocation5 + $0x98] sm:$0xff]  ;;  %v9785_v22 = vld [vmem:[%s9750_s28] sm:$0xff]  ;;  %v7929_v23 = vpack.c.bf16 %v705_v19, %v704_v18  ;;  %s5354_s21 = sshll.u32 %s664_s24, 4  ;;  %s5341_s18 = scalar_lea.sflag [#allocation4], %s9746_s14  ;;  %s11053_s21 = int_to_ptr.vmem [resolvable:$true] %s5354_s21 }
 0x1ae   : > { %7946 = vmatprep.subr.bf16.mxu1 %v7945_v12  ;;  %v7953_v24 = vpack.c.bf16 %v1068_v21, %v1067_v20  ;;  %v706_v25 = vld [vmem:[#allocation5 + $0x40] sm:$0xff]  ;;  %v707_v26 = vld [vmem:[#allocation5 + $0x48] sm:$0xff]  ;;  %6853 = vmatprep.mubr.msk.f32.mxu0 %vm710_vm0, %v9785_v22  ;;  %v708_v31 = vld [vmem:[#allocation5 + $0x50] sm:$0xff]  ;;  %s9153_s19 = scalar_lea.vmem %s11053_s21, 128  ;;  %p11226_p10 = scmp.ne.s32.totalorder %s11157_s3, 0 }
 0x1af   : > { %v1069_v27 = vld [vmem:[#allocation5 + $0xa0] sm:$0xff]  ;;  %v1070_v28 = vld [vmem:[#allocation5 + $0xa8] sm:$0xff]  ;;  %6925 = vmatprep.mubr.msk.f32.mxu1 %vm710_vm0, %v9785_v22  ;;  %v7933_v29 = vpack.c.bf16 %v707_v26, %v706_v25  ;;  %v709_v32 = vld [vmem:[#allocation5 + $0x58] sm:$0xff]  ;;  %p9154_p6 = scmp.ne.s32.totalorder %s11053_s21, %s9153_s19 }
 0x1b0   : > { %7924 = vmatpush3.bf16.msra.mxu0 %v7921_v8  ;;  %v7957_v30 = vpack.c.bf16 %v1070_v28, %v1069_v27  ;;  %v1071_v33 = vld [vmem:[#allocation5 + $0xb0] sm:$0xff]  ;;  %v1072_v34 = vld [vmem:[#allocation5 + $0xb8] sm:$0xff]  ;;  %v7937_v35 = vpack.c.bf16 %v709_v32, %v708_v31  ;;  %v9792_v37 = vld [vmem:[%s9750_s28 + $0x8] sm:$0xff] }
 0x1b1   : > { %7948 = vmatpush3.bf16.msra.mxu1 %v7945_v12  ;;  %7926 = vmatprep.subr.bf16.mxu0 %v7925_v16  ;;  %v7961_v36 = vpack.c.bf16 %v1072_v34, %v1071_v33  ;;  %v9795_v38 = vld [vmem:[%s9750_s28 + $0x10] sm:$0xff]  ;;  %v9804_v39 = vld [vmem:[%s9750_s28 + $0x18] sm:$0xff]  ;;  %v9809_v40 = vld [vmem:[%s9750_s28 + $0x20] sm:$0xff]  ;;  %p9155_p11 = pnand %p9154_p6, %p11226_p10 }
 0x1b2   : > { %7950 = vmatprep.subr.bf16.mxu1 %v7949_v17  ;;  %v9818_v41 = vld [vmem:[%s9750_s28 + $0x28] sm:$0xff]  ;;  %v9823_v42 = vld [vmem:[%s9750_s28 + $0x30] sm:$0xff]  ;;  %v9832_v43 = vld [vmem:[%s9750_s28 + $0x38] sm:$0xff]  ;;  %s11225_s2 = smov %s11224_s29  ;;  %s11051_s25 = scalar_lea.hbm %s11224_s29, %s5882_s30 }
 0x1b3   : > { %v9837_v44 = vld [vmem:[%s9750_s28 + $0x40] sm:$0xff]  ;;  %v9846_v45 = vld [vmem:[%s9750_s28 + $0x48] sm:$0xff]  ;;  %v9851_v46 = vld [vmem:[%s9750_s28 + $0x50] sm:$0xff]  ;;  %p9156_p3 = pneg %p9155_p11 }
 0x1b4   : > { %7928 = vmatpush3.bf16.msra.mxu0 %v7925_v16  ;;  %v9860_v47 = vld [vmem:[%s9750_s28 + $0x58] sm:$0xff]  ;;  %v9865_v48 = vld [vmem:[%s9750_s28 + $0x60] sm:$0xff]  ;;  %v9874_v49 = vld [vmem:[%s9750_s28 + $0x68] sm:$0xff] }
 0x1b5   : > { %7952 = vmatpush3.bf16.msra.mxu1 %v7949_v17  ;;  %7930 = vmatprep.subr.bf16.mxu0 %v7929_v23  ;;  %v9879_v50 = vld [vmem:[%s9750_s28 + $0x70] sm:$0xff]  ;;  %v9888_v51 = vld [vmem:[%s9750_s28 + $0x78] sm:$0xff]  ;;  %v9893_v52 = vld [vmem:[%s9750_s28 + $0x80] sm:$0xff] }
 0x1b6   : > { %7954 = vmatprep.subr.bf16.mxu1 %v7953_v24  ;;  %v9902_v53 = vld [vmem:[%s9750_s28 + $0x88] sm:$0xff]  ;;  %v9907_v54 = vld [vmem:[%s9750_s28 + $0x90] sm:$0xff]  ;;  %v9916_v55 = vld [vmem:[%s9750_s28 + $0x98] sm:$0xff] }
 0x1b7   : > { %v9921_v56 = vld [vmem:[%s9750_s28 + $0xa0] sm:$0xff]  ;;  %v9930_v57 = vld [vmem:[%s9750_s28 + $0xa8] sm:$0xff]  ;;  %v9935_v58 = vld [vmem:[%s9750_s28 + $0xb0] sm:$0xff] }
 0x1b8   : > { %7932 = vmatpush3.bf16.msra.mxu0 %v7929_v23  ;;  %11179 = vst [vmem:[#allocation39_spill] sm:$0xff] %v9930_v57  ;;  %11180 = vst [vmem:[#allocation40_spill] sm:$0xff] %v9935_v58  ;;  %v9944_v59 = vld [vmem:[%s9750_s28 + $0xb8] sm:$0xff]  ;;  %v9949_v60 = vld [vmem:[%s9750_s28 + $0xc0] sm:$0xff] }
 0x1b9   : > { %7956 = vmatpush3.bf16.msra.mxu1 %v7953_v24  ;;  %7934 = vmatprep.subr.bf16.mxu0 %v7933_v29  ;;  %11181 = vst [vmem:[#allocation41_spill] sm:$0xff] %v9944_v59  ;;  %11182 = vst [vmem:[#allocation42_spill] sm:$0xff] %v9949_v60  ;;  %v9958_v61 = vld [vmem:[%s9750_s28 + $0xc8] sm:$0xff]  ;;  %v9963_v62 = vld [vmem:[%s9750_s28 + $0xd0] sm:$0xff] }
 0x1ba   : > { %7958 = vmatprep.subr.bf16.mxu1 %v7957_v30  ;;  %11183 = vst [vmem:[#allocation43_spill] sm:$0xff] %v9958_v61  ;;  %11184 = vst [vmem:[#allocation44_spill] sm:$0xff] %v9963_v62  ;;  %v9972_v63 = vld [vmem:[%s9750_s28 + $0xd8] sm:$0xff]  ;;  %v9977_v0 = vld [vmem:[%s9750_s28 + $0xe0] sm:$0xff] }
 0x1bb   : > { %11185 = vst [vmem:[#allocation45_spill] sm:$0xff] %v9972_v63  ;;  %11186 = vst [vmem:[#allocation46_spill] sm:$0xff] %v9977_v0  ;;  %v9986_v1 = vld [vmem:[%s9750_s28 + $0xe8] sm:$0xff]  ;;  %v9991_v2 = vld [vmem:[%s9750_s28 + $0xf0] sm:$0xff] }
 0x1bc   : > { %7936 = vmatpush3.bf16.msra.mxu0 %v7933_v29  ;;  %11187 = vst [vmem:[#allocation47_spill] sm:$0xff] %v9986_v1  ;;  %11188 = vst [vmem:[#allocation48_spill] sm:$0xff] %v9991_v2  ;;  %v10000_v3 = vld [vmem:[%s9750_s28 + $0xf8] sm:$0xff]  ;;  %v1300_v4 = vld [vmem:[#allocation7 + $0xe8] sm:$0xff] }
 0x1bd   : > { %7960 = vmatpush3.bf16.msra.mxu1 %v7957_v30  ;;  %7938 = vmatprep.subr.bf16.mxu0 %v7937_v35  ;;  %11189 = vst [vmem:[#allocation49_spill] sm:$0xff] %v10000_v3  ;;  %v1033_v5 = vld [vmem:[#allocation7 + $0x8] sm:$0xff] }
 0x1be   : > { %7962 = vmatprep.subr.bf16.mxu1 %v7961_v36 }
 0x1c0   : > { %7940 = vmatpush3.bf16.msra.mxu0 %v7937_v35 }
 0x1c1   : > { %7964 = vmatpush3.bf16.msra.mxu1 %v7961_v36 }
 0x1c3   : > { %6854 = vmatmul.mubr.msk.f32.vlgmr.msra.gmra.mrb[0].mxu0 %vm710_vm0, %v9792_v37 }
 0x1c4   : > { %6926 = vmatmul.mubr.msk.f32.vlgmr.msra.gmra.mrb[0].mxu1 %vm710_vm0, %v9792_v37  ;;  %6856 = vmatprep.mubr.msk.f32.mxu0 %vm710_vm0, %v9795_v38 }
 0x1c5   : > { %6928 = vmatprep.mubr.msk.f32.mxu1 %vm710_vm0, %v9795_v38 }
 0x1c7   : > { %6857 = vmatmul.mubr.msk.f32.gmra.mrb[2].mxu0 %vm710_vm0, %v9804_v39 }
 0x1c8   : > { %6929 = vmatmul.mubr.msk.f32.gmra.mrb[2].mxu1 %vm710_vm0, %v9804_v39  ;;  %6859 = vmatprep.mubr.msk.f32.mxu0 %vm710_vm0, %v9809_v40 }
 0x1c9   : > { %6931 = vmatprep.mubr.msk.f32.mxu1 %vm710_vm0, %v9809_v40 }
 0x1cb   : > { %6860 = vmatmul.mubr.msk.f32.gmra.mrb[4].mxu0 %vm710_vm0, %v9818_v41 }
 0x1cc   : > { %6932 = vmatmul.mubr.msk.f32.gmra.mrb[4].mxu1 %vm710_vm0, %v9818_v41  ;;  %6862 = vmatprep.mubr.msk.f32.mxu0 %vm710_vm0, %v9823_v42 }
 0x1cd   : > { %6934 = vmatprep.mubr.msk.f32.mxu1 %vm710_vm0, %v9823_v42 }
 0x1cf   : > { %6863 = vmatmul.mubr.msk.f32.gmra.mrb[6].mxu0 %vm710_vm0, %v9832_v43 }
 0x1d0   : > { %6935 = vmatmul.mubr.msk.f32.gmra.mrb[6].mxu1 %vm710_vm0, %v9832_v43  ;;  %6865 = vmatprep.mubr.msk.f32.mxu0 %vm710_vm0, %v9837_v44 }
 0x1d1   : > { %6937 = vmatprep.mubr.msk.f32.mxu1 %vm710_vm0, %v9837_v44 }
 0x1d3   : > { %6866 = vmatmul.mubr.msk.f32.gmra.mrb[8].mxu0 %vm710_vm0, %v9846_v45 }
 0x1d4   : > { %6938 = vmatmul.mubr.msk.f32.gmra.mrb[8].mxu1 %vm710_vm0, %v9846_v45  ;;  %6868 = vmatprep.mubr.msk.f32.mxu0 %vm710_vm0, %v9851_v46 }
 0x1d5   : > { %6940 = vmatprep.mubr.msk.f32.mxu1 %vm710_vm0, %v9851_v46 }
 0x1d7   : > { %6869 = vmatmul.mubr.msk.f32.gmra.mrb[10].mxu0 %vm710_vm0, %v9860_v47 }
 0x1d8   : > { %6941 = vmatmul.mubr.msk.f32.gmra.mrb[10].mxu1 %vm710_vm0, %v9860_v47  ;;  %6871 = vmatprep.mubr.msk.f32.mxu0 %vm710_vm0, %v9865_v48 }
 0x1d9   : > { %6943 = vmatprep.mubr.msk.f32.mxu1 %vm710_vm0, %v9865_v48 }
 0x1db   : > { %6872 = vmatmul.mubr.msk.f32.gmra.mrb[12].mxu0 %vm710_vm0, %v9874_v49 }
 0x1dc   : > { %6944 = vmatmul.mubr.msk.f32.gmra.mrb[12].mxu1 %vm710_vm0, %v9874_v49  ;;  %6874 = vmatprep.mubr.msk.f32.mxu0 %vm710_vm0, %v9879_v50 }
 0x1dd   : > { %6946 = vmatprep.mubr.msk.f32.mxu1 %vm710_vm0, %v9879_v50 }
 0x1df   : > { %6875 = vmatmul.mubr.msk.f32.gmra.mrb[14].mxu0 %vm710_vm0, %v9888_v51 }
 0x1e0   : > { %6947 = vmatmul.mubr.msk.f32.gmra.mrb[14].mxu1 %vm710_vm0, %v9888_v51  ;;  %6877 = vmatprep.mubr.msk.f32.mxu0 %vm710_vm0, %v9893_v52 }
 0x1e1   : > { %6949 = vmatprep.mubr.msk.f32.mxu1 %vm710_vm0, %v9893_v52 }
 0x1e3   : > { %6878 = vmatmul.mubr.msk.f32.gmra.mrb[16].mxu0 %vm710_vm0, %v9902_v53 }
 0x1e4   : > { %6950 = vmatmul.mubr.msk.f32.gmra.mrb[16].mxu1 %vm710_vm0, %v9902_v53  ;;  %6880 = vmatprep.mubr.msk.f32.mxu0 %vm710_vm0, %v9907_v54 }
 0x1e5   : > { %6952 = vmatprep.mubr.msk.f32.mxu1 %vm710_vm0, %v9907_v54 }
 0x1e7   : > { %6881 = vmatmul.mubr.msk.f32.gmra.mrb[18].mxu0 %vm710_vm0, %v9916_v55 }
 0x1e8   : > { %6953 = vmatmul.mubr.msk.f32.gmra.mrb[18].mxu1 %vm710_vm0, %v9916_v55  ;;  %6883 = vmatprep.mubr.msk.f32.mxu0 %vm710_vm0, %v9921_v56 }
 0x1e9   : > { %6955 = vmatprep.mubr.msk.f32.mxu1 %vm710_vm0, %v9921_v56 }
 0x1eb   : > { %6884 = vmatmul.mubr.msk.f32.gmra.mrb[20].mxu0 %vm710_vm0, %v9930_v57 }
 0x1ec   : > { %6956 = vmatmul.mubr.msk.f32.gmra.mrb[20].mxu1 %vm710_vm0, %v9930_v57  ;;  %6886 = vmatprep.mubr.msk.f32.mxu0 %vm710_vm0, %v9935_v58 }
 0x1ed   : > { %6958 = vmatprep.mubr.msk.f32.mxu1 %vm710_vm0, %v9935_v58 }
 0x1ef   : > { %6887 = vmatmul.mubr.msk.f32.gmra.mrb[22].mxu0 %vm710_vm0, %v9944_v59 }
 0x1f0   : > { %6959 = vmatmul.mubr.msk.f32.gmra.mrb[22].mxu1 %vm710_vm0, %v9944_v59  ;;  %6889 = vmatprep.mubr.msk.f32.mxu0 %vm710_vm0, %v9949_v60 }
 0x1f1   : > { %6961 = vmatprep.mubr.msk.f32.mxu1 %vm710_vm0, %v9949_v60 }
 0x1f3   : > { %6890 = vmatmul.mubr.msk.f32.gmra.mrb[24].mxu0 %vm710_vm0, %v9958_v61 }
 0x1f4   : > { %6962 = vmatmul.mubr.msk.f32.gmra.mrb[24].mxu1 %vm710_vm0, %v9958_v61  ;;  %6892 = vmatprep.mubr.msk.f32.mxu0 %vm710_vm0, %v9963_v62 }
 0x1f5   : > { %6964 = vmatprep.mubr.msk.f32.mxu1 %vm710_vm0, %v9963_v62 }
 0x1f7   : > { %6893 = vmatmul.mubr.msk.f32.gmra.mrb[26].mxu0 %vm710_vm0, %v9972_v63 }
 0x1f8   : > { %6965 = vmatmul.mubr.msk.f32.gmra.mrb[26].mxu1 %vm710_vm0, %v9972_v63  ;;  %6895 = vmatprep.mubr.msk.f32.mxu0 %vm710_vm0, %v9977_v0 }
 0x1f9   : > { %6967 = vmatprep.mubr.msk.f32.mxu1 %vm710_vm0, %v9977_v0 }
 0x1fb   : > { %6896 = vmatmul.mubr.msk.f32.gmra.mrb[28].mxu0 %vm710_vm0, %v9986_v1 }
 0x1fc   : > { %6968 = vmatmul.mubr.msk.f32.gmra.mrb[28].mxu1 %vm710_vm0, %v9986_v1  ;;  %6898 = vmatprep.mubr.msk.f32.mxu0 %vm710_vm0, %v9991_v2 }
 0x1fd   : > { %6970 = vmatprep.mubr.msk.f32.mxu1 %vm710_vm0, %v9991_v2 }
 0x1ff   : > { %6899 = vmatmul.mubr.msk.f32.gmra.mrb[30].mxu0 %vm710_vm0, %v10000_v3 }
 0x200   : > { %6971 = vmatmul.mubr.msk.f32.gmra.mrb[30].mxu1 %vm710_vm0, %v10000_v3  ;;  %1391 = vmatprep.mubr.f32.mxu0 %v1300_v4 }
 0x201   : > { %1526 = vmatprep.mubr.f32.mxu1 %v1033_v5 }
 0x296   : > { %v6855_v6 = vpop.f32.mrb[0].mxu0 }
 0x297   : > { %v6927_v7 = vpop.f32.mrb[0].mxu1  ;;  %v873_v8 = vpop.f32.mrb[1].mxu0 }
 0x298   : > { %v1139_v9 = vpop.f32.mrb[1].mxu1  ;;  %v7999_v10 = vpack.c.bf16 %v6855_v6, %v873_v8 }
 0x299   : > { %v7967_v11 = vpack.c.bf16 %v6927_v7, %v1139_v9 }
 0x29a   : > { %v10008_v12 = vpop.f32.mrb[2].mxu0 }
 0x29b   : > { %v10010_v13 = vpop.f32.mrb[2].mxu1  ;;  %v883_v14 = vpop.f32.mrb[3].mxu0 }
 0x29c   : > { %v10012_v15 = vpop.f32.mrb[3].mxu1  ;;  %v8003_v16 = vpack.c.bf16 %v10008_v12, %v883_v14 }
 0x29d   : > { %v7971_v17 = vpack.c.bf16 %v10010_v13, %v10012_v15 }
 0x29e   : > { %v10017_v18 = vpop.f32.mrb[4].mxu0 }
 0x29f   : > { %v10019_v19 = vpop.f32.mrb[4].mxu1  ;;  %v10021_v20 = vpop.f32.mrb[5].mxu0 }
 0x2a0   : > { %v10023_v21 = vpop.f32.mrb[5].mxu1  ;;  %v8007_v23 = vpack.c.bf16 %v10017_v18, %v10021_v20 }
 0x2a2   : > { %v10029_v25 = vpop.f32.mrb[6].mxu0 }
 0x2a3   : > { %v10031_v26 = vpop.f32.mrb[6].mxu1  ;;  %v10033_v27 = vpop.f32.mrb[7].mxu0 }
 0x2a4   : > { %v10035_v28 = vpop.f32.mrb[7].mxu1 }
 0x2a6   : > { %v10041_v31 = vpop.f32.mrb[8].mxu0 }
 0x2a7   : > { %v10043_v32 = vpop.f32.mrb[8].mxu1  ;;  %v10045_v33 = vpop.f32.mrb[9].mxu0 }
 0x2a8   : > { %v10047_v34 = vpop.f32.mrb[9].mxu1 }
 0x2aa   : > { %v10053_v4 = vpop.f32.mrb[10].mxu0 }
 0x2ab   : > { %v10055_v5 = vpop.f32.mrb[10].mxu1  ;;  %v10057_v6 = vpop.f32.mrb[11].mxu0 }
 0x2ac   : > { %v10059_v7 = vpop.f32.mrb[11].mxu1 }
 0x2ae   : > { %v10065_v12 = vpop.f32.mrb[12].mxu0 }
 0x2af   : > { %v10067_v13 = vpop.f32.mrb[12].mxu1  ;;  %v10069_v14 = vpop.f32.mrb[13].mxu0 }
 0x2b0   : > { %v10071_v15 = vpop.f32.mrb[13].mxu1 }
 0x2b2   : > { %v10077_v36 = vpop.f32.mrb[14].mxu0 }
 0x2b3   : > { %v10079_v8 = vpop.f32.mrb[14].mxu1  ;;  %v10081_v35 = vpop.f32.mrb[15].mxu0 }
 0x2b4   : > { %v10083_v9 = vpop.f32.mrb[15].mxu1 }
 0x2b6   : > { %v6879_v24 = vpop.f32.mrb[16].mxu0 }
 0x2b7   : > { %v6951_v3 = vpop.f32.mrb[16].mxu1  ;;  %v953_v18 = vpop.f32.mrb[17].mxu0 }
 0x2b8   : > { %v7997_v2 = vpack.c.bf16 %v6879_v24, %v953_v18  ;;  %v1219_v1 = vpop.f32.mrb[17].mxu1 }
 0x2b9   : > { %v7965_v20 = vpack.c.bf16 %v6951_v3, %v1219_v1 }
 0x2ba   : > { %v6882_v0 = vpop.f32.mrb[18].mxu0  ;;  %7998 = vmatprep.subr.bf16.mxu1 %v7997_v2 }
 0x2bb   : > { %v6954_v63 = vpop.f32.mrb[18].mxu1  ;;  %7966 = vmatprep.subr.bf16.mxu0 %v7965_v20  ;;  %v963_v62 = vpop.f32.mrb[19].mxu0  ;;  %8000 = vmatpush3.bf16.msra.mxu1 %v7999_v10 }
 0x2bc   : > { %v8001_v61 = vpack.c.bf16 %v6882_v0, %v963_v62  ;;  %v1229_v60 = vpop.f32.mrb[19].mxu1  ;;  %7968 = vmatpush3.bf16.msra.mxu0 %v7967_v11 }
 0x2bd   : > { %v7969_v59 = vpack.c.bf16 %v6954_v63, %v1229_v60  ;;  %v11190_v60 = vpack.c.bf16 %v10019_v19, %v10023_v21 }
 0x2be   : > { %v6885_v30 = vpop.f32.mrb[20].mxu0  ;;  %8002 = vmatprep.subr.bf16.mxu1 %v8001_v61 }
 0x2bf   : > { %v6957_v58 = vpop.f32.mrb[20].mxu1  ;;  %7970 = vmatprep.subr.bf16.mxu0 %v7969_v59  ;;  %v973_v29 = vpop.f32.mrb[21].mxu0  ;;  %8004 = vmatpush3.bf16.msra.mxu1 %v8003_v16  ;;  %v11192_v16 = vpack.c.bf16 %v10031_v26, %v10035_v28 }
 0x2c0   : > { %v8005_v57 = vpack.c.bf16 %v6885_v30, %v973_v29  ;;  %v1239_v24 = vpop.f32.mrb[21].mxu1  ;;  %7972 = vmatpush3.bf16.msra.mxu0 %v7971_v17  ;;  %v11193_v29 = vpack.c.bf16 %v10041_v31, %v10045_v33  ;;  %v11196_v31 = vpack.c.bf16 %v10055_v5, %v10059_v7 }
 0x2c1   : > { %v7973_v1 = vpack.c.bf16 %v6957_v58, %v1239_v24  ;;  %v11191_v58 = vpack.c.bf16 %v10029_v25, %v10033_v27  ;;  %v11194_v25 = vpack.c.bf16 %v10043_v32, %v10047_v34  ;;  %v1598_v32 = vld [vmem:[#allocation5 + $0xc0] sm:$0xff]  ;;  %v1599_v34 = vld [vmem:[#allocation5 + $0xc8] sm:$0xff] }
 0x2c2   : > { %v6888_v3 = vpop.f32.mrb[22].mxu0  ;;  %8006 = vmatprep.subr.bf16.mxu1 %v8005_v57  ;;  %v8029_v7 = vpack.c.bf16 %v1599_v34, %v1598_v32  ;;  %v1307_v32 = vld [vmem:[#allocation7 + $0x120] sm:$0xff]  ;;  %v1043_v34 = vld [vmem:[#allocation7 + $0x58] sm:$0xff] }
 0x2c3   : > { %v6960_v2 = vpop.f32.mrb[22].mxu1  ;;  %7974 = vmatprep.subr.bf16.mxu0 %v7973_v1  ;;  %v983_v18 = vpop.f32.mrb[23].mxu0  ;;  %8008 = vmatpush3.bf16.msra.mxu1 %v8007_v23  ;;  %v11195_v1 = vpack.c.bf16 %v10053_v4, %v10057_v6 }
 0x2c4   : > { %v8009_v62 = vpack.c.bf16 %v6888_v3, %v983_v18  ;;  %v1249_v0 = vpop.f32.mrb[23].mxu1  ;;  %7976 = vmatpush3.bf16.msra.mxu0 %v11190_v60  ;;  %v11197_v60 = vpack.c.bf16 %v10065_v12, %v10069_v14  ;;  %v11200_v12 = vpack.c.bf16 %v10079_v8, %v10083_v9  ;;  %v1299_v14 = vld [vmem:[#allocation7 + $0xe0] sm:$0xff]  ;;  %v1604_v8 = vld [vmem:[#allocation5 + $0xf0] sm:$0xff]  ;;  %v1605_v9 = vld [vmem:[#allocation5 + $0xf8] sm:$0xff] }
 0x2c5   : > { %v7977_v61 = vpack.c.bf16 %v6960_v2, %v1249_v0 }
 0x2c6   : > { %v6891_v59 = vpop.f32.mrb[24].mxu0  ;;  %8010 = vmatprep.subr.bf16.mxu1 %v8009_v62 }
 0x2c7   : > { %v6963_v63 = vpop.f32.mrb[24].mxu1  ;;  %7978 = vmatprep.subr.bf16.mxu0 %v7977_v61  ;;  %v993_v10 = vpop.f32.mrb[25].mxu0  ;;  %8012 = vmatpush3.bf16.msra.mxu1 %v11191_v58  ;;  %v11198_v61 = vpack.c.bf16 %v10067_v13, %v10071_v15  ;;  %v1032_v58 = vld [vmem:[#allocation7] sm:$0xff] }
 0x2c8   : > { %v8013_v57 = vpack.c.bf16 %v6891_v59, %v993_v10  ;;  %v1259_v11 = vpop.f32.mrb[25].mxu1  ;;  %7980 = vmatpush3.bf16.msra.mxu0 %v11192_v16  ;;  %v1600_v59 = vld [vmem:[#allocation5 + $0xd0] sm:$0xff]  ;;  %v11199_v10 = vpack.c.bf16 %v10077_v36, %v10081_v35  ;;  %v1602_v15 = vld [vmem:[#allocation5 + $0xe0] sm:$0xff]  ;;  %v1603_v16 = vld [vmem:[#allocation5 + $0xe8] sm:$0xff] }
 0x2c9   : > { %v7981_v17 = vpack.c.bf16 %v6963_v63, %v1259_v11  ;;  %v1601_v63 = vld [vmem:[#allocation5 + $0xd8] sm:$0xff]  ;;  %v1037_v35 = vld [vmem:[#allocation7 + $0x28] sm:$0xff] }
 0x2ca   : > { %v6894_v23 = vpop.f32.mrb[26].mxu0  ;;  %8014 = vmatprep.subr.bf16.mxu1 %v8013_v57  ;;  %v1035_v57 = vld [vmem:[#allocation7 + $0x18] sm:$0xff]  ;;  %v8033_v13 = vpack.c.bf16 %v1601_v63, %v1600_v59  ;;  %v1304_v36 = vld [vmem:[#allocation7 + $0x108] sm:$0xff] }
 0x2cb   : > { %v6966_v19 = vpop.f32.mrb[26].mxu1  ;;  %7982 = vmatprep.subr.bf16.mxu0 %v7981_v17  ;;  %v1003_v21 = vpop.f32.mrb[27].mxu0  ;;  %8016 = vmatpush3.bf16.msra.mxu1 %v11193_v29  ;;  %v1302_v11 = vld [vmem:[#allocation7 + $0xf8] sm:$0xff]  ;;  %v1034_v17 = vld [vmem:[#allocation7 + $0x10] sm:$0xff]  ;;  %v1303_v29 = vld [vmem:[#allocation7 + $0x100] sm:$0xff] }
 0x2cc   : > { %v8017_v30 = vpack.c.bf16 %v6894_v23, %v1003_v21  ;;  %v1269_v20 = vpop.f32.mrb[27].mxu1  ;;  %7984 = vmatpush3.bf16.msra.mxu0 %v11194_v25  ;;  %v1301_v23 = vld [vmem:[#allocation7 + $0xf0] sm:$0xff]  ;;  %v1036_v21 = vld [vmem:[#allocation7 + $0x20] sm:$0xff]  ;;  %v8041_v25 = vpack.c.bf16 %v1605_v9, %v1604_v8  ;;  %v1047_v59 = vld [vmem:[#allocation7 + $0x78] sm:$0xff] }
 0x2cd   : > { %v7985_v27 = vpack.c.bf16 %v6966_v19, %v1269_v20  ;;  %v8037_v19 = vpack.c.bf16 %v1603_v16, %v1602_v15  ;;  %v1306_v20 = vld [vmem:[#allocation7 + $0x118] sm:$0xff]  ;;  %v1050_v16 = vld [vmem:[#allocation7 + $0x90] sm:$0xff] }
 0x2ce   : > { %v6897_v24 = vpop.f32.mrb[28].mxu0  ;;  %8018 = vmatprep.subr.bf16.mxu1 %v8017_v30  ;;  %v1039_v30 = vld [vmem:[#allocation7 + $0x38] sm:$0xff] }
 0x2cf   : > { %v6969_v26 = vpop.f32.mrb[28].mxu1  ;;  %7986 = vmatprep.subr.bf16.mxu0 %v7985_v27  ;;  %v1013_v28 = vpop.f32.mrb[29].mxu0  ;;  %8020 = vmatpush3.bf16.msra.mxu1 %v11195_v1  ;;  %v1606_v27 = vld [vmem:[#allocation5 + $0x100] sm:$0xff]  ;;  %v1041_v1 = vld [vmem:[#allocation7 + $0x48] sm:$0xff]  ;;  %v1314_v63 = vld [vmem:[#allocation7 + $0x158] sm:$0xff] }
 0x2d0   : > { %v8021_v3 = vpack.c.bf16 %v6897_v24, %v1013_v28  ;;  %v1279_v2 = vpop.f32.mrb[29].mxu1  ;;  %7988 = vmatpush3.bf16.msra.mxu0 %v11196_v31  ;;  %v1607_v24 = vld [vmem:[#allocation5 + $0x108] sm:$0xff]  ;;  %v1305_v28 = vld [vmem:[#allocation7 + $0x110] sm:$0xff]  ;;  %v1318_v15 = vld [vmem:[#allocation7 + $0x178] sm:$0xff] }
 0x2d1   : > { %v7989_v33 = vpack.c.bf16 %v6969_v26, %v1279_v2  ;;  %v1038_v26 = vld [vmem:[#allocation7 + $0x30] sm:$0xff]  ;;  %v8045_v2 = vpack.c.bf16 %v1607_v24, %v1606_v27  ;;  %v1055_v8 = vld [vmem:[#allocation7 + $0xb8] sm:$0xff]  ;;  %v1323_v27 = vld [vmem:[#allocation7 + $0x1a0] sm:$0xff] }
 0x2d2   : > { %v6900_v18 = vpop.f32.mrb[30].mxu0  ;;  %8022 = vmatprep.subr.bf16.mxu1 %v8021_v3  ;;  %v1308_v3 = vld [vmem:[#allocation7 + $0x128] sm:$0xff]  ;;  %v1608_v31 = vld [vmem:[#allocation5 + $0x110] sm:$0xff]  ;;  %v1322_v9 = vld [vmem:[#allocation7 + $0x198] sm:$0xff] }
 0x2d3   : > { %v6972_v62 = vpop.f32.mrb[30].mxu1  ;;  %7990 = vmatprep.subr.bf16.mxu0 %v7989_v33  ;;  %v1023_v0 = vpop.f32.mrb[31].mxu0  ;;  %8024 = vmatpush3.bf16.msra.mxu1 %v11197_v60  ;;  %v1609_v33 = vld [vmem:[#allocation5 + $0x118] sm:$0xff]  ;;  %v1042_v60 = vld [vmem:[#allocation7 + $0x50] sm:$0xff] }
 0x2d4   : > { %v8025_v4 = vpack.c.bf16 %v6900_v18, %v1023_v0  ;;  %v1289_v6 = vpop.f32.mrb[31].mxu1  ;;  %7992 = vmatpush3.bf16.msra.mxu0 %v11198_v61  ;;  %v1040_v18 = vld [vmem:[#allocation7 + $0x40] sm:$0xff]  ;;  %v8049_v0 = vpack.c.bf16 %v1609_v33, %v1608_v31  ;;  %v1312_v61 = vld [vmem:[#allocation7 + $0x148] sm:$0xff]  ;;  %v1059_v24 = vld [vmem:[#allocation7 + $0xd8] sm:$0xff] }
 0x2d5   : > { %v7993_v5 = vpack.c.bf16 %v6972_v62, %v1289_v6  ;;  %v1310_v62 = vld [vmem:[#allocation7 + $0x138] sm:$0xff]  ;;  %v1045_v6 = vld [vmem:[#allocation7 + $0x68] sm:$0xff] }
 0x2d6   : > { %8026 = vmatprep.subr.bf16.mxu1 %v8025_v4  ;;  %v1309_v4 = vld [vmem:[#allocation7 + $0x130] sm:$0xff] }
 0x2d7   : > { %7994 = vmatprep.subr.bf16.mxu0 %v7993_v5  ;;  %8028 = vmatpush3.bf16.msra.mxu1 %v11199_v10  ;;  %v1044_v5 = vld [vmem:[#allocation7 + $0x60] sm:$0xff]  ;;  %v1046_v10 = vld [vmem:[#allocation7 + $0x70] sm:$0xff] }
 0x2d8   : > { %7996 = vmatpush3.bf16.msra.mxu0 %v11200_v12  ;;  %v1049_v12 = vld [vmem:[#allocation7 + $0x88] sm:$0xff] }
 0x2d9   : > { %8030 = vmatprep.subr.bf16.mxu0 %v8029_v7 }
 0x2da   : > { %1527 = vmatmul.mubr.f32.vlgmr.msra.gmra.mrb[32].mxu1 %v1032_v58  ;;  %v1313_v58 = vld [vmem:[#allocation7 + $0x150] sm:$0xff] }
 0x2db   : > { %1392 = vmatmul.mubr.f32.vlgmr.msra.gmra.mrb[32].mxu0 %v1299_v14  ;;  %1531 = vmatprep.mubr.f32.mxu1 %v1035_v57  ;;  %v1316_v14 = vld [vmem:[#allocation7 + $0x168] sm:$0xff]  ;;  %v1048_v57 = vld [vmem:[#allocation7 + $0x80] sm:$0xff] }
 0x2dc   : > { %1396 = vmatprep.mubr.f32.mxu0 %v1302_v11  ;;  %8032 = vmatpush3.bf16.msra.mxu0 %v8029_v7  ;;  %v1311_v7 = vld [vmem:[#allocation7 + $0x140] sm:$0xff] }
 0x2dd   : > { %8034 = vmatprep.subr.bf16.mxu0 %v8033_v13  ;;  %v1315_v11 = vld [vmem:[#allocation7 + $0x160] sm:$0xff] }
 0x2de   : > { %1532 = vmatmul.mubr.f32.gmra.mrb[34].mxu1 %v1034_v17  ;;  %v1317_v17 = vld [vmem:[#allocation7 + $0x170] sm:$0xff] }
 0x2df   : > { %1397 = vmatmul.mubr.f32.gmra.mrb[34].mxu0 %v1301_v23  ;;  %1536 = vmatprep.mubr.f32.mxu1 %v1037_v35  ;;  %v1053_v23 = vld [vmem:[#allocation7 + $0xa8] sm:$0xff] }
 0x2e0   : > { %1401 = vmatprep.mubr.f32.mxu0 %v1304_v36  ;;  %8036 = vmatpush3.bf16.msra.mxu0 %v8033_v13  ;;  %v1051_v13 = vld [vmem:[#allocation7 + $0x98] sm:$0xff]  ;;  %v1320_v35 = vld [vmem:[#allocation7 + $0x188] sm:$0xff]  ;;  %v1052_v36 = vld [vmem:[#allocation7 + $0xa0] sm:$0xff] }
 0x2e1   : > { %8038 = vmatprep.subr.bf16.mxu0 %v8037_v19 }
 0x2e2   : > { %1537 = vmatmul.mubr.f32.gmra.mrb[36].mxu1 %v1036_v21  ;;  %v1054_v21 = vld [vmem:[#allocation7 + $0xb0] sm:$0xff] }
 0x2e3   : > { %1402 = vmatmul.mubr.f32.gmra.mrb[36].mxu0 %v1303_v29  ;;  %1541 = vmatprep.mubr.f32.mxu1 %v1039_v30  ;;  %v1321_v29 = vld [vmem:[#allocation7 + $0x190] sm:$0xff]  ;;  %v1057_v30 = vld [vmem:[#allocation7 + $0xc8] sm:$0xff] }
 0x2e4   : > { %1406 = vmatprep.mubr.f32.mxu0 %v1306_v20  ;;  %8040 = vmatpush3.bf16.msra.mxu0 %v8037_v19  ;;  %v1319_v19 = vld [vmem:[#allocation7 + $0x180] sm:$0xff]  ;;  %v1324_v20 = vld [vmem:[#allocation7 + $0x1a8] sm:$0xff] }
 0x2e5   : > { %8042 = vmatprep.subr.bf16.mxu0 %v8041_v25 }
 0x2e6   : > { %1542 = vmatmul.mubr.f32.gmra.mrb[38].mxu1 %v1038_v26  ;;  %v1326_v26 = vld [vmem:[#allocation7 + $0x1b8] sm:$0xff] }
 0x2e7   : > { %1407 = vmatmul.mubr.f32.gmra.mrb[38].mxu0 %v1305_v28  ;;  %1546 = vmatprep.mubr.f32.mxu1 %v1041_v1  ;;  %v1058_v28 = vld [vmem:[#allocation7 + $0xd0] sm:$0xff] }
 0x2e8   : > { %1411 = vmatprep.mubr.f32.mxu0 %v1308_v3  ;;  %8044 = vmatpush3.bf16.msra.mxu0 %v8041_v25  ;;  %v1056_v25 = vld [vmem:[#allocation7 + $0xc0] sm:$0xff]  ;;  %v1325_v1 = vld [vmem:[#allocation7 + $0x1b0] sm:$0xff] }
 0x2e9   : > { %8046 = vmatprep.subr.bf16.mxu0 %v8045_v2 }
 0x2ea   : > { %1547 = vmatmul.mubr.f32.gmra.mrb[40].mxu1 %v1040_v18 }
 0x2eb   : > { %1412 = vmatmul.mubr.f32.gmra.mrb[40].mxu0 %v1307_v32  ;;  %1551 = vmatprep.mubr.f32.mxu1 %v1043_v34 }
 0x2ec   : > { %1416 = vmatprep.mubr.f32.mxu0 %v1310_v62  ;;  %8048 = vmatpush3.bf16.msra.mxu0 %v8045_v2 }
 0x2ed   : > { %8050 = vmatprep.subr.bf16.mxu0 %v8049_v0 }
 0x2ee   : > { %1552 = vmatmul.mubr.f32.gmra.mrb[42].mxu1 %v1042_v60 }
 0x2ef   : > { %1417 = vmatmul.mubr.f32.gmra.mrb[42].mxu0 %v1309_v4  ;;  %1556 = vmatprep.mubr.f32.mxu1 %v1045_v6 }
 0x2f0   : > { %1421 = vmatprep.mubr.f32.mxu0 %v1312_v61  ;;  %8052 = vmatpush3.bf16.msra.mxu0 %v8049_v0 }
 0x2f2   : > { %1557 = vmatmul.mubr.f32.gmra.mrb[44].mxu1 %v1044_v5 }
 0x2f3   : > { %1422 = vmatmul.mubr.f32.gmra.mrb[44].mxu0 %v1311_v7  ;;  %1561 = vmatprep.mubr.f32.mxu1 %v1047_v59 }
 0x2f4   : > { %1426 = vmatprep.mubr.f32.mxu0 %v1314_v63 }
 0x2f6   : > { %1562 = vmatmul.mubr.f32.gmra.mrb[46].mxu1 %v1046_v10 }
 0x2f7   : > { %1427 = vmatmul.mubr.f32.gmra.mrb[46].mxu0 %v1313_v58  ;;  %1566 = vmatprep.mubr.f32.mxu1 %v1049_v12 }
 0x2f8   : > { %1431 = vmatprep.mubr.f32.mxu0 %v1316_v14 }
 0x2fa   : > { %1567 = vmatmul.mubr.f32.gmra.mrb[48].mxu1 %v1048_v57 }
 0x2fb   : > { %1432 = vmatmul.mubr.f32.gmra.mrb[48].mxu0 %v1315_v11  ;;  %1571 = vmatprep.mubr.f32.mxu1 %v1051_v13 }
 0x2fc   : > { %1436 = vmatprep.mubr.f32.mxu0 %v1318_v15 }
 0x2fe   : > { %1572 = vmatmul.mubr.f32.gmra.mrb[50].mxu1 %v1050_v16 }
 0x2ff   : > { %1437 = vmatmul.mubr.f32.gmra.mrb[50].mxu0 %v1317_v17  ;;  %1576 = vmatprep.mubr.f32.mxu1 %v1053_v23 }
 0x300   : > { %1441 = vmatprep.mubr.f32.mxu0 %v1320_v35 }
 0x302   : > { %1577 = vmatmul.mubr.f32.gmra.mrb[52].mxu1 %v1052_v36 }
 0x303   : > { %1442 = vmatmul.mubr.f32.gmra.mrb[52].mxu0 %v1319_v19  ;;  %1581 = vmatprep.mubr.f32.mxu1 %v1055_v8 }
 0x304   : > { %1446 = vmatprep.mubr.f32.mxu0 %v1322_v9 }
 0x306   : > { %1582 = vmatmul.mubr.f32.gmra.mrb[54].mxu1 %v1054_v21 }
 0x307   : > { %1447 = vmatmul.mubr.f32.gmra.mrb[54].mxu0 %v1321_v29  ;;  %1586 = vmatprep.mubr.f32.mxu1 %v1057_v30 }
 0x308   : > { %1451 = vmatprep.mubr.f32.mxu0 %v1324_v20 }
 0x30a   : > { %1587 = vmatmul.mubr.f32.gmra.mrb[56].mxu1 %v1056_v25 }
 0x30b   : > { %1452 = vmatmul.mubr.f32.gmra.mrb[56].mxu0 %v1323_v27  ;;  %1591 = vmatprep.mubr.f32.mxu1 %v1059_v24 }
 0x30c   : > { %1456 = vmatprep.mubr.f32.mxu0 %v1326_v26 }
 0x30e   : > { %1592 = vmatmul.mubr.f32.gmra.mrb[58].mxu1 %v1058_v28 }
 0x30f   : > { %1457 = vmatmul.mubr.f32.gmra.mrb[58].mxu0 %v1325_v1 }
 0x310   : > { %6997 = vmatprep.mubr.msk.f32.mxu0 %vm710_vm0, %v9785_v22  ;;  %v11201_v22 = vld [vmem:[#allocation39_spill] sm:$0xff] }
 0x313   : > { %6998 = vmatmul.mubr.msk.f32.vlgmr.msra.gmra.mrb[60].mxu0 %vm710_vm0, %v9792_v37  ;;  %v11202_v37 = vld [vmem:[#allocation40_spill] sm:$0xff] }
 0x314   : > { %7000 = vmatprep.mubr.msk.f32.mxu0 %vm710_vm0, %v9795_v38  ;;  %v11203_v38 = vld [vmem:[#allocation41_spill] sm:$0xff] }
 0x317   : > { %7001 = vmatmul.mubr.msk.f32.gmra.mrb[62].mxu0 %vm710_vm0, %v9804_v39  ;;  %v11204_v39 = vld [vmem:[#allocation42_spill] sm:$0xff] }
 0x318   : > { %7003 = vmatprep.mubr.msk.f32.mxu0 %vm710_vm0, %v9809_v40  ;;  %v11205_v40 = vld [vmem:[#allocation43_spill] sm:$0xff] }
 0x31b   : > { %7004 = vmatmul.mubr.msk.f32.gmra.mrb[64].mxu0 %vm710_vm0, %v9818_v41  ;;  %v11206_v41 = vld [vmem:[#allocation44_spill] sm:$0xff] }
 0x31c   : > { %7006 = vmatprep.mubr.msk.f32.mxu0 %vm710_vm0, %v9823_v42  ;;  %v11207_v42 = vld [vmem:[#allocation45_spill] sm:$0xff] }
 0x31f   : > { %7007 = vmatmul.mubr.msk.f32.gmra.mrb[66].mxu0 %vm710_vm0, %v9832_v43  ;;  %v11208_v43 = vld [vmem:[#allocation46_spill] sm:$0xff] }
 0x320   : > { %7009 = vmatprep.mubr.msk.f32.mxu0 %vm710_vm0, %v9837_v44  ;;  %v11209_v44 = vld [vmem:[#allocation47_spill] sm:$0xff] }
 0x323   : > { %7010 = vmatmul.mubr.msk.f32.gmra.mrb[68].mxu0 %vm710_vm0, %v9846_v45  ;;  %v11210_v45 = vld [vmem:[#allocation48_spill] sm:$0xff] }
 0x324   : > { %7012 = vmatprep.mubr.msk.f32.mxu0 %vm710_vm0, %v9851_v46  ;;  %v11211_v46 = vld [vmem:[#allocation49_spill] sm:$0xff] }
 0x327   : > { %7013 = vmatmul.mubr.msk.f32.gmra.mrb[70].mxu0 %vm710_vm0, %v9860_v47  ;;  %v1837_v47 = vld [vmem:[#allocation7 + $0x1c8] sm:$0xff] }
 0x328   : > { %7015 = vmatprep.mubr.msk.f32.mxu0 %vm710_vm0, %v9865_v48  ;;  %1928 = vmatprep.mubr.f32.mxu1 %v1837_v47 }
 0x32b   : > { %7016 = vmatmul.mubr.msk.f32.gmra.mrb[72].mxu0 %vm710_vm0, %v9874_v49 }
 0x32c   : > { %7018 = vmatprep.mubr.msk.f32.mxu0 %vm710_vm0, %v9879_v50 }
 0x32f   : > { %7019 = vmatmul.mubr.msk.f32.gmra.mrb[74].mxu0 %vm710_vm0, %v9888_v51 }
 0x330   : > { %7021 = vmatprep.mubr.msk.f32.mxu0 %vm710_vm0, %v9893_v52 }
 0x333   : > { %7022 = vmatmul.mubr.msk.f32.gmra.mrb[76].mxu0 %vm710_vm0, %v9902_v53 }
 0x334   : > { %7024 = vmatprep.mubr.msk.f32.mxu0 %vm710_vm0, %v9907_v54 }
 0x337   : > { %7025 = vmatmul.mubr.msk.f32.gmra.mrb[78].mxu0 %vm710_vm0, %v9916_v55 }
 0x338   : > { %7027 = vmatprep.mubr.msk.f32.mxu0 %vm710_vm0, %v9921_v56 }
 0x33b   : > { %7028 = vmatmul.mubr.msk.f32.gmra.mrb[80].mxu0 %vm710_vm0, %v11201_v22 }
 0x33c   : > { %7030 = vmatprep.mubr.msk.f32.mxu0 %vm710_vm0, %v11202_v37 }
 0x33f   : > { %7031 = vmatmul.mubr.msk.f32.gmra.mrb[82].mxu0 %vm710_vm0, %v11203_v38 }
 0x340   : > { %7033 = vmatprep.mubr.msk.f32.mxu0 %vm710_vm0, %v11204_v39 }
 0x343   : > { %7034 = vmatmul.mubr.msk.f32.gmra.mrb[84].mxu0 %vm710_vm0, %v11205_v40 }
 0x344   : > { %7036 = vmatprep.mubr.msk.f32.mxu0 %vm710_vm0, %v11206_v41 }
 0x347   : > { %7037 = vmatmul.mubr.msk.f32.gmra.mrb[86].mxu0 %vm710_vm0, %v11207_v42 }
 0x348   : > { %7039 = vmatprep.mubr.msk.f32.mxu0 %vm710_vm0, %v11208_v43 }
 0x34b   : > { %7040 = vmatmul.mubr.msk.f32.gmra.mrb[88].mxu0 %vm710_vm0, %v11209_v44 }
 0x34c   : > { %7042 = vmatprep.mubr.msk.f32.mxu0 %vm710_vm0, %v11210_v45 }
 0x34f   : > { %7043 = vmatmul.mubr.msk.f32.gmra.mrb[90].mxu0 %vm710_vm0, %v11211_v46 }
 0x3ad   : > { %v6080_v48 = vpop.f32.mrb[32].mxu1 }
 0x3ae   : > { %v6006_v49 = vpop.f32.mrb[32].mxu0  ;;  %v6081_v50 = vpop.f32.mrb[33].mxu1 }
 0x3af   : > { %v6007_v51 = vpop.f32.mrb[33].mxu0  ;;  %v6082_v52 = vadd.f32 %v6081_v50, %v6080_v48 }
 0x3b0   : > { %v6008_v53 = vadd.f32 %v6007_v51, %v6006_v49 }
 0x3b1   : > { %v6083_v54 = vpop.f32.mrb[34].mxu1 }
 0x3b2   : > { %v10186_v55 = vadd.f32 %v6082_v52, %v6008_v53  ;;  %v6009_v56 = vpop.f32.mrb[34].mxu0  ;;  %v6084_v3 = vpop.f32.mrb[35].mxu1 }
 0x3b3   : > { %v6010_v2 = vpop.f32.mrb[35].mxu0  ;;  %v6085_v31 = vadd.f32 %v6084_v3, %v6083_v54 }
 0x3b4   : > { %v6011_v33 = vadd.f32 %v6010_v2, %v6009_v56 }
 0x3b5   : > { %v6086_v18 = vpop.f32.mrb[36].mxu1 }
 0x3b6   : > { %v10188_v32 = vadd.f32 %v6085_v31, %v6011_v33  ;;  %v6012_v34 = vpop.f32.mrb[36].mxu0  ;;  %v6087_v62 = vpop.f32.mrb[37].mxu1 }
 0x3b7   : > { %v6013_v0 = vpop.f32.mrb[37].mxu0  ;;  %v6088_v60 = vadd.f32 %v6087_v62, %v6086_v18 }
 0x3b8   : > { %v6014_v4 = vadd.f32 %v6013_v0, %v6012_v34 }
 0x3b9   : > { %v6089_v6 = vpop.f32.mrb[38].mxu1 }
 0x3ba   : > { %v10190_v61 = vadd.f32 %v6088_v60, %v6014_v4  ;;  %v6015_v5 = vpop.f32.mrb[38].mxu0  ;;  %v6090_v7 = vpop.f32.mrb[39].mxu1 }
 0x3bb   : > { %v6016_v59 = vpop.f32.mrb[39].mxu0  ;;  %v6091_v63 = vadd.f32 %v6090_v7, %v6089_v6 }
 0x3bc   : > { %v6017_v10 = vadd.f32 %v6016_v59, %v6015_v5 }
 0x3bd   : > { %v6092_v58 = vpop.f32.mrb[40].mxu1 }
 0x3be   : > { %v10192_v12 = vadd.f32 %v6091_v63, %v6017_v10  ;;  %v6018_v14 = vpop.f32.mrb[40].mxu0  ;;  %v6093_v57 = vpop.f32.mrb[41].mxu1 }
 0x3bf   : > { %v6019_v11 = vpop.f32.mrb[41].mxu0  ;;  %v6094_v13 = vadd.f32 %v6093_v57, %v6092_v58 }
 0x3c0   : > { %v6020_v15 = vadd.f32 %v6019_v11, %v6018_v14 }
 0x3c1   : > { %v6095_v16 = vpop.f32.mrb[42].mxu1 }
 0x3c2   : > { %v10194_v17 = vadd.f32 %v6094_v13, %v6020_v15  ;;  %v6021_v23 = vpop.f32.mrb[42].mxu0  ;;  %v6096_v35 = vpop.f32.mrb[43].mxu1 }
 0x3c3   : > { %v6022_v36 = vpop.f32.mrb[43].mxu0  ;;  %v6097_v19 = vadd.f32 %v6096_v35, %v6095_v16 }
 0x3c4   : > { %v6023_v8 = vadd.f32 %v6022_v36, %v6021_v23 }
 0x3c5   : > { %v6098_v9 = vpop.f32.mrb[44].mxu1 }
 0x3c6   : > { %v10196_v21 = vadd.f32 %v6097_v19, %v6023_v8  ;;  %v6024_v29 = vpop.f32.mrb[44].mxu0  ;;  %v6099_v30 = vpop.f32.mrb[45].mxu1 }
 0x3c7   : > { %v6025_v20 = vpop.f32.mrb[45].mxu0  ;;  %v6100_v25 = vadd.f32 %v6099_v30, %v6098_v9 }
 0x3c8   : > { %v6026_v27 = vadd.f32 %v6025_v20, %v6024_v29 }
 0x3c9   : > { %v6101_v24 = vpop.f32.mrb[46].mxu1 }
 0x3ca   : > { %v10198_v26 = vadd.f32 %v6100_v25, %v6026_v27  ;;  %v6027_v28 = vpop.f32.mrb[46].mxu0  ;;  %v6102_v1 = vpop.f32.mrb[47].mxu1 }
 0x3cb   : > { %v6028_v22 = vpop.f32.mrb[47].mxu0  ;;  %v6103_v37 = vadd.f32 %v6102_v1, %v6101_v24 }
 0x3cc   : > { %v6029_v38 = vadd.f32 %v6028_v22, %v6027_v28 }
 0x3cd   : > { %v6104_v39 = vpop.f32.mrb[48].mxu1 }
 0x3ce   : > { %v10200_v40 = vadd.f32 %v6103_v37, %v6029_v38  ;;  %v6030_v41 = vpop.f32.mrb[48].mxu0  ;;  %v6105_v42 = vpop.f32.mrb[49].mxu1 }
 0x3cf   : > { %v6031_v43 = vpop.f32.mrb[49].mxu0  ;;  %v6106_v44 = vadd.f32 %v6105_v42, %v6104_v39 }
 0x3d0   : > { %v6032_v45 = vadd.f32 %v6031_v43, %v6030_v41 }
 0x3d1   : > { %v6107_v46 = vpop.f32.mrb[50].mxu1 }
 0x3d2   : > { %v10202_v47 = vadd.f32 %v6106_v44, %v6032_v45  ;;  %v6033_v48 = vpop.f32.mrb[50].mxu0  ;;  %v6108_v49 = vpop.f32.mrb[51].mxu1 }
 0x3d3   : > { %v6034_v50 = vpop.f32.mrb[51].mxu0  ;;  %v6109_v51 = vadd.f32 %v6108_v49, %v6107_v46 }
 0x3d4   : > { %v6035_v52 = vadd.f32 %v6034_v50, %v6033_v48 }
 0x3d5   : > { %v6110_v53 = vpop.f32.mrb[52].mxu1 }
 0x3d6   : > { %v10204_v54 = vadd.f32 %v6109_v51, %v6035_v52  ;;  %v6036_v56 = vpop.f32.mrb[52].mxu0  ;;  %v6111_v3 = vpop.f32.mrb[53].mxu1 }
 0x3d7   : > { %v6037_v2 = vpop.f32.mrb[53].mxu0  ;;  %v6112_v31 = vadd.f32 %v6111_v3, %v6110_v53 }
 0x3d8   : > { %v6038_v33 = vadd.f32 %v6037_v2, %v6036_v56 }
 0x3d9   : > { %v6113_v18 = vpop.f32.mrb[54].mxu1 }
 0x3da   : > { %v10206_v34 = vadd.f32 %v6112_v31, %v6038_v33  ;;  %v6039_v62 = vpop.f32.mrb[54].mxu0  ;;  %v6114_v0 = vpop.f32.mrb[55].mxu1 }
 0x3db   : > { %v6040_v60 = vpop.f32.mrb[55].mxu0  ;;  %v6115_v4 = vadd.f32 %v6114_v0, %v6113_v18 }
 0x3dc   : > { %v6041_v6 = vadd.f32 %v6040_v60, %v6039_v62 }
 0x3dd   : > { %v6116_v5 = vpop.f32.mrb[56].mxu1 }
 0x3de   : > { %v10208_v7 = vadd.f32 %v6115_v4, %v6041_v6  ;;  %v6042_v59 = vpop.f32.mrb[56].mxu0  ;;  %v6117_v63 = vpop.f32.mrb[57].mxu1 }
 0x3df   : > { %v6043_v10 = vpop.f32.mrb[57].mxu0  ;;  %v6118_v58 = vadd.f32 %v6117_v63, %v6116_v5 }
 0x3e0   : > { %v6044_v14 = vadd.f32 %v6043_v10, %v6042_v59 }
 0x3e1   : > { %v6119_v57 = vpop.f32.mrb[58].mxu1 }
 0x3e2   : > { %v10210_v11 = vadd.f32 %v6118_v58, %v6044_v14  ;;  %v6045_v13 = vpop.f32.mrb[58].mxu0  ;;  %v6120_v15 = vpop.f32.mrb[59].mxu1 }
 0x3e3   : > { %v6046_v16 = vpop.f32.mrb[59].mxu0  ;;  %v6121_v23 = vadd.f32 %v6120_v15, %v6119_v57  ;;  %v2015_v15 = vld [vmem:[#allocation5 + $0x128] sm:$0xff] }
 0x3e4   : > { %v6047_v35 = vadd.f32 %v6046_v16, %v6045_v13  ;;  %v2014_v13 = vld [vmem:[#allocation5 + $0x120] sm:$0xff] }
 0x3e6   : > { %v10212_v36 = vadd.f32 %v6121_v23, %v6047_v35  ;;  %v6999_v19 = vpop.f32.mrb[60].mxu0 }
 0x3e7   : > { %v1676_v8 = vpop.f32.mrb[61].mxu0 }
 0x3e8   : > { %v8055_v9 = vpack.c.bf16 %v6999_v19, %v1676_v8  ;;  %v8085_v19 = vpack.c.bf16 %v2015_v15, %v2014_v13  ;;  %v2016_v8 = vld [vmem:[#allocation5 + $0x130] sm:$0xff]  ;;  %v10230_v15 = vld [vmem:[%s9750_s28 + $0x18] sm:$0xff] }
 0x3e9   : > { %v10225_v13 = vld [vmem:[%s9750_s28 + $0x10] sm:$0xff] }
 0x3ea   : > { %v7002_v29 = vpop.f32.mrb[62].mxu0 }
 0x3eb   : > { %v1686_v30 = vpop.f32.mrb[63].mxu0 }
 0x3ec   : > { %v8059_v20 = vpack.c.bf16 %v7002_v29, %v1686_v30  ;;  %v1836_v29 = vld [vmem:[#allocation7 + $0x1c0] sm:$0xff]  ;;  %v1839_v30 = vld [vmem:[#allocation7 + $0x1d8] sm:$0xff] }
 0x3ee   : > { %v7005_v25 = vpop.f32.mrb[64].mxu0 }
 0x3ef   : > { %v1696_v27 = vpop.f32.mrb[65].mxu0 }
 0x3f0   : > { %v8063_v24 = vpack.c.bf16 %v7005_v25, %v1696_v27  ;;  %v2018_v25 = vld [vmem:[#allocation5 + $0x140] sm:$0xff]  ;;  %v2019_v27 = vld [vmem:[#allocation5 + $0x148] sm:$0xff] }
 0x3f2   : > { %v7008_v28 = vpop.f32.mrb[66].mxu0 }
 0x3f3   : > { %v1706_v1 = vpop.f32.mrb[67].mxu0 }
 0x3f4   : > { %v8067_v22 = vpack.c.bf16 %v7008_v28, %v1706_v1  ;;  %v1841_v28 = vld [vmem:[#allocation7 + $0x1e8] sm:$0xff]  ;;  %v8093_v1 = vpack.c.bf16 %v2019_v27, %v2018_v25  ;;  %v10285_v27 = vld [vmem:[%s9750_s28 + $0x70] sm:$0xff] }
 0x3f5   : > { %v10280_v25 = vld [vmem:[%s9750_s28 + $0x68] sm:$0xff] }
 0x3f6   : > { %v7011_v37 = vpop.f32.mrb[68].mxu0 }
 0x3f7   : > { %v1716_v38 = vpop.f32.mrb[69].mxu0 }
 0x3f8   : > { %v8071_v39 = vpack.c.bf16 %v7011_v37, %v1716_v38  ;;  %v2021_v37 = vld [vmem:[#allocation5 + $0x158] sm:$0xff]  ;;  %v1840_v38 = vld [vmem:[#allocation7 + $0x1e0] sm:$0xff] }
 0x3fa   : > { %v7014_v41 = vpop.f32.mrb[70].mxu0 }
 0x3fb   : > { %v1726_v42 = vpop.f32.mrb[71].mxu0 }
 0x3fc   : > { %v8075_v43 = vpack.c.bf16 %v7014_v41, %v1726_v42  ;;  %v2022_v42 = vld [vmem:[#allocation5 + $0x160] sm:$0xff] }
 0x3fe   : > { %v7017_v44 = vpop.f32.mrb[72].mxu0 }
 0x3ff   : > { %v1736_v45 = vpop.f32.mrb[73].mxu0 }
 0x400   : > { %v8079_v46 = vpack.c.bf16 %v7017_v44, %v1736_v45  ;;  %v1842_v44 = vld [vmem:[#allocation7 + $0x1f0] sm:$0xff]  ;;  %v1845_v45 = vld [vmem:[#allocation7 + $0x208] sm:$0xff] }
 0x402   : > { %v7020_v48 = vpop.f32.mrb[74].mxu0 }
 0x403   : > { %v1746_v49 = vpop.f32.mrb[75].mxu0 }
 0x404   : > { %v8083_v50 = vpack.c.bf16 %v7020_v48, %v1746_v49  ;;  %v2024_v48 = vld [vmem:[#allocation5 + $0x170] sm:$0xff]  ;;  %v2025_v49 = vld [vmem:[#allocation5 + $0x178] sm:$0xff] }
 0x406   : > { %v7023_v51 = vpop.f32.mrb[76].mxu0 }
 0x407   : > { %v1756_v52 = vpop.f32.mrb[77].mxu0 }
 0x408   : > { %v8053_v53 = vpack.c.bf16 %v7023_v51, %v1756_v52  ;;  %v1847_v51 = vld [vmem:[#allocation7 + $0x218] sm:$0xff]  ;;  %v8105_v52 = vpack.c.bf16 %v2025_v49, %v2024_v48  ;;  %v10355_v48 = vld [vmem:[%s9750_s28 + $0xe0] sm:$0xff]  ;;  %v10360_v49 = vld [vmem:[%s9750_s28 + $0xe8] sm:$0xff] }
 0x40a   : > { %v7026_v56 = vpop.f32.mrb[78].mxu0  ;;  %8054 = vmatprep.subr.bf16.mxu1 %v8053_v53  ;;  %v1846_v53 = vld [vmem:[#allocation7 + $0x210] sm:$0xff] }
 0x40b   : > { %v1766_v3 = vpop.f32.mrb[79].mxu0  ;;  %8056 = vmatpush3.bf16.msra.mxu1 %v8055_v9  ;;  %v2017_v9 = vld [vmem:[#allocation5 + $0x138] sm:$0xff] }
 0x40c   : > { %v8057_v2 = vpack.c.bf16 %v7026_v56, %v1766_v3  ;;  %v1849_v56 = vld [vmem:[#allocation7 + $0x228] sm:$0xff]  ;;  %v1848_v3 = vld [vmem:[#allocation7 + $0x220] sm:$0xff] }
 0x40e   : > { %v7029_v31 = vpop.f32.mrb[80].mxu0  ;;  %8058 = vmatprep.subr.bf16.mxu1 %v8057_v2  ;;  %v1851_v2 = vld [vmem:[#allocation7 + $0x238] sm:$0xff] }
 0x40f   : > { %v1776_v33 = vpop.f32.mrb[81].mxu0  ;;  %8060 = vmatpush3.bf16.msra.mxu1 %v8059_v20  ;;  %v8089_v20 = vpack.c.bf16 %v2017_v9, %v2016_v8  ;;  %v10255_v8 = vld [vmem:[%s9750_s28 + $0x40] sm:$0xff]  ;;  %v10260_v9 = vld [vmem:[%s9750_s28 + $0x48] sm:$0xff] }
 0x410   : > { %v8061_v18 = vpack.c.bf16 %v7029_v31, %v1776_v33  ;;  %v1850_v31 = vld [vmem:[#allocation7 + $0x230] sm:$0xff]  ;;  %v1853_v33 = vld [vmem:[#allocation7 + $0x248] sm:$0xff] }
 0x412   : > { %v7032_v62 = vpop.f32.mrb[82].mxu0  ;;  %8062 = vmatprep.subr.bf16.mxu1 %v8061_v18  ;;  %v1852_v18 = vld [vmem:[#allocation7 + $0x240] sm:$0xff] }
 0x413   : > { %v1786_v0 = vpop.f32.mrb[83].mxu0  ;;  %8064 = vmatpush3.bf16.msra.mxu1 %v8063_v24  ;;  %v1838_v24 = vld [vmem:[#allocation7 + $0x1d0] sm:$0xff] }
 0x414   : > { %v8065_v60 = vpack.c.bf16 %v7032_v62, %v1786_v0  ;;  %v1855_v62 = vld [vmem:[#allocation7 + $0x258] sm:$0xff]  ;;  %v1854_v0 = vld [vmem:[#allocation7 + $0x250] sm:$0xff] }
 0x416   : > { %v7035_v4 = vpop.f32.mrb[84].mxu0  ;;  %8066 = vmatprep.subr.bf16.mxu1 %v8065_v60  ;;  %v1857_v60 = vld [vmem:[#allocation7 + $0x268] sm:$0xff] }
 0x417   : > { %v1796_v6 = vpop.f32.mrb[85].mxu0  ;;  %8068 = vmatpush3.bf16.msra.mxu1 %v8067_v22  ;;  %v2020_v22 = vld [vmem:[#allocation5 + $0x150] sm:$0xff] }
 0x418   : > { %v8069_v5 = vpack.c.bf16 %v7035_v4, %v1796_v6  ;;  %v8097_v41 = vpack.c.bf16 %v2021_v37, %v2020_v22  ;;  %v1856_v4 = vld [vmem:[#allocation7 + $0x260] sm:$0xff]  ;;  %v1859_v6 = vld [vmem:[#allocation7 + $0x278] sm:$0xff]  ;;  %v10305_v22 = vld [vmem:[%s9750_s28 + $0x90] sm:$0xff] }
 0x419   : > { %v10310_v37 = vld [vmem:[%s9750_s28 + $0x98] sm:$0xff] }
 0x41a   : > { %v7038_v59 = vpop.f32.mrb[86].mxu0  ;;  %8070 = vmatprep.subr.bf16.mxu1 %v8069_v5  ;;  %v1858_v5 = vld [vmem:[#allocation7 + $0x270] sm:$0xff] }
 0x41b   : > { %v1806_v63 = vpop.f32.mrb[87].mxu0  ;;  %8072 = vmatpush3.bf16.msra.mxu1 %v8071_v39  ;;  %v1843_v39 = vld [vmem:[#allocation7 + $0x1f8] sm:$0xff] }
 0x41c   : > { %v8073_v10 = vpack.c.bf16 %v7038_v59, %v1806_v63  ;;  %v1861_v59 = vld [vmem:[#allocation7 + $0x288] sm:$0xff]  ;;  %v1860_v63 = vld [vmem:[#allocation7 + $0x280] sm:$0xff] }
 0x41e   : > { %v7041_v58 = vpop.f32.mrb[88].mxu0  ;;  %8074 = vmatprep.subr.bf16.mxu1 %v8073_v10  ;;  %v1863_v10 = vld [vmem:[#allocation7 + $0x298] sm:$0xff] }
 0x41f   : > { %v1816_v14 = vpop.f32.mrb[89].mxu0  ;;  %8076 = vmatpush3.bf16.msra.mxu1 %v8075_v43  ;;  %v2023_v43 = vld [vmem:[#allocation5 + $0x168] sm:$0xff] }
 0x420   : > { %v8077_v57 = vpack.c.bf16 %v7041_v58, %v1816_v14  ;;  %v1862_v58 = vld [vmem:[#allocation7 + $0x290] sm:$0xff]  ;;  %v10215_v14 = vld [vmem:[%s9750_s28] sm:$0xff] }
 0x422   : > { %v7044_v16 = vpop.f32.mrb[90].mxu0  ;;  %8078 = vmatprep.subr.bf16.mxu1 %v8077_v57  ;;  %v10220_v57 = vld [vmem:[%s9750_s28 + $0x8] sm:$0xff] }
 0x423   : > { %v1826_v23 = vpop.f32.mrb[91].mxu0  ;;  %8080 = vmatpush3.bf16.msra.mxu1 %v8079_v46  ;;  %v8101_v46 = vpack.c.bf16 %v2023_v43, %v2022_v42  ;;  %v10330_v42 = vld [vmem:[%s9750_s28 + $0xb8] sm:$0xff]  ;;  %v10335_v43 = vld [vmem:[%s9750_s28 + $0xc0] sm:$0xff] }
 0x424   : > { %v8081_v35 = vpack.c.bf16 %v7044_v16, %v1826_v23  ;;  %v10235_v16 = vld [vmem:[%s9750_s28 + $0x20] sm:$0xff]  ;;  %v10240_v23 = vld [vmem:[%s9750_s28 + $0x28] sm:$0xff] }
 0x426   : > { %8082 = vmatprep.subr.bf16.mxu1 %v8081_v35  ;;  %v10245_v35 = vld [vmem:[%s9750_s28 + $0x30] sm:$0xff] }
 0x427   : > { %8084 = vmatpush3.bf16.msra.mxu1 %v8083_v50  ;;  %v1844_v50 = vld [vmem:[#allocation7 + $0x200] sm:$0xff] }
 0x428   : > { %8086 = vmatprep.subr.bf16.mxu1 %v8085_v19 }
 0x42a   : > { %1929 = vmatmul.mubr.f32.vlgmr.msra.gmra.mrb[60].mxu1 %v1836_v29  ;;  %v10265_v29 = vld [vmem:[%s9750_s28 + $0x50] sm:$0xff] }
 0x42b   : > { %1933 = vmatprep.mubr.f32.mxu1 %v1839_v30  ;;  %8088 = vmatpush3.bf16.msra.mxu1 %v8085_v19  ;;  %v10250_v19 = vld [vmem:[%s9750_s28 + $0x38] sm:$0xff] }
 0x42c   : > { %8090 = vmatprep.subr.bf16.mxu1 %v8089_v20  ;;  %v10270_v30 = vld [vmem:[%s9750_s28 + $0x58] sm:$0xff] }
 0x42e   : > { %1934 = vmatmul.mubr.f32.gmra.mrb[62].mxu1 %v1838_v24  ;;  %v10290_v24 = vld [vmem:[%s9750_s28 + $0x78] sm:$0xff] }
 0x42f   : > { %1938 = vmatprep.mubr.f32.mxu1 %v1841_v28  ;;  %8092 = vmatpush3.bf16.msra.mxu1 %v8089_v20  ;;  %v10275_v20 = vld [vmem:[%s9750_s28 + $0x60] sm:$0xff] }
 0x430   : > { %8094 = vmatprep.subr.bf16.mxu1 %v8093_v1  ;;  %v10295_v28 = vld [vmem:[%s9750_s28 + $0x80] sm:$0xff] }
 0x432   : > { %1939 = vmatmul.mubr.f32.gmra.mrb[64].mxu1 %v1840_v38  ;;  %v10315_v38 = vld [vmem:[%s9750_s28 + $0xa0] sm:$0xff] }
 0x433   : > { %1943 = vmatprep.mubr.f32.mxu1 %v1843_v39  ;;  %8096 = vmatpush3.bf16.msra.mxu1 %v8093_v1  ;;  %v10300_v1 = vld [vmem:[%s9750_s28 + $0x88] sm:$0xff] }
 0x434   : > { %8098 = vmatprep.subr.bf16.mxu1 %v8097_v41  ;;  %v10320_v39 = vld [vmem:[%s9750_s28 + $0xa8] sm:$0xff] }
 0x436   : > { %1944 = vmatmul.mubr.f32.gmra.mrb[66].mxu1 %v1842_v44  ;;  %v10340_v44 = vld [vmem:[%s9750_s28 + $0xc8] sm:$0xff] }
 0x437   : > { %1948 = vmatprep.mubr.f32.mxu1 %v1845_v45  ;;  %8100 = vmatpush3.bf16.msra.mxu1 %v8097_v41  ;;  %v10325_v41 = vld [vmem:[%s9750_s28 + $0xb0] sm:$0xff] }
 0x438   : > { %8102 = vmatprep.subr.bf16.mxu1 %v8101_v46  ;;  %v10345_v45 = vld [vmem:[%s9750_s28 + $0xd0] sm:$0xff] }
 0x43a   : > { %1949 = vmatmul.mubr.f32.gmra.mrb[68].mxu1 %v1844_v50  ;;  %v10365_v50 = vld [vmem:[%s9750_s28 + $0xf0] sm:$0xff] }
 0x43b   : > { %1953 = vmatprep.mubr.f32.mxu1 %v1847_v51  ;;  %8104 = vmatpush3.bf16.msra.mxu1 %v8101_v46  ;;  %v10350_v46 = vld [vmem:[%s9750_s28 + $0xd8] sm:$0xff] }
 0x43c   : > { %8106 = vmatprep.subr.bf16.mxu1 %v8105_v52  ;;  %v10370_v51 = vld [vmem:[%s9750_s28 + $0xf8] sm:$0xff]  ;;  %s9270_s28 = smov [#allocation25]  }
 0x43d   : > { %s9157_s22 = sshll.u32 %s9270_s28, 4  ;;  %s9158_s22 = int_to_ptr.vmem [resolvable:$false] %s9157_s22 }
 0x43e   : > { %1954 = vmatmul.mubr.f32.gmra.mrb[70].mxu1 %v1846_v53  ;;  %s9159_s26 = scalar_lea.vmem %s9158_s22, 256  ;;  %p9160_p5 = scmp.lt.s32.totalorder %s11053_s21, %s9158_s22 }
 0x43f   : > { %1958 = vmatprep.mubr.f32.mxu1 %v1849_v56  ;;  %8108 = vmatpush3.bf16.msra.mxu1 %v8105_v52  ;;  %v2253_v52 = vld [vmem:[#allocation7 + $0x2a8] sm:$0xff]  ;;  %p9161_p9 = scmp.lt.s32.totalorder %s9159_s26, %s9153_s19 }
 0x440   : > { %2344 = vmatprep.mubr.f32.mxu0 %v2253_v52 }
 0x441   : > { %p9162_p7 = por %p9161_p9, %p9160_p5 }
 0x442   : > { %1959 = vmatmul.mubr.f32.gmra.mrb[72].mxu1 %v1848_v3 }
 0x443   : > { %1963 = vmatprep.mubr.f32.mxu1 %v1851_v2  ;;  %p9163_p4 = pnand %p9162_p7, %p9156_p3 }
 0x446   : > { %1964 = vmatmul.mubr.f32.gmra.mrb[74].mxu1 %v1850_v31 }
 0x447   : > { %1968 = vmatprep.mubr.f32.mxu1 %v1853_v33 }
 0x44a   : > { %1969 = vmatmul.mubr.f32.gmra.mrb[76].mxu1 %v1852_v18 }
 0x44b   : > { %1973 = vmatprep.mubr.f32.mxu1 %v1855_v62 }
 0x44e   : > { %1974 = vmatmul.mubr.f32.gmra.mrb[78].mxu1 %v1854_v0 }
 0x44f   : > { %1978 = vmatprep.mubr.f32.mxu1 %v1857_v60 }
 0x452   : > { %1979 = vmatmul.mubr.f32.gmra.mrb[80].mxu1 %v1856_v4 }
 0x453   : > { %1983 = vmatprep.mubr.f32.mxu1 %v1859_v6 }
 0x456   : > { %1984 = vmatmul.mubr.f32.gmra.mrb[82].mxu1 %v1858_v5 }
 0x457   : > { %1988 = vmatprep.mubr.f32.mxu1 %v1861_v59 }
 0x45a   : > { %1989 = vmatmul.mubr.f32.gmra.mrb[84].mxu1 %v1860_v63 }
 0x45b   : > { %1993 = vmatprep.mubr.f32.mxu1 %v1863_v10 }
 0x45e   : > { %1994 = vmatmul.mubr.f32.gmra.mrb[86].mxu1 %v1862_v58 }
 0x45f   : > { %7069 = vmatprep.mubr.msk.f32.mxu1 %vm710_vm0, %v10215_v14 }
 0x462   : > { %7070 = vmatmul.mubr.msk.f32.vlgmr.msra.gmra.mrb[88].mxu1 %vm710_vm0, %v10220_v57 }
 0x463   : > { %7072 = vmatprep.mubr.msk.f32.mxu1 %vm710_vm0, %v10225_v13 }
 0x466   : > { %7073 = vmatmul.mubr.msk.f32.gmra.mrb[90].mxu1 %vm710_vm0, %v10230_v15 }
 0x467   : > { %7075 = vmatprep.mubr.msk.f32.mxu1 %vm710_vm0, %v10235_v16 }
 0x46a   : > { %7076 = vmatmul.mubr.msk.f32.gmra.mrb[92].mxu1 %vm710_vm0, %v10240_v23 }
 0x46b   : > { %7078 = vmatprep.mubr.msk.f32.mxu1 %vm710_vm0, %v10245_v35 }
 0x46e   : > { %7079 = vmatmul.mubr.msk.f32.gmra.mrb[94].mxu1 %vm710_vm0, %v10250_v19 }
 0x46f   : > { %7081 = vmatprep.mubr.msk.f32.mxu1 %vm710_vm0, %v10255_v8 }
 0x472   : > { %7082 = vmatmul.mubr.msk.f32.gmra.mrb[96].mxu1 %vm710_vm0, %v10260_v9 }
 0x473   : > { %7084 = vmatprep.mubr.msk.f32.mxu1 %vm710_vm0, %v10265_v29 }
 0x476   : > { %7085 = vmatmul.mubr.msk.f32.gmra.mrb[98].mxu1 %vm710_vm0, %v10270_v30 }
 0x477   : > { %7087 = vmatprep.mubr.msk.f32.mxu1 %vm710_vm0, %v10275_v20 }
 0x47a   : > { %7088 = vmatmul.mubr.msk.f32.gmra.mrb[100].mxu1 %vm710_vm0, %v10280_v25 }
 0x47b   : > { %7090 = vmatprep.mubr.msk.f32.mxu1 %vm710_vm0, %v10285_v27 }
 0x47e   : > { %7091 = vmatmul.mubr.msk.f32.gmra.mrb[102].mxu1 %vm710_vm0, %v10290_v24 }
 0x47f   : > { %7093 = vmatprep.mubr.msk.f32.mxu1 %vm710_vm0, %v10295_v28 }
 0x482   : > { %7094 = vmatmul.mubr.msk.f32.gmra.mrb[104].mxu1 %vm710_vm0, %v10300_v1 }
 0x483   : > { %7096 = vmatprep.mubr.msk.f32.mxu1 %vm710_vm0, %v10305_v22 }
 0x486   : > { %7097 = vmatmul.mubr.msk.f32.gmra.mrb[106].mxu1 %vm710_vm0, %v10310_v37 }
 0x487   : > { %7099 = vmatprep.mubr.msk.f32.mxu1 %vm710_vm0, %v10315_v38 }
 0x48a   : > { %7100 = vmatmul.mubr.msk.f32.gmra.mrb[108].mxu1 %vm710_vm0, %v10320_v39 }
 0x48b   : > { %7102 = vmatprep.mubr.msk.f32.mxu1 %vm710_vm0, %v10325_v41 }
 0x48e   : > { %7103 = vmatmul.mubr.msk.f32.gmra.mrb[110].mxu1 %vm710_vm0, %v10330_v42 }
 0x48f   : > { %7105 = vmatprep.mubr.msk.f32.mxu1 %vm710_vm0, %v10335_v43 }
 0x492   : > { %7106 = vmatmul.mubr.msk.f32.gmra.mrb[112].mxu1 %vm710_vm0, %v10340_v44 }
 0x493   : > { %7108 = vmatprep.mubr.msk.f32.mxu1 %vm710_vm0, %v10345_v45 }
 0x496   : > { %7109 = vmatmul.mubr.msk.f32.gmra.mrb[114].mxu1 %vm710_vm0, %v10350_v46 }
 0x497   : > { %7111 = vmatprep.mubr.msk.f32.mxu1 %vm710_vm0, %v10355_v48 }
 0x49a   : > { %7112 = vmatmul.mubr.msk.f32.gmra.mrb[116].mxu1 %vm710_vm0, %v10360_v49 }
 0x49b   : > { %7114 = vmatprep.mubr.msk.f32.mxu1 %vm710_vm0, %v10365_v50 }
 0x49e   : > { %7115 = vmatmul.mubr.msk.f32.gmra.mrb[118].mxu1 %vm710_vm0, %v10370_v51 }
 0x4fd   : > { %v6198_v53 = vpop.f32.mrb[60].mxu1 }
 0x4fe   : > { %v6199_v56 = vpop.f32.mrb[61].mxu1 }
 0x4ff   : > { %v6200_v3 = vadd.f32 %v6199_v56, %v6198_v53 }
 0x501   : > { %v10375_v2 = vadd.f32 %v6200_v3, %v10186_v55  ;;  %v6201_v31 = vpop.f32.mrb[62].mxu1 }
 0x502   : > { %v6202_v33 = vpop.f32.mrb[63].mxu1 }
 0x503   : > { %v6203_v18 = vadd.f32 %v6202_v33, %v6201_v31 }
 0x505   : > { %v10378_v62 = vadd.f32 %v6203_v18, %v10188_v32  ;;  %v6204_v0 = vpop.f32.mrb[64].mxu1 }
 0x506   : > { %v6205_v60 = vpop.f32.mrb[65].mxu1 }
 0x507   : > { %v6206_v4 = vadd.f32 %v6205_v60, %v6204_v0 }
 0x509   : > { %v10381_v6 = vadd.f32 %v6206_v4, %v10190_v61  ;;  %v6207_v5 = vpop.f32.mrb[66].mxu1 }
 0x50a   : > { %v6208_v59 = vpop.f32.mrb[67].mxu1 }
 0x50b   : > { %v6209_v63 = vadd.f32 %v6208_v59, %v6207_v5 }
 0x50d   : > { %v10384_v10 = vadd.f32 %v6209_v63, %v10192_v12  ;;  %v6210_v55 = vpop.f32.mrb[68].mxu1 }
 0x50e   : > { %v6211_v58 = vpop.f32.mrb[69].mxu1 }
 0x50f   : > { %v6212_v52 = vadd.f32 %v6211_v58, %v6210_v55 }
 0x511   : > { %v10387_v53 = vadd.f32 %v6212_v52, %v10194_v17  ;;  %v6213_v32 = vpop.f32.mrb[70].mxu1 }
 0x512   : > { %v6214_v56 = vpop.f32.mrb[71].mxu1 }
 0x513   : > { %v6215_v3 = vadd.f32 %v6214_v56, %v6213_v32 }
 0x515   : > { %v10390_v31 = vadd.f32 %v6215_v3, %v10196_v21  ;;  %v6216_v61 = vpop.f32.mrb[72].mxu1 }
 0x516   : > { %v6217_v33 = vpop.f32.mrb[73].mxu1 }
 0x517   : > { %v6218_v18 = vadd.f32 %v6217_v33, %v6216_v61 }
 0x519   : > { %v10393_v0 = vadd.f32 %v6218_v18, %v10198_v26  ;;  %v6219_v12 = vpop.f32.mrb[74].mxu1 }
 0x51a   : > { %v6220_v60 = vpop.f32.mrb[75].mxu1 }
 0x51b   : > { %v6221_v4 = vadd.f32 %v6220_v60, %v6219_v12 }
 0x51d   : > { %v10396_v5 = vadd.f32 %v6221_v4, %v10200_v40  ;;  %v6222_v17 = vpop.f32.mrb[76].mxu1 }
 0x51e   : > { %v6223_v59 = vpop.f32.mrb[77].mxu1 }
 0x51f   : > { %v6224_v63 = vadd.f32 %v6223_v59, %v6222_v17 }
 0x521   : > { %v10399_v55 = vadd.f32 %v6224_v63, %v10202_v47  ;;  %v6225_v21 = vpop.f32.mrb[78].mxu1 }
 0x522   : > { %v6226_v58 = vpop.f32.mrb[79].mxu1 }
 0x523   : > { %11212 = vst [vmem:[#allocation39_spill] sm:$0xff] %v10399_v55  ;;  %v6227_v52 = vadd.f32 %v6226_v58, %v6225_v21 }
 0x525   : > { %v10402_v32 = vadd.f32 %v6227_v52, %v10204_v54  ;;  %v6228_v26 = vpop.f32.mrb[80].mxu1 }
 0x526   : > { %v6229_v56 = vpop.f32.mrb[81].mxu1 }
 0x527   : > { %11213 = vst [vmem:[#allocation40_spill] sm:$0xff] %v10402_v32  ;;  %v6230_v3 = vadd.f32 %v6229_v56, %v6228_v26 }
 0x529   : > { %v10405_v61 = vadd.f32 %v6230_v3, %v10206_v34  ;;  %v6231_v40 = vpop.f32.mrb[82].mxu1 }
 0x52a   : > { %v6232_v33 = vpop.f32.mrb[83].mxu1 }
 0x52b   : > { %11214 = vst [vmem:[#allocation41_spill] sm:$0xff] %v10405_v61  ;;  %v6233_v18 = vadd.f32 %v6232_v33, %v6231_v40 }
 0x52d   : > { %v10408_v12 = vadd.f32 %v6233_v18, %v10208_v7  ;;  %v6234_v47 = vpop.f32.mrb[84].mxu1 }
 0x52e   : > { %v6235_v60 = vpop.f32.mrb[85].mxu1 }
 0x52f   : > { %11215 = vst [vmem:[#allocation42_spill] sm:$0xff] %v10408_v12  ;;  %v6236_v4 = vadd.f32 %v6235_v60, %v6234_v47 }
 0x531   : > { %v10411_v17 = vadd.f32 %v6236_v4, %v10210_v11  ;;  %v6237_v54 = vpop.f32.mrb[86].mxu1 }
 0x532   : > { %v6238_v59 = vpop.f32.mrb[87].mxu1 }
 0x533   : > { %11216 = vst [vmem:[#allocation43_spill] sm:$0xff] %v10411_v17  ;;  %v6239_v63 = vadd.f32 %v6238_v59, %v6237_v54 }
 0x535   : > { %v10414_v21 = vadd.f32 %v6239_v63, %v10212_v36  ;;  %v7071_v34 = vpop.f32.mrb[88].mxu1 }
 0x536   : > { %v2092_v58 = vpop.f32.mrb[89].mxu1 }
 0x537   : > { %11217 = vst [vmem:[#allocation44_spill] sm:$0xff] %v10414_v21  ;;  %v8111_v52 = vpack.c.bf16 %v7071_v34, %v2092_v58 }
 0x539   : > { %v7074_v26 = vpop.f32.mrb[90].mxu1 }
 0x53a   : > { %v2102_v56 = vpop.f32.mrb[91].mxu1 }
 0x53b   : > { %v8115_v3 = vpack.c.bf16 %v7074_v26, %v2102_v56 }
 0x53d   : > { %v7077_v7 = vpop.f32.mrb[92].mxu1 }
 0x53e   : > { %v2112_v40 = vpop.f32.mrb[93].mxu1 }
 0x53f   : > { %v8119_v33 = vpack.c.bf16 %v7077_v7, %v2112_v40 }
 0x541   : > { %v7080_v18 = vpop.f32.mrb[94].mxu1 }
 0x542   : > { %v2122_v47 = vpop.f32.mrb[95].mxu1 }
 0x543   : > { %v8123_v60 = vpack.c.bf16 %v7080_v18, %v2122_v47 }
 0x545   : > { %v7083_v11 = vpop.f32.mrb[96].mxu1 }
 0x546   : > { %v2132_v4 = vpop.f32.mrb[97].mxu1 }
 0x547   : > { %v8127_v17 = vpack.c.bf16 %v7083_v11, %v2132_v4 }
 0x549   : > { %v7086_v12 = vpop.f32.mrb[98].mxu1 }
 0x54a   : > { %v2142_v54 = vpop.f32.mrb[99].mxu1 }
 0x54b   : > { %v8131_v59 = vpack.c.bf16 %v7086_v12, %v2142_v54 }
 0x54d   : > { %v7089_v36 = vpop.f32.mrb[100].mxu1 }
 0x54e   : > { %v2152_v63 = vpop.f32.mrb[101].mxu1 }
 0x54f   : > { %v8135_v21 = vpack.c.bf16 %v7089_v36, %v2152_v63 }
 0x551   : > { %v7092_v61 = vpop.f32.mrb[102].mxu1 }
 0x552   : > { %v2162_v34 = vpop.f32.mrb[103].mxu1 }
 0x553   : > { %v8139_v58 = vpack.c.bf16 %v7092_v61, %v2162_v34 }
 0x555   : > { %v7095_v32 = vpop.f32.mrb[104].mxu1 }
 0x556   : > { %v2172_v26 = vpop.f32.mrb[105].mxu1 }
 0x557   : > { %v8109_v56 = vpack.c.bf16 %v7095_v32, %v2172_v26 }
 0x559   : > { %v7098_v55 = vpop.f32.mrb[106].mxu1  ;;  %8110 = vmatprep.subr.bf16.mxu0 %v8109_v56  ;;  %v2430_v56 = vld [vmem:[#allocation5 + $0x180] sm:$0xff] }
 0x55a   : > { %v2182_v7 = vpop.f32.mrb[107].mxu1  ;;  %8112 = vmatpush3.bf16.msra.mxu0 %v8111_v52 }
 0x55b   : > { %v8113_v40 = vpack.c.bf16 %v7098_v55, %v2182_v7  ;;  %v2431_v7 = vld [vmem:[#allocation5 + $0x188] sm:$0xff] }
 0x55d   : > { %v7101_v18 = vpop.f32.mrb[108].mxu1  ;;  %8114 = vmatprep.subr.bf16.mxu0 %v8113_v40 }
 0x55e   : > { %v2192_v47 = vpop.f32.mrb[109].mxu1  ;;  %8116 = vmatpush3.bf16.msra.mxu0 %v8115_v3 }
 0x55f   : > { %v8117_v11 = vpack.c.bf16 %v7101_v18, %v2192_v47  ;;  %v8141_v47 = vpack.c.bf16 %v2431_v7, %v2430_v56  ;;  %v2261_v56 = vld [vmem:[#allocation7 + $0x2e8] sm:$0xff] }
 0x561   : > { %v7104_v12 = vpop.f32.mrb[110].mxu1  ;;  %8118 = vmatprep.subr.bf16.mxu0 %v8117_v11  ;;  %v2433_v11 = vld [vmem:[#allocation5 + $0x198] sm:$0xff] }
 0x562   : > { %v2202_v4 = vpop.f32.mrb[111].mxu1  ;;  %8120 = vmatpush3.bf16.msra.mxu0 %v8119_v33 }
 0x563   : > { %v8121_v54 = vpack.c.bf16 %v7104_v12, %v2202_v4  ;;  %v2252_v12 = vld [vmem:[#allocation7 + $0x2a0] sm:$0xff] }
 0x565   : > { %v7107_v36 = vpop.f32.mrb[112].mxu1  ;;  %8122 = vmatprep.subr.bf16.mxu0 %v8121_v54  ;;  %v2434_v54 = vld [vmem:[#allocation5 + $0x1a0] sm:$0xff] }
 0x566   : > { %v2212_v61 = vpop.f32.mrb[113].mxu1  ;;  %8124 = vmatpush3.bf16.msra.mxu0 %v8123_v60  ;;  %v2432_v60 = vld [vmem:[#allocation5 + $0x190] sm:$0xff] }
 0x567   : > { %v8125_v32 = vpack.c.bf16 %v7107_v36, %v2212_v61  ;;  %v8145_v4 = vpack.c.bf16 %v2433_v11, %v2432_v60  ;;  %v2435_v36 = vld [vmem:[#allocation5 + $0x1a8] sm:$0xff]  ;;  %v2262_v11 = vld [vmem:[#allocation7 + $0x2f0] sm:$0xff] }
 0x568   : > { %v2257_v61 = vld [vmem:[#allocation7 + $0x2c8] sm:$0xff] }
 0x569   : > { %v7110_v63 = vpop.f32.mrb[114].mxu1  ;;  %8126 = vmatprep.subr.bf16.mxu0 %v8125_v32  ;;  %v8149_v32 = vpack.c.bf16 %v2435_v36, %v2434_v54  ;;  %v2266_v54 = vld [vmem:[#allocation7 + $0x310] sm:$0xff]  ;;  %v2269_v36 = vld [vmem:[#allocation7 + $0x328] sm:$0xff] }
 0x56a   : > { %v2222_v34 = vpop.f32.mrb[115].mxu1  ;;  %8128 = vmatpush3.bf16.msra.mxu0 %v8127_v17  ;;  %v2255_v17 = vld [vmem:[#allocation7 + $0x2b8] sm:$0xff] }
 0x56b   : > { %v8129_v55 = vpack.c.bf16 %v7110_v63, %v2222_v34  ;;  %v2437_v63 = vld [vmem:[#allocation5 + $0x1b8] sm:$0xff]  ;;  %v2256_v34 = vld [vmem:[#allocation7 + $0x2c0] sm:$0xff] }
 0x56d   : > { %v7113_v52 = vpop.f32.mrb[116].mxu1  ;;  %8130 = vmatprep.subr.bf16.mxu0 %v8129_v55 }
 0x56e   : > { %v2232_v26 = vpop.f32.mrb[117].mxu1  ;;  %8132 = vmatpush3.bf16.msra.mxu0 %v8131_v59  ;;  %v2254_v59 = vld [vmem:[#allocation7 + $0x2b0] sm:$0xff] }
 0x56f   : > { %v8133_v3 = vpack.c.bf16 %v7113_v52, %v2232_v26  ;;  %v2438_v52 = vld [vmem:[#allocation5 + $0x1c0] sm:$0xff]  ;;  %v2439_v26 = vld [vmem:[#allocation5 + $0x1c8] sm:$0xff] }
 0x570   : > { %v8157_v7 = vpack.c.bf16 %v2439_v26, %v2438_v52  ;;  %v2276_v52 = vld [vmem:[#allocation7 + $0x360] sm:$0xff]  ;;  %v2279_v26 = vld [vmem:[#allocation7 + $0x378] sm:$0xff] }
 0x571   : > { %v7116_v40 = vpop.f32.mrb[118].mxu1  ;;  %8134 = vmatprep.subr.bf16.mxu0 %v8133_v3  ;;  %v2258_v3 = vld [vmem:[#allocation7 + $0x2d0] sm:$0xff] }
 0x572   : > { %v2242_v33 = vpop.f32.mrb[119].mxu1  ;;  %8136 = vmatpush3.bf16.msra.mxu0 %v8135_v21  ;;  %v2436_v21 = vld [vmem:[#allocation5 + $0x1b0] sm:$0xff] }
 0x573   : > { %v8137_v18 = vpack.c.bf16 %v7116_v40, %v2242_v33  ;;  %v8153_v55 = vpack.c.bf16 %v2437_v63, %v2436_v21  ;;  %v2440_v40 = vld [vmem:[#allocation5 + $0x1d0] sm:$0xff]  ;;  %v2441_v33 = vld [vmem:[#allocation5 + $0x1d8] sm:$0xff]  ;;  %v2273_v21 = vld [vmem:[#allocation7 + $0x348] sm:$0xff] }
 0x574   : > { %v8161_v60 = vpack.c.bf16 %v2441_v33, %v2440_v40  ;;  %v2272_v63 = vld [vmem:[#allocation7 + $0x340] sm:$0xff]  ;;  %v11219_v33 = vld [vmem:[#allocation40_spill] sm:$0xff] }
 0x575   : > { %8138 = vmatprep.subr.bf16.mxu0 %v8137_v18  ;;  %v2260_v18 = vld [vmem:[#allocation7 + $0x2e0] sm:$0xff] }
 0x576   : > { %8140 = vmatpush3.bf16.msra.mxu0 %v8139_v58  ;;  %v2259_v58 = vld [vmem:[#allocation7 + $0x2d8] sm:$0xff] }
 0x577   : > { %8142 = vmatprep.subr.bf16.mxu0 %v8141_v47 }
 0x579   : > { %2345 = vmatmul.mubr.f32.vlgmr.msra.gmra.mrb[92].mxu0 %v2252_v12  ;;  %v2265_v12 = vld [vmem:[#allocation7 + $0x308] sm:$0xff] }
 0x57a   : > { %2349 = vmatprep.mubr.f32.mxu0 %v2255_v17  ;;  %8144 = vmatpush3.bf16.msra.mxu0 %v8141_v47  ;;  %v2263_v47 = vld [vmem:[#allocation7 + $0x2f8] sm:$0xff]  ;;  %v2264_v17 = vld [vmem:[#allocation7 + $0x300] sm:$0xff] }
 0x57b   : > { %8146 = vmatprep.subr.bf16.mxu0 %v8145_v4 }
 0x57d   : > { %2350 = vmatmul.mubr.f32.gmra.mrb[94].mxu0 %v2254_v59  ;;  %v2268_v59 = vld [vmem:[#allocation7 + $0x320] sm:$0xff] }
 0x57e   : > { %2354 = vmatprep.mubr.f32.mxu0 %v2257_v61  ;;  %8148 = vmatpush3.bf16.msra.mxu0 %v8145_v4  ;;  %v2267_v4 = vld [vmem:[#allocation7 + $0x318] sm:$0xff] }
 0x57f   : > { %8150 = vmatprep.subr.bf16.mxu0 %v8149_v32  ;;  %v2271_v61 = vld [vmem:[#allocation7 + $0x338] sm:$0xff] }
 0x581   : > { %2355 = vmatmul.mubr.f32.gmra.mrb[96].mxu0 %v2256_v34  ;;  %v2275_v34 = vld [vmem:[#allocation7 + $0x358] sm:$0xff] }
 0x582   : > { %2359 = vmatprep.mubr.f32.mxu0 %v2259_v58  ;;  %8152 = vmatpush3.bf16.msra.mxu0 %v8149_v32  ;;  %v2270_v32 = vld [vmem:[#allocation7 + $0x330] sm:$0xff] }
 0x583   : > { %8154 = vmatprep.subr.bf16.mxu0 %v8153_v55  ;;  %v2274_v58 = vld [vmem:[#allocation7 + $0x350] sm:$0xff] }
 0x585   : > { %2360 = vmatmul.mubr.f32.gmra.mrb[98].mxu0 %v2258_v3  ;;  %v2278_v3 = vld [vmem:[#allocation7 + $0x370] sm:$0xff] }
 0x586   : > { %2364 = vmatprep.mubr.f32.mxu0 %v2261_v56  ;;  %8156 = vmatpush3.bf16.msra.mxu0 %v8153_v55  ;;  %v2277_v55 = vld [vmem:[#allocation7 + $0x368] sm:$0xff] }
 0x587   : > { %8158 = vmatprep.subr.bf16.mxu0 %v8157_v7 }
 0x589   : > { %2365 = vmatmul.mubr.f32.gmra.mrb[100].mxu0 %v2260_v18 }
 0x58a   : > { %2369 = vmatprep.mubr.f32.mxu0 %v2263_v47  ;;  %8160 = vmatpush3.bf16.msra.mxu0 %v8157_v7 }
 0x58b   : > { %8162 = vmatprep.subr.bf16.mxu0 %v8161_v60 }
 0x58d   : > { %2370 = vmatmul.mubr.f32.gmra.mrb[102].mxu0 %v2262_v11  ;;  %v11220_v11 = vld [vmem:[#allocation41_spill] sm:$0xff] }
 0x58e   : > { %2374 = vmatprep.mubr.f32.mxu0 %v2265_v12  ;;  %8164 = vmatpush3.bf16.msra.mxu0 %v8161_v60 }
 0x591   : > { %2375 = vmatmul.mubr.f32.gmra.mrb[104].mxu0 %v2264_v17 }
 0x592   : > { %2379 = vmatprep.mubr.f32.mxu0 %v2267_v4 }
 0x595   : > { %2380 = vmatmul.mubr.f32.gmra.mrb[106].mxu0 %v2266_v54  ;;  %v11221_v54 = vld [vmem:[#allocation42_spill] sm:$0xff] }
 0x596   : > { %2384 = vmatprep.mubr.f32.mxu0 %v2269_v36 }
 0x599   : > { %2385 = vmatmul.mubr.f32.gmra.mrb[108].mxu0 %v2268_v59 }
 0x59a   : > { %2389 = vmatprep.mubr.f32.mxu0 %v2271_v61  ;;  %v3065_v61 = vld [vmem:[#allocation10 + $0x58] sm:$0xff] }
 0x59d   : > { %2390 = vmatmul.mubr.f32.gmra.mrb[110].mxu0 %v2270_v32 }
 0x59e   : > { %2394 = vmatprep.mubr.f32.mxu0 %v2273_v21  ;;  %v3066_v21 = vld [vmem:[#allocation10 + $0x60] sm:$0xff] }
 0x5a1   : > { %2395 = vmatmul.mubr.f32.gmra.mrb[112].mxu0 %v2272_v63 }
 0x5a2   : > { %2399 = vmatprep.mubr.f32.mxu0 %v2275_v34  ;;  %v8217_v34 = vpack.c.bf16 %v3066_v21, %v3065_v61 }
 0x5a4   : > { %8218 = vmatprep.subr.bf16.mxu0 %v8217_v34 }
 0x5a5   : > { %2400 = vmatmul.mubr.f32.gmra.mrb[114].mxu0 %v2274_v58  ;;  %v3067_v58 = vld [vmem:[#allocation10 + $0x68] sm:$0xff] }
 0x5a6   : > { %2404 = vmatprep.mubr.f32.mxu0 %v2277_v55  ;;  %v3068_v55 = vld [vmem:[#allocation10 + $0x70] sm:$0xff] }
 0x5a9   : > { %2405 = vmatmul.mubr.f32.gmra.mrb[116].mxu0 %v2276_v52  ;;  %v8221_v52 = vpack.c.bf16 %v3068_v55, %v3067_v58 }
 0x5aa   : > { %2409 = vmatprep.mubr.f32.mxu0 %v2279_v26  ;;  %v3069_v26 = vld [vmem:[#allocation10 + $0x78] sm:$0xff] }
 0x5ad   : > { %2410 = vmatmul.mubr.f32.gmra.mrb[118].mxu0 %v2278_v3  ;;  %v3070_v3 = vld [vmem:[#allocation10 + $0x80] sm:$0xff] }
 0x5ae   : > { %7141 = vmatprep.mubr.msk.f32.mxu0 %vm710_vm0, %v10215_v14  ;;  %v2669_v14 = vld [vmem:[#allocation7 + $0x388] sm:$0xff] }
 0x5af   : > { %2760 = vmatprep.mubr.f32.mxu1 %v2669_v14  ;;  %v11222_v14 = vld [vmem:[#allocation43_spill] sm:$0xff] }
 0x5b1   : > { %7142 = vmatmul.mubr.msk.f32.vlgmr.msra.gmra.mrb[120].mxu0 %vm710_vm0, %v10220_v57 }
 0x5b2   : > { %7144 = vmatprep.mubr.msk.f32.mxu0 %vm710_vm0, %v10225_v13  ;;  %8220 = vmatpush3.bf16.msra.mxu0 %v8217_v34 }
 0x5b3   : > { %8222 = vmatprep.subr.bf16.mxu0 %v8221_v52 }
 0x5b5   : > { %7145 = vmatmul.mubr.msk.f32.gmra.mrb[122].mxu0 %vm710_vm0, %v10230_v15 }
 0x5b6   : > { %7147 = vmatprep.mubr.msk.f32.mxu0 %vm710_vm0, %v10235_v16  ;;  %8224 = vmatpush3.bf16.msra.mxu0 %v8221_v52 }
 0x5b9   : > { %7148 = vmatmul.mubr.msk.f32.gmra.mrb[124].mxu0 %vm710_vm0, %v10240_v23 }
 0x5ba   : > { %7150 = vmatprep.mubr.msk.f32.mxu0 %vm710_vm0, %v10245_v35 }
 0x5bd   : > { %7151 = vmatmul.mubr.msk.f32.gmra.mrb[126].mxu0 %vm710_vm0, %v10250_v19 }
 0x5be   : > { %7153 = vmatprep.mubr.msk.f32.mxu0 %vm710_vm0, %v10255_v8 }
 0x5c1   : > { %7154 = vmatmul.mubr.msk.f32.gmra.mrb[128].mxu0 %vm710_vm0, %v10260_v9 }
 0x5c2   : > { %7156 = vmatprep.mubr.msk.f32.mxu0 %vm710_vm0, %v10265_v29 }
 0x5c5   : > { %7157 = vmatmul.mubr.msk.f32.gmra.mrb[130].mxu0 %vm710_vm0, %v10270_v30 }
 0x5c6   : > { %7159 = vmatprep.mubr.msk.f32.mxu0 %vm710_vm0, %v10275_v20 }
 0x5c9   : > { %7160 = vmatmul.mubr.msk.f32.gmra.mrb[132].mxu0 %vm710_vm0, %v10280_v25 }
 0x5ca   : > { %7162 = vmatprep.mubr.msk.f32.mxu0 %vm710_vm0, %v10285_v27 }
 0x5cd   : > { %7163 = vmatmul.mubr.msk.f32.gmra.mrb[134].mxu0 %vm710_vm0, %v10290_v24 }
 0x5ce   : > { %7165 = vmatprep.mubr.msk.f32.mxu0 %vm710_vm0, %v10295_v28 }
 0x5d1   : > { %7166 = vmatmul.mubr.msk.f32.gmra.mrb[136].mxu0 %vm710_vm0, %v10300_v1 }
 0x5d2   : > { %7168 = vmatprep.mubr.msk.f32.mxu0 %vm710_vm0, %v10305_v22 }
 0x5d5   : > { %7169 = vmatmul.mubr.msk.f32.gmra.mrb[138].mxu0 %vm710_vm0, %v10310_v37 }
 0x5d6   : > { %7171 = vmatprep.mubr.msk.f32.mxu0 %vm710_vm0, %v10315_v38 }
 0x5d9   : > { %7172 = vmatmul.mubr.msk.f32.gmra.mrb[140].mxu0 %vm710_vm0, %v10320_v39 }
 0x5da   : > { %7174 = vmatprep.mubr.msk.f32.mxu0 %vm710_vm0, %v10325_v41 }
 0x5dd   : > { %7175 = vmatmul.mubr.msk.f32.gmra.mrb[142].mxu0 %vm710_vm0, %v10330_v42 }
 0x5de   : > { %7177 = vmatprep.mubr.msk.f32.mxu0 %vm710_vm0, %v10335_v43 }
 0x5e1   : > { %7178 = vmatmul.mubr.msk.f32.gmra.mrb[144].mxu0 %vm710_vm0, %v10340_v44 }
 0x5e2   : > { %7180 = vmatprep.mubr.msk.f32.mxu0 %vm710_vm0, %v10345_v45 }
 0x5e5   : > { %7181 = vmatmul.mubr.msk.f32.gmra.mrb[146].mxu0 %vm710_vm0, %v10350_v46 }
 0x5e6   : > { %7183 = vmatprep.mubr.msk.f32.mxu0 %vm710_vm0, %v10355_v48 }
 0x5e9   : > { %7184 = vmatmul.mubr.msk.f32.gmra.mrb[148].mxu0 %vm710_vm0, %v10360_v49 }
 0x5ea   : > { %7186 = vmatprep.mubr.msk.f32.mxu0 %vm710_vm0, %v10365_v50 }
 0x5ed   : > { %7187 = vmatmul.mubr.msk.f32.gmra.mrb[150].mxu0 %vm710_vm0, %v10370_v51 }
 0x64c   : > { %v6316_v57 = vpop.f32.mrb[92].mxu0 }
 0x64d   : > { %v6317_v13 = vpop.f32.mrb[93].mxu0 }
 0x64e   : > { %v6318_v15 = vadd.f32 %v6317_v13, %v6316_v57 }
 0x650   : > { %v10481_v16 = vadd.f32 %v6318_v15, %v10375_v2  ;;  %v6319_v23 = vpop.f32.mrb[94].mxu0 }
 0x651   : > { %v6320_v35 = vpop.f32.mrb[95].mxu0 }
 0x652   : > { %v6321_v19 = vadd.f32 %v6320_v35, %v6319_v23  ;;  %v8225_v35 = vpack.c.bf16 %v3070_v3, %v3069_v26 }
 0x654   : > { %v10484_v8 = vadd.f32 %v6321_v19, %v10378_v62  ;;  %v6322_v9 = vpop.f32.mrb[96].mxu0  ;;  %v11223_v19 = vld [vmem:[#allocation44_spill] sm:$0xff]  ;;  %8226 = vmatprep.subr.bf16.mxu0 %v8225_v35 }
 0x655   : > { %v6323_v29 = vpop.f32.mrb[97].mxu0  ;;  %8228 = vmatpush3.bf16.msra.mxu0 %v8225_v35 }
 0x656   : > { %v6324_v30 = vadd.f32 %v6323_v29, %v6322_v9 }
 0x658   : > { %v10487_v20 = vadd.f32 %v6324_v30, %v10381_v6  ;;  %v6325_v25 = vpop.f32.mrb[98].mxu0 }
 0x659   : > { %v6326_v27 = vpop.f32.mrb[99].mxu0 }
 0x65a   : > { %v6327_v24 = vadd.f32 %v6326_v27, %v6325_v25 }
 0x65c   : > { %v10490_v28 = vadd.f32 %v6327_v24, %v10384_v10  ;;  %v6328_v1 = vpop.f32.mrb[100].mxu0 }
 0x65d   : > { %v6329_v22 = vpop.f32.mrb[101].mxu0 }
 0x65e   : > { %v6330_v37 = vadd.f32 %v6329_v22, %v6328_v1 }
 0x660   : > { %v10493_v38 = vadd.f32 %v6330_v37, %v10387_v53  ;;  %v6331_v39 = vpop.f32.mrb[102].mxu0  ;;  %v11218_v53 = vld [vmem:[#allocation39_spill] sm:$0xff] }
 0x661   : > { %v6332_v41 = vpop.f32.mrb[103].mxu0 }
 0x662   : > { %v6333_v42 = vadd.f32 %v6332_v41, %v6331_v39 }
 0x664   : > { %v10496_v43 = vadd.f32 %v6333_v42, %v10390_v31  ;;  %v6334_v44 = vpop.f32.mrb[104].mxu0 }
 0x665   : > { %v6335_v45 = vpop.f32.mrb[105].mxu0 }
 0x666   : > { %v6336_v46 = vadd.f32 %v6335_v45, %v6334_v44 }
 0x668   : > { %v10499_v48 = vadd.f32 %v6336_v46, %v10393_v0  ;;  %v6337_v49 = vpop.f32.mrb[106].mxu0 }
 0x669   : > { %v6338_v50 = vpop.f32.mrb[107].mxu0 }
 0x66a   : > { %v6339_v51 = vadd.f32 %v6338_v50, %v6337_v49 }
 0x66c   : > { %v10502_v2 = vadd.f32 %v6339_v51, %v10396_v5  ;;  %v6340_v62 = vpop.f32.mrb[108].mxu0 }
 0x66d   : > { %v6341_v6 = vpop.f32.mrb[109].mxu0 }
 0x66e   : > { %v6342_v10 = vadd.f32 %v6341_v6, %v6340_v62 }
 0x670   : > { %v10505_v56 = vadd.f32 %v6342_v10, %v11218_v53  ;;  %v6343_v31 = vpop.f32.mrb[110].mxu0 }
 0x671   : > { %v6344_v7 = vpop.f32.mrb[111].mxu0 }
 0x672   : > { %v6345_v40 = vadd.f32 %v6344_v7, %v6343_v31 }
 0x674   : > { %v10508_v18 = vadd.f32 %v6345_v40, %v11219_v33  ;;  %v6346_v0 = vpop.f32.mrb[112].mxu0 }
 0x675   : > { %v6347_v47 = vpop.f32.mrb[113].mxu0 }
 0x676   : > { %v6348_v60 = vadd.f32 %v6347_v47, %v6346_v0 }
 0x678   : > { %v10511_v12 = vadd.f32 %v6348_v60, %v11220_v11  ;;  %v6349_v5 = vpop.f32.mrb[114].mxu0 }
 0x679   : > { %v6350_v17 = vpop.f32.mrb[115].mxu0 }
 0x67a   : > { %v6351_v4 = vadd.f32 %v6350_v17, %v6349_v5 }
 0x67c   : > { %v10514_v36 = vadd.f32 %v6351_v4, %v11221_v54  ;;  %v6352_v59 = vpop.f32.mrb[116].mxu0 }
 0x67d   : > { %v6353_v32 = vpop.f32.mrb[117].mxu0 }
 0x67e   : > { %v6354_v63 = vadd.f32 %v6353_v32, %v6352_v59 }
 0x680   : > { %v10517_v57 = vadd.f32 %v6354_v63, %v11222_v14  ;;  %v6355_v13 = vpop.f32.mrb[118].mxu0 }
 0x681   : > { %v6356_v15 = vpop.f32.mrb[119].mxu0 }
 0x682   : > { %v6357_v23 = vadd.f32 %v6356_v15, %v6355_v13  ;;  %v2866_v13 = vld [vmem:[#allocation10] sm:$0xff]  ;;  %v2867_v15 = vld [vmem:[#allocation10 + $0x8] sm:$0xff] }
 0x684   : > { %v10520_v9 = vadd.f32 %v6357_v23, %v11223_v19  ;;  %v7143_v29 = vpop.f32.mrb[120].mxu0 }
 0x685   : > { %v2508_v30 = vpop.f32.mrb[121].mxu0 }
 0x686   : > { %v8167_v25 = vpack.c.bf16 %v7143_v29, %v2508_v30  ;;  %v8197_v29 = vpack.c.bf16 %v2867_v15, %v2866_v13  ;;  %v2868_v30 = vld [vmem:[#allocation10 + $0x10] sm:$0xff] }
 0x687   : > { %v2876_v15 = vld [vmem:[#allocation10 + $0x50] sm:$0xf] }
 0x688   : > { %v7146_v27 = vpop.f32.mrb[122].mxu0 }
 0x689   : > { %v2518_v24 = vpop.f32.mrb[123].mxu0 }
 0x68a   : > { %v8171_v1 = vpack.c.bf16 %v7146_v27, %v2518_v24  ;;  %v2668_v27 = vld [vmem:[#allocation7 + $0x380] sm:$0xff]  ;;  %v2671_v24 = vld [vmem:[#allocation7 + $0x398] sm:$0xff] }
 0x68c   : > { %v7149_v22 = vpop.f32.mrb[124].mxu0 }
 0x68d   : > { %v2528_v37 = vpop.f32.mrb[125].mxu0 }
 0x68e   : > { %v8175_v39 = vpack.c.bf16 %v7149_v22, %v2528_v37  ;;  %v2870_v22 = vld [vmem:[#allocation10 + $0x20] sm:$0xff]  ;;  %v2871_v37 = vld [vmem:[#allocation10 + $0x28] sm:$0xff] }
 0x690   : > { %v7152_v41 = vpop.f32.mrb[126].mxu0 }
 0x691   : > { %v2538_v42 = vpop.f32.mrb[127].mxu0 }
 0x692   : > { %v8179_v44 = vpack.c.bf16 %v7152_v41, %v2538_v42  ;;  %v2673_v41 = vld [vmem:[#allocation7 + $0x3a8] sm:$0xff]  ;;  %v8205_v42 = vpack.c.bf16 %v2871_v37, %v2870_v22 }
 0x694   : > { %v7155_v45 = vpop.f32.mrb[128].mxu0 }
 0x695   : > { %v2548_v46 = vpop.f32.mrb[129].mxu0 }
 0x696   : > { %v8183_v49 = vpack.c.bf16 %v7155_v45, %v2548_v46  ;;  %v2675_v45 = vld [vmem:[#allocation7 + $0x3b8] sm:$0xff]  ;;  %v2674_v46 = vld [vmem:[#allocation7 + $0x3b0] sm:$0xff] }
 0x698   : > { %v7158_v50 = vpop.f32.mrb[130].mxu0 }
 0x699   : > { %v2558_v51 = vpop.f32.mrb[131].mxu0 }
 0x69a   : > { %v8187_v62 = vpack.c.bf16 %v7158_v50, %v2558_v51  ;;  %v2676_v50 = vld [vmem:[#allocation7 + $0x3c0] sm:$0xff]  ;;  %v2679_v51 = vld [vmem:[#allocation7 + $0x3d8] sm:$0xff] }
 0x69c   : > { %v7161_v6 = vpop.f32.mrb[132].mxu0 }
 0x69d   : > { %v2568_v10 = vpop.f32.mrb[133].mxu0 }
 0x69e   : > { %v8191_v53 = vpack.c.bf16 %v7161_v6, %v2568_v10  ;;  %v2681_v6 = vld [vmem:[#allocation7 + $0x3e8] sm:$0xff]  ;;  %v2680_v10 = vld [vmem:[#allocation7 + $0x3e0] sm:$0xff] }
 0x6a0   : > { %v7164_v31 = vpop.f32.mrb[134].mxu0 }
 0x6a1   : > { %v2578_v7 = vpop.f32.mrb[135].mxu0 }
 0x6a2   : > { %v8195_v40 = vpack.c.bf16 %v7164_v31, %v2578_v7  ;;  %v2682_v31 = vld [vmem:[#allocation7 + $0x3f0] sm:$0xff]  ;;  %v2685_v7 = vld [vmem:[#allocation7 + $0x408] sm:$0xff] }
 0x6a4   : > { %v7167_v33 = vpop.f32.mrb[136].mxu0 }
 0x6a5   : > { %v2588_v0 = vpop.f32.mrb[137].mxu0 }
 0x6a6   : > { %v8165_v47 = vpack.c.bf16 %v7167_v33, %v2588_v0  ;;  %v2687_v33 = vld [vmem:[#allocation7 + $0x418] sm:$0xff]  ;;  %v2686_v0 = vld [vmem:[#allocation7 + $0x410] sm:$0xff] }
 0x6a8   : > { %v7170_v60 = vpop.f32.mrb[138].mxu0  ;;  %8166 = vmatprep.subr.bf16.mxu1 %v8165_v47  ;;  %v2689_v47 = vld [vmem:[#allocation7 + $0x428] sm:$0xff] }
 0x6a9   : > { %v2598_v11 = vpop.f32.mrb[139].mxu0  ;;  %8168 = vmatpush3.bf16.msra.mxu1 %v8167_v25  ;;  %v2869_v25 = vld [vmem:[#allocation10 + $0x18] sm:$0xff] }
 0x6aa   : > { %v8169_v5 = vpack.c.bf16 %v7170_v60, %v2598_v11  ;;  %v2688_v60 = vld [vmem:[#allocation7 + $0x420] sm:$0xff]  ;;  %v2691_v11 = vld [vmem:[#allocation7 + $0x438] sm:$0xff] }
 0x6ac   : > { %v7173_v17 = vpop.f32.mrb[140].mxu0  ;;  %8170 = vmatprep.subr.bf16.mxu1 %v8169_v5  ;;  %v2690_v5 = vld [vmem:[#allocation7 + $0x430] sm:$0xff] }
 0x6ad   : > { %v2608_v4 = vpop.f32.mrb[141].mxu0  ;;  %8172 = vmatpush3.bf16.msra.mxu1 %v8171_v1  ;;  %v8201_v1 = vpack.c.bf16 %v2869_v25, %v2868_v30  ;;  %v10526_v30 = vld [vmem:[#allocation8] ss:$0 sm:$0xff] }
 0x6ae   : > { %v8173_v54 = vpack.c.bf16 %v7173_v17, %v2608_v4  ;;  %v2693_v17 = vld [vmem:[#allocation7 + $0x448] sm:$0xff]  ;;  %v2692_v4 = vld [vmem:[#allocation7 + $0x440] sm:$0xff] }
 0x6b0   : > { %v7176_v59 = vpop.f32.mrb[142].mxu0  ;;  %8174 = vmatprep.subr.bf16.mxu1 %v8173_v54  ;;  %v2695_v54 = vld [vmem:[#allocation7 + $0x458] sm:$0xff] }
 0x6b1   : > { %v2618_v61 = vpop.f32.mrb[143].mxu0  ;;  %8176 = vmatpush3.bf16.msra.mxu1 %v8175_v39  ;;  %v2670_v39 = vld [vmem:[#allocation7 + $0x390] sm:$0xff] }
 0x6b2   : > { %v8177_v32 = vpack.c.bf16 %v7176_v59, %v2618_v61  ;;  %v2694_v59 = vld [vmem:[#allocation7 + $0x450] sm:$0xff] }
 0x6b3   : > { %v2872_v61 = vld [vmem:[#allocation10 + $0x30] sm:$0xff] }
 0x6b4   : > { %v7179_v21 = vpop.f32.mrb[144].mxu0  ;;  %8178 = vmatprep.subr.bf16.mxu1 %v8177_v32  ;;  %v2873_v32 = vld [vmem:[#allocation10 + $0x38] sm:$0xff] }
 0x6b5   : > { %v2628_v63 = vpop.f32.mrb[145].mxu0  ;;  %8180 = vmatpush3.bf16.msra.mxu1 %v8179_v44  ;;  %v2672_v44 = vld [vmem:[#allocation7 + $0x3a0] sm:$0xff] }
 0x6b6   : > { %v8181_v34 = vpack.c.bf16 %v7179_v21, %v2628_v63  ;;  %v3071_v21 = vld [vmem:[#allocation10 + $0x88] sm:$0xff]  ;;  %v8209_v63 = vpack.c.bf16 %v2873_v32, %v2872_v61 }
 0x6b8   : > { %v7182_v58 = vpop.f32.mrb[146].mxu0  ;;  %8182 = vmatprep.subr.bf16.mxu1 %v8181_v34  ;;  %v3072_v34 = vld [vmem:[#allocation10 + $0x90] sm:$0xff] }
 0x6b9   : > { %v2638_v55 = vpop.f32.mrb[147].mxu0  ;;  %8184 = vmatpush3.bf16.msra.mxu1 %v8183_v49  ;;  %v2677_v49 = vld [vmem:[#allocation7 + $0x3c8] sm:$0xff] }
 0x6ba   : > { %v8185_v52 = vpack.c.bf16 %v7182_v58, %v2638_v55  ;;  %v8229_v58 = vpack.c.bf16 %v3072_v34, %v3071_v21  ;;  %v2874_v55 = vld [vmem:[#allocation10 + $0x40] sm:$0xff] }
 0x6bc   : > { %v7185_v26 = vpop.f32.mrb[148].mxu0  ;;  %8186 = vmatprep.subr.bf16.mxu1 %v8185_v52  ;;  %8230 = vmatprep.subr.bf16.mxu0 %v8229_v58  ;;  %v2875_v52 = vld [vmem:[#allocation10 + $0x48] sm:$0xff] }
 0x6bd   : > { %v2648_v3 = vpop.f32.mrb[149].mxu0  ;;  %8188 = vmatpush3.bf16.msra.mxu1 %v8187_v62  ;;  %v2678_v62 = vld [vmem:[#allocation7 + $0x3d0] sm:$0xff]  ;;  %8232 = vmatpush3.bf16.msra.mxu0 %v8229_v58 }
 0x6be   : > { %v8189_v14 = vpack.c.bf16 %v7185_v26, %v2648_v3  ;;  %v3073_v26 = vld [vmem:[#allocation10 + $0x98] sm:$0xff]  ;;  %v8213_v3 = vpack.c.bf16 %v2875_v52, %v2874_v55 }
 0x6c0   : > { %v7188_v23 = vpop.f32.mrb[150].mxu0  ;;  %8190 = vmatprep.subr.bf16.mxu1 %v8189_v14  ;;  %v3074_v14 = vld [vmem:[#allocation10 + $0xa0] sm:$0xff] }
 0x6c1   : > { %v2658_v35 = vpop.f32.mrb[151].mxu0  ;;  %8192 = vmatpush3.bf16.msra.mxu1 %v8191_v53  ;;  %v2683_v53 = vld [vmem:[#allocation7 + $0x3f8] sm:$0xff]  ;;  %v8233_v13 = vpack.c.bf16 %v3074_v14, %v3073_v26 }
 0x6c2   : > { %v8193_v19 = vpack.c.bf16 %v7188_v23, %v2658_v35  ;;  %v3075_v23 = vld [vmem:[#allocation10 + $0xa8] sm:$0xf] }
 0x6c3   : > { %8234 = vmatprep.subr.bf16.mxu0 %v8233_v13 }
 0x6c4   : > { %8194 = vmatprep.subr.bf16.mxu1 %v8193_v19  ;;  %8236 = vmatpush3.bf16.msra.mxu0 %v8233_v13 }
 0x6c5   : > { %8196 = vmatpush3.bf16.msra.mxu1 %v8195_v40  ;;  %v2684_v40 = vld [vmem:[#allocation7 + $0x400] sm:$0xff]  ;;  %7252 = vmatprep.subr.msk.mxu0 %vm2920_vm1, %v3075_v23 }
 0x6c6   : > { %8198 = vmatprep.subr.bf16.mxu1 %v8197_v29 }
 0x6c8   : > { %2761 = vmatmul.mubr.f32.vlgmr.msra.gmra.mrb[120].mxu1 %v2668_v27  ;;  %7253 = vmatpush3.msk.msra.mxu0 %vm2920_vm1, %v3075_v23 }
 0x6c9   : > { %2765 = vmatprep.mubr.f32.mxu1 %v2671_v24  ;;  %8200 = vmatpush3.bf16.msra.mxu1 %v8197_v29 }
 0x6ca   : > { %8202 = vmatprep.subr.bf16.mxu1 %v8201_v1 }
 0x6cc   : > { %2766 = vmatmul.mubr.f32.gmra.mrb[122].mxu1 %v2670_v39 }
 0x6cd   : > { %2770 = vmatprep.mubr.f32.mxu1 %v2673_v41  ;;  %8204 = vmatpush3.bf16.msra.mxu1 %v8201_v1 }
 0x6ce   : > { %8206 = vmatprep.subr.bf16.mxu1 %v8205_v42 }
 0x6d0   : > { %2771 = vmatmul.mubr.f32.gmra.mrb[124].mxu1 %v2672_v44 }
 0x6d1   : > { %2775 = vmatprep.mubr.f32.mxu1 %v2675_v45  ;;  %8208 = vmatpush3.bf16.msra.mxu1 %v8205_v42 }
 0x6d2   : > { %8210 = vmatprep.subr.bf16.mxu1 %v8209_v63 }
 0x6d4   : > { %2776 = vmatmul.mubr.f32.gmra.mrb[126].mxu1 %v2674_v46 }
 0x6d5   : > { %2780 = vmatprep.mubr.f32.mxu1 %v2677_v49  ;;  %8212 = vmatpush3.bf16.msra.mxu1 %v8209_v63 }
 0x6d6   : > { %8214 = vmatprep.subr.bf16.mxu1 %v8213_v3 }
 0x6d8   : > { %2781 = vmatmul.mubr.f32.gmra.mrb[128].mxu1 %v2676_v50 }
 0x6d9   : > { %2785 = vmatprep.mubr.f32.mxu1 %v2679_v51  ;;  %8216 = vmatpush3.bf16.msra.mxu1 %v8213_v3 }
 0x6da   : > { %7209 = vmatprep.subr.msk.mxu1 %vm2920_vm1, %v2876_v15 }
 0x6dc   : > { %2786 = vmatmul.mubr.f32.gmra.mrb[130].mxu1 %v2678_v62 }
 0x6dd   : > { %2790 = vmatprep.mubr.f32.mxu1 %v2681_v6  ;;  %7210 = vmatpush3.msk.msra.mxu1 %vm2920_vm1, %v2876_v15 }
 0x6e0   : > { %2791 = vmatmul.mubr.f32.gmra.mrb[132].mxu1 %v2680_v10 }
 0x6e1   : > { %2795 = vmatprep.mubr.f32.mxu1 %v2683_v53 }
 0x6e4   : > { %2796 = vmatmul.mubr.f32.gmra.mrb[134].mxu1 %v2682_v31 }
 0x6e5   : > { %2800 = vmatprep.mubr.f32.mxu1 %v2685_v7 }
 0x6e8   : > { %2801 = vmatmul.mubr.f32.gmra.mrb[136].mxu1 %v2684_v40 }
 0x6e9   : > { %2805 = vmatprep.mubr.f32.mxu1 %v2687_v33 }
 0x6ec   : > { %2806 = vmatmul.mubr.f32.gmra.mrb[138].mxu1 %v2686_v0 }
 0x6ed   : > { %2810 = vmatprep.mubr.f32.mxu1 %v2689_v47 }
 0x6f0   : > { %2811 = vmatmul.mubr.f32.gmra.mrb[140].mxu1 %v2688_v60 }
 0x6f1   : > { %2815 = vmatprep.mubr.f32.mxu1 %v2691_v11 }
 0x6f4   : > { %2816 = vmatmul.mubr.f32.gmra.mrb[142].mxu1 %v2690_v5 }
 0x6f5   : > { %2820 = vmatprep.mubr.f32.mxu1 %v2693_v17 }
 0x6f8   : > { %2821 = vmatmul.mubr.f32.gmra.mrb[144].mxu1 %v2692_v4 }
 0x6f9   : > { %2825 = vmatprep.mubr.f32.mxu1 %v2695_v54 }
 0x6fc   : > { %2826 = vmatmul.mubr.f32.gmra.mrb[146].mxu1 %v2694_v59 }
 0x79b   : > { %v6434_v35 = vpop.f32.mrb[120].mxu1 }
 0x79c   : > { %v6435_v19 = vpop.f32.mrb[121].mxu1 }
 0x79d   : > { %v6436_v29 = vadd.f32 %v6435_v19, %v6434_v35 }
 0x79f   : > { %v2831_v25 = vadd.f32 %v6436_v29, %v10481_v16  ;;  %v6437_v27 = vpop.f32.mrb[122].mxu1 }
 0x7a0   : > { %v6438_v24 = vpop.f32.mrb[123].mxu1 }
 0x7a1   : > { %v10530_v1 = vadd.f32 %v10526_v30, %v2831_v25  ;;  %v6439_v22 = vadd.f32 %v6438_v24, %v6437_v27 }
 0x7a3   : > { %v2832_v37 = vadd.f32 %v6439_v22, %v10484_v8  ;;  %v6440_v39 = vpop.f32.mrb[124].mxu1  ;;  %7211 = vmatprep.mubr.msk.f32.mxu1 %vm2877_vm2, %v10530_v1  ;;  %7254 = vmatprep.mubr.msk.f32.mxu0 %vm2877_vm2, %v10530_v1 }
 0x7a4   : > { %v6441_v41 = vpop.f32.mrb[125].mxu1 }
 0x7a5   : > { %v10538_v42 = vadd.f32 %v10526_v30, %v2832_v37  ;;  %v6442_v16 = vadd.f32 %v6441_v41, %v6440_v39  ;;  %v9267_v39 = vmov 0.0|0.0  }
 0x7a6   : > { %8237 = vmatprep.subr.bf16.mxu1 %v9267_v39  ;;  %8258 = vmatprep.subr.bf16.mxu0 %v9267_v39 }
 0x7a7   : > { %v2833_v44 = vadd.f32 %v6442_v16, %v10487_v20  ;;  %v6443_v45 = vpop.f32.mrb[126].mxu1  ;;  %7212 = vmatmul.mubr.msk.f32.vlgmr.msra.gmra.mrb[148].mxu1 %vm2877_vm2, %v10538_v42  ;;  %7255 = vmatmul.mubr.msk.f32.vlgmr.msra.gmra.mrb[152].mxu0 %vm2877_vm2, %v10538_v42 }
 0x7a8   : > { %v6444_v8 = vpop.f32.mrb[127].mxu1 }
 0x7a9   : > { %v10546_v46 = vadd.f32 %v10526_v30, %v2833_v44  ;;  %v6445_v49 = vadd.f32 %v6444_v8, %v6443_v45 }
 0x7ab   : > { %v2834_v50 = vadd.f32 %v6445_v49, %v10490_v28  ;;  %v6446_v51 = vpop.f32.mrb[128].mxu1  ;;  %7214 = vmatprep.mubr.msk.f32.mxu1 %vm2877_vm2, %v10546_v46  ;;  %7257 = vmatprep.mubr.msk.f32.mxu0 %vm2877_vm2, %v10546_v46 }
 0x7ac   : > { %v6447_v20 = vpop.f32.mrb[129].mxu1 }
 0x7ad   : > { %v10554_v62 = vadd.f32 %v10526_v30, %v2834_v50  ;;  %v6448_v6 = vadd.f32 %v6447_v20, %v6446_v51 }
 0x7af   : > { %v2835_v10 = vadd.f32 %v6448_v6, %v10493_v38  ;;  %v6449_v53 = vpop.f32.mrb[130].mxu1  ;;  %7215 = vmatmul.mubr.msk.f32.gmra.mrb[150].mxu1 %vm2877_vm2, %v10554_v62  ;;  %7258 = vmatmul.mubr.msk.f32.gmra.mrb[154].mxu0 %vm2877_vm2, %v10554_v62 }
 0x7b0   : > { %v6450_v28 = vpop.f32.mrb[131].mxu1 }
 0x7b1   : > { %v10562_v31 = vadd.f32 %v10526_v30, %v2835_v10  ;;  %v6451_v7 = vadd.f32 %v6450_v28, %v6449_v53 }
 0x7b3   : > { %v2836_v40 = vadd.f32 %v6451_v7, %v10496_v43  ;;  %v6452_v33 = vpop.f32.mrb[132].mxu1  ;;  %7217 = vmatprep.mubr.msk.f32.mxu1 %vm2877_vm2, %v10562_v31  ;;  %7260 = vmatprep.mubr.msk.f32.mxu0 %vm2877_vm2, %v10562_v31 }
 0x7b4   : > { %v6453_v38 = vpop.f32.mrb[133].mxu1 }
 0x7b5   : > { %v10570_v0 = vadd.f32 %v10526_v30, %v2836_v40  ;;  %v6454_v47 = vadd.f32 %v6453_v38, %v6452_v33 }
 0x7b7   : > { %v2837_v60 = vadd.f32 %v6454_v47, %v10499_v48  ;;  %v6455_v11 = vpop.f32.mrb[134].mxu1  ;;  %7218 = vmatmul.mubr.msk.f32.gmra.mrb[152].mxu1 %vm2877_vm2, %v10570_v0  ;;  %7261 = vmatmul.mubr.msk.f32.gmra.mrb[156].mxu0 %vm2877_vm2, %v10570_v0 }
 0x7b8   : > { %v6456_v43 = vpop.f32.mrb[135].mxu1 }
 0x7b9   : > { %v10578_v5 = vadd.f32 %v10526_v30, %v2837_v60  ;;  %v6457_v17 = vadd.f32 %v6456_v43, %v6455_v11 }
 0x7bb   : > { %v2838_v4 = vadd.f32 %v6457_v17, %v10502_v2  ;;  %v6458_v54 = vpop.f32.mrb[136].mxu1  ;;  %7220 = vmatprep.mubr.msk.f32.mxu1 %vm2877_vm2, %v10578_v5  ;;  %7263 = vmatprep.mubr.msk.f32.mxu0 %vm2877_vm2, %v10578_v5 }
 0x7bc   : > { %v6459_v48 = vpop.f32.mrb[137].mxu1 }
 0x7bd   : > { %v10586_v59 = vadd.f32 %v10526_v30, %v2838_v4  ;;  %v6460_v61 = vadd.f32 %v6459_v48, %v6458_v54 }
 0x7bf   : > { %v2839_v32 = vadd.f32 %v6460_v61, %v10505_v56  ;;  %v6461_v21 = vpop.f32.mrb[138].mxu1  ;;  %7221 = vmatmul.mubr.msk.f32.gmra.mrb[154].mxu1 %vm2877_vm2, %v10586_v59  ;;  %7264 = vmatmul.mubr.msk.f32.gmra.mrb[158].mxu0 %vm2877_vm2, %v10586_v59 }
 0x7c0   : > { %v6462_v2 = vpop.f32.mrb[139].mxu1 }
 0x7c1   : > { %v10594_v63 = vadd.f32 %v10526_v30, %v2839_v32  ;;  %v6463_v34 = vadd.f32 %v6462_v2, %v6461_v21 }
 0x7c3   : > { %v2840_v58 = vadd.f32 %v6463_v34, %v10508_v18  ;;  %v6464_v55 = vpop.f32.mrb[140].mxu1  ;;  %7223 = vmatprep.mubr.msk.f32.mxu1 %vm2877_vm2, %v10594_v63  ;;  %7266 = vmatprep.mubr.msk.f32.mxu0 %vm2877_vm2, %v10594_v63 }
 0x7c4   : > { %v6465_v56 = vpop.f32.mrb[141].mxu1 }
 0x7c5   : > { %v10602_v52 = vadd.f32 %v10526_v30, %v2840_v58  ;;  %v6466_v26 = vadd.f32 %v6465_v56, %v6464_v55 }
 0x7c7   : > { %v2841_v3 = vadd.f32 %v6466_v26, %v10511_v12  ;;  %v6467_v14 = vpop.f32.mrb[142].mxu1  ;;  %7224 = vmatmul.mubr.msk.f32.gmra.mrb[156].mxu1 %vm2877_vm2, %v10602_v52  ;;  %7267 = vmatmul.mubr.msk.f32.gmra.mrb[160].mxu0 %vm2877_vm2, %v10602_v52 }
 0x7c8   : > { %v6468_v18 = vpop.f32.mrb[143].mxu1 }
 0x7c9   : > { %v10610_v13 = vadd.f32 %v10526_v30, %v2841_v3  ;;  %v6469_v15 = vadd.f32 %v6468_v18, %v6467_v14  ;;  %v3432_v14 = vld [vmem:[#allocation10 + $0xb0] sm:$0xff]  ;;  %v3433_v18 = vld [vmem:[#allocation10 + $0xb8] sm:$0xff] }
 0x7cb   : > { %v2842_v23 = vadd.f32 %v6469_v15, %v10514_v36  ;;  %v6470_v35 = vpop.f32.mrb[144].mxu1  ;;  %7226 = vmatprep.mubr.msk.f32.mxu1 %vm2877_vm2, %v10610_v13  ;;  %7269 = vmatprep.mubr.msk.f32.mxu0 %vm2877_vm2, %v10610_v13 }
 0x7cc   : > { %v6471_v12 = vpop.f32.mrb[145].mxu1 }
 0x7cd   : > { %v10618_v19 = vadd.f32 %v10526_v30, %v2842_v23  ;;  %v6472_v29 = vadd.f32 %v6471_v12, %v6470_v35 }
 0x7cf   : > { %v2843_v25 = vadd.f32 %v6472_v29, %v10517_v57  ;;  %v6473_v27 = vpop.f32.mrb[146].mxu1  ;;  %7227 = vmatmul.mubr.msk.f32.gmra.mrb[158].mxu1 %vm2877_vm2, %v10618_v19  ;;  %7270 = vmatmul.mubr.msk.f32.gmra.mrb[162].mxu0 %vm2877_vm2, %v10618_v19  ;;  %v8279_v29 = vpack.c.bf16 %v3433_v18, %v3432_v14  ;;  %v3964_v14 = vld [vmem:[#allocation10 + $0x160] sm:$0xff]  ;;  %v3965_v18 = vld [vmem:[#allocation10 + $0x168] sm:$0xff] }
 0x7d0   : > { %v6474_v36 = vpop.f32.mrb[147].mxu1 }
 0x7d1   : > { %v10626_v24 = vadd.f32 %v10526_v30, %v2843_v25  ;;  %v6475_v22 = vadd.f32 %v6474_v36, %v6473_v27  ;;  %v3434_v36 = vld [vmem:[#allocation10 + $0xc0] sm:$0xff] }
 0x7d3   : > { %v2844_v37 = vadd.f32 %v6475_v22, %v10520_v9  ;;  %7229 = vmatprep.mubr.msk.f32.mxu1 %vm2877_vm2, %v10626_v24  ;;  %7272 = vmatprep.mubr.msk.f32.mxu0 %vm2877_vm2, %v10626_v24  ;;  %v9269_v9 = vmov 0.0   ;;  %v3435_v22 = vld [vmem:[#allocation10 + $0xc8] sm:$0xff] }
 0x7d5   : > { %v10634_v57 = vadd.f32 %v10526_v30, %v2844_v37  ;;  %v3215_v37 = vld [vmem:[#allocation11 + $0x28] sm:$0xff] }
 0x7d7   : > { %7230 = vmatmul.mubr.msk.f32.gmra.mrb[160].mxu1 %vm2877_vm2, %v10634_v57  ;;  %7273 = vmatmul.mubr.msk.f32.gmra.mrb[164].mxu0 %vm2877_vm2, %v10634_v57 }
 0x7d8   : > { %7303 = vmatprep.mubr.msk.f32.mxu1 %vm9268_vm3, %v9269_v9  ;;  %7346 = vmatprep.mubr.msk.f32.mxu0 %vm9268_vm3, %v9269_v9 }
 0x87a   : > { %v7213_v30 = vpop.f32.mrb[148].mxu1  ;;  %v7256_v41 = vpop.f32.mrb[152].mxu0 }
 0x87b   : > { %v2990_v16 = vpop.f32.mrb[149].mxu1  ;;  %v3145_v44 = vpop.f32.mrb[153].mxu0 }
 0x87c   : > { %v8259_v45 = vpack.c.bf16 %v7213_v30, %v2990_v16  ;;  %v8238_v8 = vpack.c.bf16 %v7256_v41, %v3145_v44  ;;  %v3059_v30 = vld [vmem:[#allocation11] sm:$0xff]  ;;  %v8283_v41 = vpack.c.bf16 %v3435_v22, %v3434_v36  ;;  %v3436_v16 = vld [vmem:[#allocation10 + $0xd0] sm:$0xff] }
 0x87d   : > { %v3437_v44 = vld [vmem:[#allocation10 + $0xd8] sm:$0xff]  ;;  %v3970_v36 = vld [vmem:[#allocation10 + $0x190] sm:$0xff] }
 0x87e   : > { %8239 = vmatpush3.bf16.msra.mxu1 %v8238_v8  ;;  %8260 = vmatpush3.bf16.msra.mxu0 %v8259_v45  ;;  %v3216_v45 = vld [vmem:[#allocation11 + $0x30] sm:$0xff]  ;;  %v3060_v8 = vld [vmem:[#allocation11 + $0x8] sm:$0xff]  ;;  %v3971_v22 = vld [vmem:[#allocation10 + $0x198] sm:$0xff] }
 0x87f   : > { %8240 = vmatprep.subr.bf16.mxu1 %v9267_v39  ;;  %8261 = vmatprep.subr.bf16.mxu0 %v9267_v39 }
 0x882   : > { %v7216_v49 = vpop.f32.mrb[150].mxu1  ;;  %v7259_v50 = vpop.f32.mrb[154].mxu0 }
 0x883   : > { %v3000_v51 = vpop.f32.mrb[151].mxu1  ;;  %v3155_v20 = vpop.f32.mrb[155].mxu0 }
 0x884   : > { %v8262_v6 = vpack.c.bf16 %v7216_v49, %v3000_v51  ;;  %v8241_v10 = vpack.c.bf16 %v7259_v50, %v3155_v20  ;;  %v8287_v49 = vpack.c.bf16 %v3437_v44, %v3436_v16  ;;  %v3438_v50 = vld [vmem:[#allocation10 + $0xe0] sm:$0xff]  ;;  %v3439_v51 = vld [vmem:[#allocation10 + $0xe8] sm:$0xff]  ;;  %v3217_v20 = vld [vmem:[#allocation11 + $0x38] sm:$0xff] }
 0x885   : > { %v3974_v44 = vld [vmem:[#allocation10 + $0x1b0] sm:$0xf] }
 0x886   : > { %8242 = vmatpush3.bf16.msra.mxu1 %v8241_v10  ;;  %8263 = vmatpush3.bf16.msra.mxu0 %v8262_v6  ;;  %v3061_v6 = vld [vmem:[#allocation11 + $0x10] sm:$0xff]  ;;  %v8291_v10 = vpack.c.bf16 %v3439_v51, %v3438_v50 }
 0x887   : > { %8243 = vmatprep.subr.bf16.mxu1 %v9267_v39  ;;  %8264 = vmatprep.subr.bf16.mxu0 %v9267_v39 }
 0x88a   : > { %v7219_v53 = vpop.f32.mrb[152].mxu1  ;;  %v7262_v28 = vpop.f32.mrb[156].mxu0 }
 0x88b   : > { %v3010_v7 = vpop.f32.mrb[153].mxu1  ;;  %v3165_v40 = vpop.f32.mrb[157].mxu0 }
 0x88c   : > { %v8265_v33 = vpack.c.bf16 %v7219_v53, %v3010_v7  ;;  %v8244_v38 = vpack.c.bf16 %v7262_v28, %v3165_v40  ;;  %v3440_v53 = vld [vmem:[#allocation10 + $0xf0] sm:$0xff]  ;;  %v3441_v28 = vld [vmem:[#allocation10 + $0xf8] sm:$0xff] }
 0x88d   : > { %v3218_v7 = vld [vmem:[#allocation11 + $0x40] sm:$0xff]  ;;  %v3062_v40 = vld [vmem:[#allocation11 + $0x18] sm:$0xff] }
 0x88e   : > { %8245 = vmatpush3.bf16.msra.mxu1 %v8244_v38  ;;  %8266 = vmatpush3.bf16.msra.mxu0 %v8265_v33  ;;  %v8295_v33 = vpack.c.bf16 %v3441_v28, %v3440_v53  ;;  %v3219_v38 = vld [vmem:[#allocation11 + $0x48] sm:$0xff] }
 0x88f   : > { %8246 = vmatprep.subr.bf16.mxu1 %v9267_v39  ;;  %8267 = vmatprep.subr.bf16.mxu0 %v9267_v39 }
 0x892   : > { %v7222_v47 = vpop.f32.mrb[154].mxu1  ;;  %v7265_v60 = vpop.f32.mrb[158].mxu0 }
 0x893   : > { %v3020_v11 = vpop.f32.mrb[155].mxu1  ;;  %v3175_v43 = vpop.f32.mrb[159].mxu0 }
 0x894   : > { %v8268_v17 = vpack.c.bf16 %v7222_v47, %v3020_v11  ;;  %v8247_v4 = vpack.c.bf16 %v7265_v60, %v3175_v43  ;;  %v3063_v47 = vld [vmem:[#allocation11 + $0x20] sm:$0xff]  ;;  %v3442_v60 = vld [vmem:[#allocation10 + $0x100] sm:$0xf]  ;;  %v3698_v11 = vld [vmem:[#allocation10 + $0x108] sm:$0xff] }
 0x895   : > { %v3699_v43 = vld [vmem:[#allocation10 + $0x110] sm:$0xff] }
 0x896   : > { %8248 = vmatpush3.bf16.msra.mxu1 %v8247_v4  ;;  %8269 = vmatpush3.bf16.msra.mxu0 %v8268_v17  ;;  %v3700_v17 = vld [vmem:[#allocation10 + $0x118] sm:$0xff]  ;;  %v3701_v4 = vld [vmem:[#allocation10 + $0x120] sm:$0xff] }
 0x897   : > { %8249 = vmatprep.subr.bf16.mxu1 %v9267_v39  ;;  %8270 = vmatprep.subr.bf16.mxu0 %v9267_v39 }
 0x89a   : > { %v7225_v54 = vpop.f32.mrb[156].mxu1  ;;  %v7268_v48 = vpop.f32.mrb[160].mxu0 }
 0x89b   : > { %v3030_v61 = vpop.f32.mrb[157].mxu1  ;;  %v3185_v32 = vpop.f32.mrb[161].mxu0 }
 0x89c   : > { %v8271_v21 = vpack.c.bf16 %v7225_v54, %v3030_v61  ;;  %v8250_v2 = vpack.c.bf16 %v7268_v48, %v3185_v32  ;;  %v8320_v54 = vpack.c.bf16 %v3699_v43, %v3698_v11  ;;  %v8324_v48 = vpack.c.bf16 %v3701_v4, %v3700_v17  ;;  %v3702_v61 = vld [vmem:[#allocation10 + $0x128] sm:$0xff]  ;;  %v3703_v32 = vld [vmem:[#allocation10 + $0x130] sm:$0xff] }
 0x89e   : > { %8251 = vmatpush3.bf16.msra.mxu1 %v8250_v2  ;;  %8272 = vmatpush3.bf16.msra.mxu0 %v8271_v21  ;;  %v8328_v21 = vpack.c.bf16 %v3703_v32, %v3702_v61  ;;  %v3704_v2 = vld [vmem:[#allocation10 + $0x138] sm:$0xff] }
 0x89f   : > { %8252 = vmatprep.subr.bf16.mxu1 %v9267_v39  ;;  %8273 = vmatprep.subr.bf16.mxu0 %v9267_v39 }
 0x8a2   : > { %v7228_v34 = vpop.f32.mrb[158].mxu1  ;;  %v7271_v58 = vpop.f32.mrb[162].mxu0 }
 0x8a3   : > { %v3040_v55 = vpop.f32.mrb[159].mxu1  ;;  %v3195_v56 = vpop.f32.mrb[163].mxu0 }
 0x8a4   : > { %v8274_v26 = vpack.c.bf16 %v7228_v34, %v3040_v55  ;;  %v8253_v3 = vpack.c.bf16 %v7271_v58, %v3195_v56  ;;  %v3705_v34 = vld [vmem:[#allocation10 + $0x140] sm:$0xff]  ;;  %v3706_v55 = vld [vmem:[#allocation10 + $0x148] sm:$0xff]  ;;  %v3707_v56 = vld [vmem:[#allocation10 + $0x150] sm:$0xff] }
 0x8a5   : > { %v8332_v58 = vpack.c.bf16 %v3705_v34, %v3704_v2 }
 0x8a6   : > { %8254 = vmatpush3.bf16.msra.mxu1 %v8253_v3  ;;  %8275 = vmatpush3.bf16.msra.mxu0 %v8274_v26  ;;  %v8336_v26 = vpack.c.bf16 %v3707_v56, %v3706_v55  ;;  %v3708_v3 = vld [vmem:[#allocation10 + $0x158] sm:$0xf] }
 0x8a7   : > { %8255 = vmatprep.subr.bf16.mxu1 %v9267_v39  ;;  %8276 = vmatprep.subr.bf16.mxu0 %v9267_v39 }
 0x8aa   : > { %v7231_v15 = vpop.f32.mrb[160].mxu1  ;;  %v7274_v23 = vpop.f32.mrb[164].mxu0 }
 0x8ab   : > { %v3050_v35 = vpop.f32.mrb[161].mxu1  ;;  %v3205_v12 = vpop.f32.mrb[165].mxu0 }
 0x8ac   : > { %v8277_v25 = vpack.c.bf16 %v7231_v15, %v3050_v35  ;;  %v8256_v27 = vpack.c.bf16 %v7274_v23, %v3205_v12  ;;  %v8361_v15 = vpack.c.bf16 %v3965_v18, %v3964_v14  ;;  %v3966_v23 = vld [vmem:[#allocation10 + $0x170] sm:$0xff]  ;;  %v3967_v35 = vld [vmem:[#allocation10 + $0x178] sm:$0xff]  ;;  %v3582_v18 = vld [vmem:[#allocation11 + $0x50] sm:$0xff] }
 0x8ad   : > { %v8365_v12 = vpack.c.bf16 %v3967_v35, %v3966_v23 }
 0x8ae   : > { %8257 = vmatpush3.bf16.msra.mxu1 %v8256_v27  ;;  %8278 = vmatpush3.bf16.msra.mxu0 %v8277_v25  ;;  %v3969_v25 = vld [vmem:[#allocation10 + $0x188] sm:$0xff] }
 0x8af   : > { %8280 = vmatprep.subr.bf16.mxu1 %v8279_v29  ;;  %8299 = vmatprep.subr.bf16.mxu0 %v9267_v39 }
 0x8b1   : > { %7304 = vmatmul.mubr.msk.f32.vlgmr.msra.gmra.mrb[162].mxu1 %vm3220_vm4, %v3215_v37  ;;  %7347 = vmatmul.mubr.msk.f32.vlgmr.msra.gmra.mrb[166].mxu0 %vm3220_vm4, %v3059_v30  ;;  %v8373_v37 = vpack.c.bf16 %v3971_v22, %v3970_v36  ;;  %v3972_v30 = vld [vmem:[#allocation10 + $0x1a0] sm:$0xff]  ;;  %v3584_v36 = vld [vmem:[#allocation11 + $0x60] sm:$0xff] }
 0x8b2   : > { %8282 = vmatpush3.bf16.msra.mxu1 %v8279_v29  ;;  %7306 = vmatprep.mubr.msk.f32.mxu1 %vm9268_vm3, %v9269_v9  ;;  %v3968_v29 = vld [vmem:[#allocation10 + $0x180] sm:$0xff] }
 0x8b3   : > { %8284 = vmatprep.subr.bf16.mxu1 %v8283_v41  ;;  %7349 = vmatprep.mubr.msk.f32.mxu0 %vm9268_vm3, %v9269_v9  ;;  %v8369_v27 = vpack.c.bf16 %v3969_v25, %v3968_v29 }
 0x8b5   : > { %7307 = vmatmul.mubr.msk.f32.gmra.mrb[164].mxu1 %vm3220_vm4, %v3216_v45  ;;  %7350 = vmatmul.mubr.msk.f32.gmra.mrb[168].mxu0 %vm3220_vm4, %v3060_v8 }
 0x8b6   : > { %8286 = vmatpush3.bf16.msra.mxu1 %v8283_v41  ;;  %7309 = vmatprep.mubr.msk.f32.mxu1 %vm9268_vm3, %v9269_v9  ;;  %v3973_v41 = vld [vmem:[#allocation10 + $0x1a8] sm:$0xff] }
 0x8b7   : > { %8288 = vmatprep.subr.bf16.mxu1 %v8287_v49  ;;  %7352 = vmatprep.mubr.msk.f32.mxu0 %vm9268_vm3, %v9269_v9  ;;  %v8377_v16 = vpack.c.bf16 %v3973_v41, %v3972_v30  ;;  %v3585_v41 = vld [vmem:[#allocation11 + $0x68] sm:$0xff] }
 0x8b9   : > { %7310 = vmatmul.mubr.msk.f32.gmra.mrb[166].mxu1 %vm3220_vm4, %v3217_v20  ;;  %7353 = vmatmul.mubr.msk.f32.gmra.mrb[170].mxu0 %vm3220_vm4, %v3061_v6 }
 0x8ba   : > { %8290 = vmatpush3.bf16.msra.mxu1 %v8287_v49  ;;  %7312 = vmatprep.mubr.msk.f32.mxu1 %vm9268_vm3, %v9269_v9 }
 0x8bb   : > { %8292 = vmatprep.subr.bf16.mxu1 %v8291_v10  ;;  %7355 = vmatprep.mubr.msk.f32.mxu0 %vm9268_vm3, %v9269_v9 }
 0x8bd   : > { %7313 = vmatmul.mubr.msk.f32.gmra.mrb[168].mxu1 %vm3220_vm4, %v3218_v7  ;;  %7356 = vmatmul.mubr.msk.f32.gmra.mrb[172].mxu0 %vm3220_vm4, %v3062_v40 }
 0x8be   : > { %8294 = vmatpush3.bf16.msra.mxu1 %v8291_v10  ;;  %7315 = vmatprep.mubr.msk.f32.mxu1 %vm9268_vm3, %v9269_v9 }
 0x8bf   : > { %8296 = vmatprep.subr.bf16.mxu1 %v8295_v33  ;;  %7358 = vmatprep.mubr.msk.f32.mxu0 %vm9268_vm3, %v9269_v9 }
 0x8c1   : > { %7316 = vmatmul.mubr.msk.f32.gmra.mrb[170].mxu1 %vm3220_vm4, %v3219_v38  ;;  %7359 = vmatmul.mubr.msk.f32.gmra.mrb[174].mxu0 %vm3220_vm4, %v3063_v47 }
 0x8c2   : > { %8298 = vmatpush3.bf16.msra.mxu1 %v8295_v33  ;;  %7383 = vmatprep.mubr.msk.f32.mxu1 %vm2877_vm2, %v10530_v1 }
 0x8c3   : > { %7381 = vmatprep.subr.msk.mxu1 %vm2920_vm1, %v3442_v60  ;;  %7432 = vmatprep.mubr.msk.f32.mxu0 %vm9268_vm3, %v9269_v9 }
 0x8c6   : > { %7382 = vmatpush3.msk.msra.mxu1 %vm2920_vm1, %v3442_v60 }
 0x8c7   : > { %7384 = vmatmul.mubr.msk.f32.vlgmr.msra.gmra.mrb[172].mxu1 %vm2877_vm2, %v10538_v42  ;;  %8321 = vmatprep.subr.bf16.mxu1 %v8320_v54 }
 0x8c8   : > { %7386 = vmatprep.mubr.msk.f32.mxu1 %vm2877_vm2, %v10546_v46  ;;  %8323 = vmatpush3.bf16.msra.mxu1 %v8320_v54 }
 0x8c9   : > { %8325 = vmatprep.subr.bf16.mxu1 %v8324_v48 }
 0x8cb   : > { %7387 = vmatmul.mubr.msk.f32.gmra.mrb[174].mxu1 %vm2877_vm2, %v10554_v62 }
 0x8cc   : > { %7389 = vmatprep.mubr.msk.f32.mxu1 %vm2877_vm2, %v10562_v31  ;;  %8327 = vmatpush3.bf16.msra.mxu1 %v8324_v48 }
 0x8cd   : > { %8329 = vmatprep.subr.bf16.mxu1 %v8328_v21 }
 0x8cf   : > { %7390 = vmatmul.mubr.msk.f32.gmra.mrb[176].mxu1 %vm2877_vm2, %v10570_v0 }
 0x8d0   : > { %7392 = vmatprep.mubr.msk.f32.mxu1 %vm2877_vm2, %v10578_v5  ;;  %8331 = vmatpush3.bf16.msra.mxu1 %v8328_v21 }
 0x8d1   : > { %8333 = vmatprep.subr.bf16.mxu1 %v8332_v58 }
 0x8d3   : > { %7393 = vmatmul.mubr.msk.f32.gmra.mrb[178].mxu1 %vm2877_vm2, %v10586_v59 }
 0x8d4   : > { %7395 = vmatprep.mubr.msk.f32.mxu1 %vm2877_vm2, %v10594_v63  ;;  %8335 = vmatpush3.bf16.msra.mxu1 %v8332_v58 }
 0x8d5   : > { %8337 = vmatprep.subr.bf16.mxu1 %v8336_v26 }
 0x8d7   : > { %7396 = vmatmul.mubr.msk.f32.gmra.mrb[180].mxu1 %vm2877_vm2, %v10602_v52 }
 0x8d8   : > { %7398 = vmatprep.mubr.msk.f32.mxu1 %vm2877_vm2, %v10610_v13  ;;  %8339 = vmatpush3.bf16.msra.mxu1 %v8336_v26 }
 0x8d9   : > { %7467 = vmatprep.subr.msk.mxu1 %vm2920_vm1, %v3708_v3 }
 0x8db   : > { %7399 = vmatmul.mubr.msk.f32.gmra.mrb[182].mxu1 %vm2877_vm2, %v10618_v19 }
 0x8dc   : > { %7401 = vmatprep.mubr.msk.f32.mxu1 %vm2877_vm2, %v10626_v24  ;;  %7468 = vmatpush3.msk.msra.mxu1 %vm2920_vm1, %v3708_v3 }
 0x8dd   : > { %8362 = vmatprep.subr.bf16.mxu1 %v8361_v15 }
 0x8df   : > { %7402 = vmatmul.mubr.msk.f32.gmra.mrb[184].mxu1 %vm2877_vm2, %v10634_v57 }
 0x8e0   : > { %7469 = vmatprep.mubr.msk.f32.mxu1 %vm2877_vm2, %v10530_v1 }
 0x8e3   : > { %7470 = vmatmul.mubr.msk.f32.vlgmr.msra.gmra.mrb[186].mxu1 %vm2877_vm2, %v10538_v42 }
 0x8e4   : > { %7472 = vmatprep.mubr.msk.f32.mxu1 %vm2877_vm2, %v10546_v46  ;;  %8364 = vmatpush3.bf16.msra.mxu1 %v8361_v15 }
 0x8e5   : > { %8366 = vmatprep.subr.bf16.mxu1 %v8365_v12 }
 0x8e7   : > { %7473 = vmatmul.mubr.msk.f32.gmra.mrb[188].mxu1 %vm2877_vm2, %v10554_v62 }
 0x8e8   : > { %7475 = vmatprep.mubr.msk.f32.mxu1 %vm2877_vm2, %v10562_v31  ;;  %8368 = vmatpush3.bf16.msra.mxu1 %v8365_v12  ;;  %v3583_v12 = vld [vmem:[#allocation11 + $0x58] sm:$0xff] }
 0x8e9   : > { %8370 = vmatprep.subr.bf16.mxu1 %v8369_v27 }
 0x8eb   : > { %7476 = vmatmul.mubr.msk.f32.gmra.mrb[190].mxu1 %vm2877_vm2, %v10570_v0 }
 0x8ec   : > { %7478 = vmatprep.mubr.msk.f32.mxu1 %vm2877_vm2, %v10578_v5  ;;  %8372 = vmatpush3.bf16.msra.mxu1 %v8369_v27 }
 0x8ed   : > { %8374 = vmatprep.subr.bf16.mxu1 %v8373_v37 }
 0x8ef   : > { %7479 = vmatmul.mubr.msk.f32.gmra.mrb[192].mxu1 %vm2877_vm2, %v10586_v59 }
 0x8f0   : > { %7481 = vmatprep.mubr.msk.f32.mxu1 %vm2877_vm2, %v10594_v63  ;;  %8376 = vmatpush3.bf16.msra.mxu1 %v8373_v37 }
 0x8f1   : > { %8378 = vmatprep.subr.bf16.mxu1 %v8377_v16 }
 0x8f3   : > { %7482 = vmatmul.mubr.msk.f32.gmra.mrb[194].mxu1 %vm2877_vm2, %v10602_v52 }
 0x8f4   : > { %7484 = vmatprep.mubr.msk.f32.mxu1 %vm2877_vm2, %v10610_v13  ;;  %8380 = vmatpush3.bf16.msra.mxu1 %v8377_v16 }
 0x8f5   : > { %7553 = vmatprep.subr.msk.mxu1 %vm2920_vm1, %v3974_v44 }
 0x8f7   : > { %7485 = vmatmul.mubr.msk.f32.gmra.mrb[196].mxu1 %vm2877_vm2, %v10618_v19 }
 0x8f8   : > { %7487 = vmatprep.mubr.msk.f32.mxu1 %vm2877_vm2, %v10626_v24  ;;  %7554 = vmatpush3.msk.msra.mxu1 %vm2920_vm1, %v3974_v44 }
 0x8f9   : > { %8402 = vmatprep.subr.bf16.mxu1 %v9267_v39 }
 0x8fb   : > { %7488 = vmatmul.mubr.msk.f32.gmra.mrb[198].mxu1 %vm2877_vm2, %v10634_v57 }
 0x8fc   : > { %7555 = vmatprep.mubr.msk.f32.mxu1 %vm2877_vm2, %v10530_v1 }
 0x8ff   : > { %7556 = vmatmul.mubr.msk.f32.vlgmr.msra.gmra.mrb[200].mxu1 %vm2877_vm2, %v10538_v42 }
 0x900   : > { %7558 = vmatprep.mubr.msk.f32.mxu1 %vm2877_vm2, %v10546_v46 }
 0x903   : > { %7559 = vmatmul.mubr.msk.f32.gmra.mrb[202].mxu1 %vm2877_vm2, %v10554_v62 }
 0x904   : > { %7561 = vmatprep.mubr.msk.f32.mxu1 %vm2877_vm2, %v10562_v31 }
 0x907   : > { %7562 = vmatmul.mubr.msk.f32.gmra.mrb[204].mxu1 %vm2877_vm2, %v10570_v0 }
 0x908   : > { %7564 = vmatprep.mubr.msk.f32.mxu1 %vm2877_vm2, %v10578_v5 }
 0x90b   : > { %7565 = vmatmul.mubr.msk.f32.gmra.mrb[206].mxu1 %vm2877_vm2, %v10586_v59 }
 0x90c   : > { %7567 = vmatprep.mubr.msk.f32.mxu1 %vm2877_vm2, %v10594_v63 }
 0x90f   : > { %7568 = vmatmul.mubr.msk.f32.gmra.mrb[208].mxu1 %vm2877_vm2, %v10602_v52 }
 0x910   : > { %7570 = vmatprep.mubr.msk.f32.mxu1 %vm2877_vm2, %v10610_v13 }
 0x913   : > { %7571 = vmatmul.mubr.msk.f32.gmra.mrb[210].mxu1 %vm2877_vm2, %v10618_v19 }
 0x914   : > { %7573 = vmatprep.mubr.msk.f32.mxu1 %vm2877_vm2, %v10626_v24 }
 0x917   : > { %7574 = vmatmul.mubr.msk.f32.gmra.mrb[212].mxu1 %vm2877_vm2, %v10634_v57 }
 0x918   : > { %7639 = vmatprep.mubr.msk.f32.mxu1 %vm9268_vm3, %v9269_v9 }
 0x984   : > { %v3302_v1 = vpop.f32.mrb[162].mxu1  ;;  %v3407_v42 = vpop.f32.mrb[166].mxu0 }
 0x985   : > { %v7305_v46 = vpop.f32.mrb[163].mxu1  ;;  %v10780_v62 = vadd.f32 %v3407_v42, %v3302_v1  ;;  %v7348_v31 = vpop.f32.mrb[167].mxu0  ;;  %v3586_v42 = vld [vmem:[#allocation11 + $0x70] sm:$0xff] }
 0x988   : > { %v3307_v0 = vpop.f32.mrb[164].mxu1  ;;  %v3412_v5 = vpop.f32.mrb[168].mxu0 }
 0x989   : > { %v7308_v59 = vpop.f32.mrb[165].mxu1  ;;  %v10782_v63 = vadd.f32 %v3412_v5, %v3307_v0  ;;  %v7351_v52 = vpop.f32.mrb[169].mxu0 }
 0x98c   : > { %v3312_v13 = vpop.f32.mrb[166].mxu1  ;;  %v3417_v19 = vpop.f32.mrb[170].mxu0 }
 0x98d   : > { %v7311_v24 = vpop.f32.mrb[167].mxu1  ;;  %v10784_v45 = vadd.f32 %v3417_v19, %v3312_v13  ;;  %v7354_v57 = vpop.f32.mrb[171].mxu0 }
 0x98e   : > { %v3848_v57 = vld [vmem:[#allocation11 + $0x78] sm:$0xff] }
 0x990   : > { %v3317_v8 = vpop.f32.mrb[168].mxu1  ;;  %v3422_v49 = vpop.f32.mrb[172].mxu0 }
 0x991   : > { %v7314_v50 = vpop.f32.mrb[169].mxu1  ;;  %v10786_v51 = vadd.f32 %v3422_v49, %v3317_v8  ;;  %v7357_v20 = vpop.f32.mrb[173].mxu0 }
 0x992   : > { %v3849_v20 = vld [vmem:[#allocation11 + $0x80] sm:$0xff] }
 0x994   : > { %v3322_v6 = vpop.f32.mrb[170].mxu1  ;;  %v3427_v10 = vpop.f32.mrb[174].mxu0 }
 0x995   : > { %v7317_v53 = vpop.f32.mrb[171].mxu1  ;;  %v10788_v28 = vadd.f32 %v3427_v10, %v3322_v6  ;;  %v7360_v7 = vpop.f32.mrb[175].mxu0 }
 0x996   : > { %v3850_v7 = vld [vmem:[#allocation11 + $0x88] sm:$0xff] }
 0x99a   : > { %v7385_v40 = vpop.f32.mrb[172].mxu1 }
 0x99b   : > { %v3512_v33 = vpop.f32.mrb[173].mxu1 }
 0x99c   : > { %v8300_v38 = vpack.c.bf16 %v7385_v40, %v3512_v33 }
 0x99e   : > { %v7388_v47 = vpop.f32.mrb[174].mxu1  ;;  %8301 = vmatpush3.bf16.msra.mxu0 %v8300_v38 }
 0x99f   : > { %v3522_v60 = vpop.f32.mrb[175].mxu1  ;;  %8302 = vmatprep.subr.bf16.mxu0 %v9267_v39 }
 0x9a0   : > { %v8303_v11 = vpack.c.bf16 %v7388_v47, %v3522_v60  ;;  %v3851_v47 = vld [vmem:[#allocation11 + $0x90] sm:$0xff] }
 0x9a2   : > { %v7391_v43 = vpop.f32.mrb[176].mxu1  ;;  %8304 = vmatpush3.bf16.msra.mxu0 %v8303_v11 }
 0x9a3   : > { %v3532_v17 = vpop.f32.mrb[177].mxu1  ;;  %8305 = vmatprep.subr.bf16.mxu0 %v9267_v39 }
 0x9a4   : > { %v8306_v4 = vpack.c.bf16 %v7391_v43, %v3532_v17  ;;  %v3852_v17 = vld [vmem:[#allocation11 + $0x98] sm:$0xff] }
 0x9a6   : > { %v7394_v54 = vpop.f32.mrb[178].mxu1  ;;  %8307 = vmatpush3.bf16.msra.mxu0 %v8306_v4 }
 0x9a7   : > { %v3542_v48 = vpop.f32.mrb[179].mxu1  ;;  %8308 = vmatprep.subr.bf16.mxu0 %v9267_v39 }
 0x9a8   : > { %v8309_v61 = vpack.c.bf16 %v7394_v54, %v3542_v48 }
 0x9aa   : > { %v7397_v32 = vpop.f32.mrb[180].mxu1  ;;  %8310 = vmatpush3.bf16.msra.mxu0 %v8309_v61 }
 0x9ab   : > { %v3552_v21 = vpop.f32.mrb[181].mxu1  ;;  %8311 = vmatprep.subr.bf16.mxu0 %v9267_v39 }
 0x9ac   : > { %v8312_v2 = vpack.c.bf16 %v7397_v32, %v3552_v21 }
 0x9ae   : > { %v7400_v34 = vpop.f32.mrb[182].mxu1  ;;  %8313 = vmatpush3.bf16.msra.mxu0 %v8312_v2 }
 0x9af   : > { %v3562_v58 = vpop.f32.mrb[183].mxu1  ;;  %8314 = vmatprep.subr.bf16.mxu0 %v9267_v39 }
 0x9b0   : > { %v8315_v55 = vpack.c.bf16 %v7400_v34, %v3562_v58  ;;  %v4114_v58 = vld [vmem:[#allocation11 + $0xa0] sm:$0xff] }
 0x9b2   : > { %v7403_v56 = vpop.f32.mrb[184].mxu1  ;;  %8316 = vmatpush3.bf16.msra.mxu0 %v8315_v55  ;;  %v4115_v55 = vld [vmem:[#allocation11 + $0xa8] sm:$0xff] }
 0x9b3   : > { %v3572_v26 = vpop.f32.mrb[185].mxu1  ;;  %8317 = vmatprep.subr.bf16.mxu0 %v9267_v39 }
 0x9b4   : > { %v8318_v3 = vpack.c.bf16 %v7403_v56, %v3572_v26  ;;  %v4116_v56 = vld [vmem:[#allocation11 + $0xb0] sm:$0xff]  ;;  %v4117_v26 = vld [vmem:[#allocation11 + $0xb8] sm:$0xff] }
 0x9b6   : > { %8319 = vmatpush3.bf16.msra.mxu0 %v8318_v3  ;;  %v7471_v14 = vpop.f32.mrb[186].mxu1  ;;  %v4118_v3 = vld [vmem:[#allocation11 + $0xc0] sm:$0xff] }
 0x9b7   : > { %v3778_v15 = vpop.f32.mrb[187].mxu1  ;;  %8340 = vmatprep.subr.bf16.mxu0 %v9267_v39 }
 0x9b8   : > { %v8341_v23 = vpack.c.bf16 %v7471_v14, %v3778_v15  ;;  %v4241_v14 = vld [vmem:[#allocation14] sm:$0xff]  ;;  %v4359_v15 = vld [vmem:[#allocation14 + $0x50] sm:$0xff] }
 0x9b9   : > { %7433 = vmatmul.mubr.msk.f32.vlgmr.msra.gmra.mrb[176].mxu0 %vm3220_vm4, %v3582_v18  ;;  %v4242_v18 = vld [vmem:[#allocation14 + $0x8] sm:$0xff] }
 0x9ba   : > { %v7474_v35 = vpop.f32.mrb[188].mxu1  ;;  %8342 = vmatpush3.bf16.msra.mxu0 %v8341_v23  ;;  %7435 = vmatprep.mubr.msk.f32.mxu0 %vm9268_vm3, %v9269_v9  ;;  %v8403_v23 = vpack.c.bf16 %v4242_v18, %v4241_v14  ;;  %v5844_v14 = vld [vmem:[#allocation13] ss:$0 sm:$0xff] }
 0x9bb   : > { %v3788_v29 = vpop.f32.mrb[189].mxu1  ;;  %8343 = vmatprep.subr.bf16.mxu0 %v9267_v39 }
 0x9bc   : > { %v8344_v25 = vpack.c.bf16 %v7474_v35, %v3788_v29  ;;  %v4360_v35 = vld [vmem:[#allocation14 + $0x58] sm:$0xff]  ;;  %8404 = vmatpush3.bf16.msra.mxu1 %v8403_v23  ;;  %v4243_v29 = vld [vmem:[#allocation14 + $0x10] sm:$0xff] }
 0x9bd   : > { %7436 = vmatmul.mubr.msk.f32.gmra.mrb[178].mxu0 %vm3220_vm4, %v3583_v12  ;;  %v8418_v12 = vpack.c.bf16 %v4360_v35, %v4359_v15  ;;  %8405 = vmatprep.subr.bf16.mxu1 %v9267_v39 }
 0x9be   : > { %v7477_v27 = vpop.f32.mrb[190].mxu1  ;;  %8345 = vmatpush3.bf16.msra.mxu0 %v8344_v25  ;;  %7438 = vmatprep.mubr.msk.f32.mxu0 %vm9268_vm3, %v9269_v9  ;;  %v4244_v25 = vld [vmem:[#allocation14 + $0x18] sm:$0xff] }
 0x9bf   : > { %v3798_v22 = vpop.f32.mrb[191].mxu1  ;;  %8346 = vmatprep.subr.bf16.mxu0 %v9267_v39 }
 0x9c0   : > { %v8347_v37 = vpack.c.bf16 %v7477_v27, %v3798_v22  ;;  %v4361_v27 = vld [vmem:[#allocation14 + $0x60] sm:$0xff]  ;;  %v4362_v22 = vld [vmem:[#allocation14 + $0x68] sm:$0xff] }
 0x9c1   : > { %7439 = vmatmul.mubr.msk.f32.gmra.mrb[180].mxu0 %vm3220_vm4, %v3584_v36  ;;  %v8406_v36 = vpack.c.bf16 %v4244_v25, %v4243_v29 }
 0x9c2   : > { %v7480_v30 = vpop.f32.mrb[192].mxu1  ;;  %8348 = vmatpush3.bf16.msra.mxu0 %v8347_v37  ;;  %7441 = vmatprep.mubr.msk.f32.mxu0 %vm9268_vm3, %v9269_v9  ;;  %v8421_v37 = vpack.c.bf16 %v4362_v22, %v4361_v27 }
 0x9c3   : > { %v3808_v16 = vpop.f32.mrb[193].mxu1  ;;  %8349 = vmatprep.subr.bf16.mxu0 %v9267_v39  ;;  %8407 = vmatpush3.bf16.msra.mxu1 %v8406_v36 }
 0x9c4   : > { %v8350_v44 = vpack.c.bf16 %v7480_v30, %v3808_v16  ;;  %v4245_v30 = vld [vmem:[#allocation14 + $0x20] sm:$0xff]  ;;  %v4363_v16 = vld [vmem:[#allocation14 + $0x70] sm:$0xff]  ;;  %8408 = vmatprep.subr.bf16.mxu1 %v9267_v39 }
 0x9c5   : > { %7442 = vmatmul.mubr.msk.f32.gmra.mrb[182].mxu0 %vm3220_vm4, %v3585_v41  ;;  %v4246_v41 = vld [vmem:[#allocation14 + $0x28] sm:$0xff] }
 0x9c6   : > { %v7483_v1 = vpop.f32.mrb[194].mxu1  ;;  %8351 = vmatpush3.bf16.msra.mxu0 %v8350_v44  ;;  %7444 = vmatprep.mubr.msk.f32.mxu0 %vm9268_vm3, %v9269_v9  ;;  %v8409_v44 = vpack.c.bf16 %v4246_v41, %v4245_v30 }
 0x9c7   : > { %v3818_v46 = vpop.f32.mrb[195].mxu1  ;;  %8352 = vmatprep.subr.bf16.mxu0 %v9267_v39 }
 0x9c8   : > { %v8353_v31 = vpack.c.bf16 %v7483_v1, %v3818_v46  ;;  %v4364_v1 = vld [vmem:[#allocation14 + $0x78] sm:$0xff]  ;;  %v4247_v46 = vld [vmem:[#allocation14 + $0x30] sm:$0xff]  ;;  %8410 = vmatpush3.bf16.msra.mxu1 %v8409_v44 }
 0x9c9   : > { %7445 = vmatmul.mubr.msk.f32.gmra.mrb[184].mxu0 %vm3220_vm4, %v3586_v42  ;;  %v8424_v42 = vpack.c.bf16 %v4364_v1, %v4363_v16  ;;  %8411 = vmatprep.subr.bf16.mxu1 %v9267_v39 }
 0x9ca   : > { %v7486_v0 = vpop.f32.mrb[196].mxu1  ;;  %8354 = vmatpush3.bf16.msra.mxu0 %v8353_v31  ;;  %7518 = vmatprep.mubr.msk.f32.mxu0 %vm9268_vm3, %v9269_v9  ;;  %v4248_v31 = vld [vmem:[#allocation14 + $0x38] sm:$0xff] }
 0x9cb   : > { %v3828_v5 = vpop.f32.mrb[197].mxu1  ;;  %8355 = vmatprep.subr.bf16.mxu0 %v9267_v39 }
 0x9cc   : > { %v8356_v59 = vpack.c.bf16 %v7486_v0, %v3828_v5  ;;  %v4365_v0 = vld [vmem:[#allocation14 + $0x80] sm:$0xff]  ;;  %v4366_v5 = vld [vmem:[#allocation14 + $0x88] sm:$0xff] }
 0x9ce   : > { %v7489_v52 = vpop.f32.mrb[198].mxu1  ;;  %8357 = vmatpush3.bf16.msra.mxu0 %v8356_v59  ;;  %v8412_v59 = vpack.c.bf16 %v4248_v31, %v4247_v46 }
 0x9cf   : > { %v3838_v13 = vpop.f32.mrb[199].mxu1  ;;  %8358 = vmatprep.subr.bf16.mxu0 %v9267_v39 }
 0x9d0   : > { %v8359_v19 = vpack.c.bf16 %v7489_v52, %v3838_v13  ;;  %v8427_v52 = vpack.c.bf16 %v4366_v5, %v4365_v0  ;;  %8413 = vmatpush3.bf16.msra.mxu1 %v8412_v59  ;;  %v4249_v13 = vld [vmem:[#allocation14 + $0x40] sm:$0xff] }
 0x9d1   : > { %8414 = vmatprep.subr.bf16.mxu1 %v9267_v39 }
 0x9d2   : > { %8360 = vmatpush3.bf16.msra.mxu0 %v8359_v19  ;;  %v7557_v24 = vpop.f32.mrb[200].mxu1  ;;  %v4250_v19 = vld [vmem:[#allocation14 + $0x48] sm:$0xff] }
 0x9d3   : > { %v4044_v8 = vpop.f32.mrb[201].mxu1  ;;  %8381 = vmatprep.subr.bf16.mxu0 %v9267_v39 }
 0x9d4   : > { %v8382_v49 = vpack.c.bf16 %v7557_v24, %v4044_v8  ;;  %v4367_v24 = vld [vmem:[#allocation14 + $0x90] sm:$0xff]  ;;  %v4368_v8 = vld [vmem:[#allocation14 + $0x98] sm:$0xff] }
 0x9d5   : > { %7519 = vmatmul.mubr.msk.f32.vlgmr.msra.gmra.mrb[186].mxu0 %vm3220_vm4, %v3848_v57  ;;  %v8415_v57 = vpack.c.bf16 %v4250_v19, %v4249_v13 }
 0x9d6   : > { %v7560_v50 = vpop.f32.mrb[202].mxu1  ;;  %8383 = vmatpush3.bf16.msra.mxu0 %v8382_v49  ;;  %7521 = vmatprep.mubr.msk.f32.mxu0 %vm9268_vm3, %v9269_v9  ;;  %v8430_v49 = vpack.c.bf16 %v4368_v8, %v4367_v24 }
 0x9d7   : > { %v4054_v6 = vpop.f32.mrb[203].mxu1  ;;  %8384 = vmatprep.subr.bf16.mxu0 %v9267_v39  ;;  %8416 = vmatpush3.bf16.msra.mxu1 %v8415_v57 }
 0x9d8   : > { %v8385_v10 = vpack.c.bf16 %v7560_v50, %v4054_v6  ;;  %8432 = vmatprep.subr.bf16.mxu1 %v9267_v39 }
 0x9d9   : > { %7522 = vmatmul.mubr.msk.f32.gmra.mrb[188].mxu0 %vm3220_vm4, %v3849_v20 }
 0x9da   : > { %v7563_v53 = vpop.f32.mrb[204].mxu1  ;;  %8386 = vmatpush3.bf16.msra.mxu0 %v8385_v10  ;;  %7524 = vmatprep.mubr.msk.f32.mxu0 %vm9268_vm3, %v9269_v9 }
 0x9db   : > { %v4064_v40 = vpop.f32.mrb[205].mxu1  ;;  %8387 = vmatprep.subr.bf16.mxu0 %v9267_v39 }
 0x9dc   : > { %v8388_v33 = vpack.c.bf16 %v7563_v53, %v4064_v40 }
 0x9dd   : > { %7525 = vmatmul.mubr.msk.f32.gmra.mrb[190].mxu0 %vm3220_vm4, %v3850_v7 }
 0x9de   : > { %v7566_v38 = vpop.f32.mrb[206].mxu1  ;;  %8389 = vmatpush3.bf16.msra.mxu0 %v8388_v33  ;;  %7527 = vmatprep.mubr.msk.f32.mxu0 %vm9268_vm3, %v9269_v9 }
 0x9df   : > { %v4074_v60 = vpop.f32.mrb[207].mxu1  ;;  %8390 = vmatprep.subr.bf16.mxu0 %v9267_v39 }
 0x9e0   : > { %v8391_v11 = vpack.c.bf16 %v7566_v38, %v4074_v60 }
 0x9e1   : > { %7528 = vmatmul.mubr.msk.f32.gmra.mrb[192].mxu0 %vm3220_vm4, %v3851_v47 }
 0x9e2   : > { %v7569_v43 = vpop.f32.mrb[208].mxu1  ;;  %8392 = vmatpush3.bf16.msra.mxu0 %v8391_v11  ;;  %7530 = vmatprep.mubr.msk.f32.mxu0 %vm9268_vm3, %v9269_v9 }
 0x9e3   : > { %v4084_v4 = vpop.f32.mrb[209].mxu1  ;;  %8393 = vmatprep.subr.bf16.mxu0 %v9267_v39 }
 0x9e4   : > { %v8394_v54 = vpack.c.bf16 %v7569_v43, %v4084_v4 }
 0x9e5   : > { %7531 = vmatmul.mubr.msk.f32.gmra.mrb[194].mxu0 %vm3220_vm4, %v3852_v17 }
 0x9e6   : > { %v7572_v48 = vpop.f32.mrb[210].mxu1  ;;  %8395 = vmatpush3.bf16.msra.mxu0 %v8394_v54  ;;  %7604 = vmatprep.mubr.msk.f32.mxu0 %vm9268_vm3, %v9269_v9 }
 0x9e7   : > { %v4094_v61 = vpop.f32.mrb[211].mxu1  ;;  %8396 = vmatprep.subr.bf16.mxu0 %v9267_v39 }
 0x9e8   : > { %v8397_v32 = vpack.c.bf16 %v7572_v48, %v4094_v61 }
 0x9ea   : > { %v7575_v21 = vpop.f32.mrb[212].mxu1  ;;  %8398 = vmatpush3.bf16.msra.mxu0 %v8397_v32 }
 0x9eb   : > { %v4104_v2 = vpop.f32.mrb[213].mxu1  ;;  %8399 = vmatprep.subr.bf16.mxu0 %v9267_v39 }
 0x9ec   : > { %v8400_v34 = vpack.c.bf16 %v7575_v21, %v4104_v2 }
 0x9ee   : > { %8401 = vmatpush3.bf16.msra.mxu0 %v8400_v34 }
 0x9ef   : > { %8417 = vmatprep.subr.bf16.mxu0 %v9267_v39 }
 0x9f1   : > { %7605 = vmatmul.mubr.msk.f32.vlgmr.msra.gmra.mrb[196].mxu0 %vm3220_vm4, %v4114_v58 }
 0x9f2   : > { %7607 = vmatprep.mubr.msk.f32.mxu0 %vm9268_vm3, %v9269_v9  ;;  %8419 = vmatpush3.bf16.msra.mxu0 %v8418_v12 }
 0x9f3   : > { %8420 = vmatprep.subr.bf16.mxu0 %v9267_v39 }
 0x9f5   : > { %7608 = vmatmul.mubr.msk.f32.gmra.mrb[198].mxu0 %vm3220_vm4, %v4115_v55 }
 0x9f6   : > { %7610 = vmatprep.mubr.msk.f32.mxu0 %vm9268_vm3, %v9269_v9  ;;  %8422 = vmatpush3.bf16.msra.mxu0 %v8421_v37 }
 0x9f7   : > { %8423 = vmatprep.subr.bf16.mxu0 %v9267_v39 }
 0x9f9   : > { %7611 = vmatmul.mubr.msk.f32.gmra.mrb[200].mxu0 %vm3220_vm4, %v4116_v56 }
 0x9fa   : > { %7613 = vmatprep.mubr.msk.f32.mxu0 %vm9268_vm3, %v9269_v9  ;;  %8425 = vmatpush3.bf16.msra.mxu0 %v8424_v42 }
 0x9fb   : > { %8426 = vmatprep.subr.bf16.mxu0 %v9267_v39 }
 0x9fd   : > { %7614 = vmatmul.mubr.msk.f32.gmra.mrb[202].mxu0 %vm3220_vm4, %v4117_v26 }
 0x9fe   : > { %7616 = vmatprep.mubr.msk.f32.mxu0 %vm9268_vm3, %v9269_v9  ;;  %8428 = vmatpush3.bf16.msra.mxu0 %v8427_v52 }
 0x9ff   : > { %8429 = vmatprep.subr.bf16.mxu0 %v9267_v39 }
 0xa01   : > { %7617 = vmatmul.mubr.msk.f32.gmra.mrb[204].mxu0 %vm3220_vm4, %v4118_v3 }
 0xa02   : > { %7674 = vmatprep.mubr.msk.f32.mxu0 %vm9268_vm3, %v9269_v9  ;;  %8431 = vmatpush3.bf16.msra.mxu0 %v8430_v49 }
 0xa03   : > { %8438 = vmatprep.subr.bf16.mxu0 %v9267_v39 }
 0xa8c   : > { %v3668_v50 = vpop.f32.mrb[176].mxu0 }
 0xa8d   : > { %v3692_v20 = vadd.f32 %v3668_v50, %v10780_v62  ;;  %v7434_v6 = vpop.f32.mrb[177].mxu0 }
 0xa90   : > { %v3673_v10 = vpop.f32.mrb[178].mxu0 }
 0xa91   : > { %v3693_v53 = vadd.f32 %v3673_v10, %v10782_v63  ;;  %v7437_v7 = vpop.f32.mrb[179].mxu0 }
 0xa94   : > { %v3678_v40 = vpop.f32.mrb[180].mxu0 }
 0xa95   : > { %v3694_v33 = vadd.f32 %v3678_v40, %v10784_v45  ;;  %v7440_v38 = vpop.f32.mrb[181].mxu0 }
 0xa98   : > { %v3683_v47 = vpop.f32.mrb[182].mxu0 }
 0xa99   : > { %v3695_v60 = vadd.f32 %v3683_v47, %v10786_v51  ;;  %v7443_v11 = vpop.f32.mrb[183].mxu0  ;;  %v4609_v47 = vld [vmem:[#allocation14 + $0xa0] sm:$0xff] }
 0xa9c   : > { %v3688_v43 = vpop.f32.mrb[184].mxu0 }
 0xa9d   : > { %v3696_v17 = vadd.f32 %v3688_v43, %v10788_v28  ;;  %v7446_v4 = vpop.f32.mrb[185].mxu0 }
 0xaa8   : > { %v3934_v54 = vpop.f32.mrb[186].mxu0 }
 0xaa9   : > { %v3958_v48 = vadd.f32 %v3934_v54, %v3692_v20  ;;  %v7520_v62 = vpop.f32.mrb[187].mxu0  ;;  %v4460_v54 = vld [vmem:[#allocation16 + $0x8] sm:$0xff] }
 0xaaa   : > { %v4611_v62 = vld [vmem:[#allocation14 + $0xb0] sm:$0xff] }
 0xaac   : > { %v3939_v61 = vpop.f32.mrb[188].mxu0 }
 0xaad   : > { %v3959_v32 = vadd.f32 %v3939_v61, %v3693_v53  ;;  %v7523_v21 = vpop.f32.mrb[189].mxu0  ;;  %v4612_v61 = vld [vmem:[#allocation14 + $0xb8] sm:$0xff] }
 0xaae   : > { %v8448_v21 = vpack.c.bf16 %v4612_v61, %v4611_v62  ;;  %v4971_v61 = vld [vmem:[#allocation14 + $0x180] sm:$0xff] }
 0xab0   : > { %v3944_v63 = vpop.f32.mrb[190].mxu0 }
 0xab1   : > { %v3960_v2 = vadd.f32 %v3944_v63, %v3694_v33  ;;  %v7526_v34 = vpop.f32.mrb[191].mxu0  ;;  %v4613_v63 = vld [vmem:[#allocation14 + $0xc0] sm:$0xff] }
 0xab4   : > { %v3949_v58 = vpop.f32.mrb[192].mxu0 }
 0xab5   : > { %v3961_v45 = vadd.f32 %v3949_v58, %v3695_v60  ;;  %v7529_v55 = vpop.f32.mrb[193].mxu0  ;;  %v4610_v60 = vld [vmem:[#allocation14 + $0xa8] sm:$0xff]  ;;  %v4615_v58 = vld [vmem:[#allocation14 + $0xd0] sm:$0xff] }
 0xab8   : > { %v3954_v56 = vpop.f32.mrb[194].mxu0 }
 0xab9   : > { %v3962_v26 = vadd.f32 %v3954_v56, %v3696_v17  ;;  %v7532_v51 = vpop.f32.mrb[195].mxu0  ;;  %v4617_v56 = vld [vmem:[#allocation14 + $0xe0] sm:$0xff] }
 0xac4   : > { %v4200_v3 = vpop.f32.mrb[196].mxu0 }
 0xac5   : > { %v4224_v18 = vadd.f32 %v4200_v3, %v3958_v48  ;;  %v7606_v28 = vpop.f32.mrb[197].mxu0  ;;  %v8445_v48 = vpack.c.bf16 %v4610_v60, %v4609_v47  ;;  %v4965_v47 = vld [vmem:[#allocation14 + $0x150] sm:$0xff]  ;;  %v4966_v60 = vld [vmem:[#allocation14 + $0x158] sm:$0xff] }
 0xac7   : > { %v10871_v15 = vadd.f32 %v5844_v14, %v4224_v18 }
 0xac8   : > { %v4205_v23 = vpop.f32.mrb[198].mxu0 }
 0xac9   : > { %v4225_v35 = vadd.f32 %v4205_v23, %v3959_v32  ;;  %7640 = vmatmul.mubr.msk.f32.vlgmr.msra.gmra.mrb[214].mxu1 %vm4251_vm5, %v10871_v15  ;;  %7675 = vmatmul.mubr.msk.f32.vlgmr.msra.gmra.mrb[206].mxu0 %vm4251_vm5, %v10871_v15  ;;  %v7609_v12 = vpop.f32.mrb[199].mxu0  ;;  %v4357_v32 = vld [vmem:[#allocation16] sm:$0xff] }
 0xaca   : > { %7642 = vmatprep.mubr.msk.f32.mxu1 %vm9268_vm3, %v9269_v9  ;;  %7677 = vmatprep.mubr.msk.f32.mxu0 %vm9268_vm3, %v9269_v9 }
 0xacb   : > { %v10881_v29 = vadd.f32 %v5844_v14, %v4225_v35 }
 0xacc   : > { %v4210_v25 = vpop.f32.mrb[200].mxu0 }
 0xacd   : > { %v4226_v27 = vadd.f32 %v4210_v25, %v3960_v2  ;;  %7643 = vmatmul.mubr.msk.f32.gmra.mrb[216].mxu1 %vm4251_vm5, %v10881_v29  ;;  %7678 = vmatmul.mubr.msk.f32.gmra.mrb[208].mxu0 %vm4251_vm5, %v10881_v29  ;;  %v7612_v36 = vpop.f32.mrb[201].mxu0  ;;  %v4614_v2 = vld [vmem:[#allocation14 + $0xc8] sm:$0xff] }
 0xace   : > { %7645 = vmatprep.mubr.msk.f32.mxu1 %vm9268_vm3, %v9269_v9  ;;  %7680 = vmatprep.mubr.msk.f32.mxu0 %vm9268_vm3, %v9269_v9  ;;  %v8451_v34 = vpack.c.bf16 %v4614_v2, %v4613_v63 }
 0xacf   : > { %v10891_v22 = vadd.f32 %v5844_v14, %v4226_v27 }
 0xad0   : > { %v4215_v37 = vpop.f32.mrb[202].mxu0 }
 0xad1   : > { %v4227_v30 = vadd.f32 %v4215_v37, %v3961_v45  ;;  %7646 = vmatmul.mubr.msk.f32.gmra.mrb[218].mxu1 %vm4251_vm5, %v10891_v22  ;;  %7681 = vmatmul.mubr.msk.f32.gmra.mrb[210].mxu0 %vm4251_vm5, %v10891_v22  ;;  %v7615_v41 = vpop.f32.mrb[203].mxu0  ;;  %v4616_v45 = vld [vmem:[#allocation14 + $0xd8] sm:$0xff] }
 0xad2   : > { %7648 = vmatprep.mubr.msk.f32.mxu1 %vm9268_vm3, %v9269_v9  ;;  %7683 = vmatprep.mubr.msk.f32.mxu0 %vm9268_vm3, %v9269_v9  ;;  %v8454_v55 = vpack.c.bf16 %v4616_v45, %v4615_v58 }
 0xad3   : > { %v10901_v16 = vadd.f32 %v5844_v14, %v4227_v30 }
 0xad4   : > { %v4220_v44 = vpop.f32.mrb[204].mxu0 }
 0xad5   : > { %v4228_v1 = vadd.f32 %v4220_v44, %v3962_v26  ;;  %7649 = vmatmul.mubr.msk.f32.gmra.mrb[220].mxu1 %vm4251_vm5, %v10901_v16  ;;  %7684 = vmatmul.mubr.msk.f32.gmra.mrb[212].mxu0 %vm4251_vm5, %v10901_v16  ;;  %v7618_v42 = vpop.f32.mrb[205].mxu0  ;;  %v4618_v26 = vld [vmem:[#allocation14 + $0xe8] sm:$0xff] }
 0xad6   : > { %7651 = vmatprep.mubr.msk.f32.mxu1 %vm9268_vm3, %v9269_v9  ;;  %7686 = vmatprep.mubr.msk.f32.mxu0 %vm9268_vm3, %v9269_v9  ;;  %v8457_v51 = vpack.c.bf16 %v4618_v26, %v4617_v56  ;;  %v4786_v42 = vld [vmem:[#allocation14 + $0xf0] sm:$0xff] }
 0xad7   : > { %v10911_v46 = vadd.f32 %v5844_v14, %v4228_v1 }
 0xad9   : > { %7652 = vmatmul.mubr.msk.f32.gmra.mrb[222].mxu1 %vm4251_vm5, %v10911_v46  ;;  %7687 = vmatmul.mubr.msk.f32.gmra.mrb[214].mxu0 %vm4251_vm5, %v10911_v46 }
 0xada   : > { %7699 = vmatprep.mubr.msk.f32.mxu1 %vm9268_vm3, %v9269_v9  ;;  %7712 = vmatprep.mubr.msk.f32.mxu0 %vm9268_vm3, %v9269_v9 }
 0xb9c   : > { %v4333_v31 = vpop.f32.mrb[214].mxu1  ;;  %v4435_v0 = vpop.f32.mrb[206].mxu0 }
 0xb9d   : > { %v7641_v5 = vpop.f32.mrb[215].mxu1  ;;  %v7676_v59 = vpop.f32.mrb[207].mxu0 }
 0xb9e   : > { %v4710_v59 = vld [vmem:[#allocation16 + $0x10] sm:$0xff] }
 0xba0   : > { %v4338_v52 = vpop.f32.mrb[216].mxu1  ;;  %v4440_v13 = vpop.f32.mrb[208].mxu0 }
 0xba1   : > { %v8439_v19 = vpack.c.bf16 %v4338_v52, %v4333_v31  ;;  %v8433_v24 = vpack.c.bf16 %v4440_v13, %v4435_v0  ;;  %v7644_v57 = vpop.f32.mrb[217].mxu1  ;;  %v7679_v8 = vpop.f32.mrb[209].mxu0  ;;  %v4787_v31 = vld [vmem:[#allocation14 + $0xf8] sm:$0xff]  ;;  %v4788_v13 = vld [vmem:[#allocation14 + $0x100] sm:$0xff] }
 0xba2   : > { %v8466_v52 = vpack.c.bf16 %v4787_v31, %v4786_v42  ;;  %v4790_v57 = vld [vmem:[#allocation14 + $0x110] sm:$0xff]  ;;  %v4791_v8 = vld [vmem:[#allocation14 + $0x118] sm:$0xff] }
 0xba3   : > { %8434 = vmatpush3.bf16.msra.mxu1 %v8433_v24  ;;  %8440 = vmatpush3.bf16.msra.mxu0 %v8439_v19  ;;  %v4789_v19 = vld [vmem:[#allocation14 + $0x108] sm:$0xff]  ;;  %v5064_v31 = vld [vmem:[#allocation16 + $0x20] sm:$0xff] }
 0xba4   : > { %v4343_v49 = vpop.f32.mrb[218].mxu1  ;;  %v4445_v50 = vpop.f32.mrb[210].mxu0  ;;  %8435 = vmatprep.subr.bf16.mxu1 %v9267_v39  ;;  %8441 = vmatprep.subr.bf16.mxu0 %v9267_v39  ;;  %v8469_v24 = vpack.c.bf16 %v4789_v19, %v4788_v13  ;;  %v5152_v13 = vld [vmem:[#allocation19 + $0x20] sm:$0xff]  ;;  %v5153_v19 = vld [vmem:[#allocation19 + $0x28] sm:$0xff] }
 0xba5   : > { %v7647_v20 = vpop.f32.mrb[219].mxu1  ;;  %v7682_v6 = vpop.f32.mrb[211].mxu0 }
 0xba6   : > { %v4793_v20 = vld [vmem:[#allocation14 + $0x128] sm:$0xff] }
 0xba8   : > { %v4348_v10 = vpop.f32.mrb[220].mxu1  ;;  %v4450_v53 = vpop.f32.mrb[212].mxu0 }
 0xba9   : > { %v8442_v7 = vpack.c.bf16 %v4348_v10, %v4343_v49  ;;  %v8436_v40 = vpack.c.bf16 %v4450_v53, %v4445_v50  ;;  %v7650_v33 = vpop.f32.mrb[221].mxu1  ;;  %v7685_v38 = vpop.f32.mrb[213].mxu0  ;;  %v8472_v49 = vpack.c.bf16 %v4791_v8, %v4790_v57  ;;  %v4792_v50 = vld [vmem:[#allocation14 + $0x120] sm:$0xff]  ;;  %v4794_v10 = vld [vmem:[#allocation14 + $0x130] sm:$0xff]  ;;  %v4795_v53 = vld [vmem:[#allocation14 + $0x138] sm:$0xff] }
 0xbaa   : > { %v8475_v6 = vpack.c.bf16 %v4793_v20, %v4792_v50  ;;  %v4964_v33 = vld [vmem:[#allocation14 + $0x148] sm:$0xff]  ;;  %v5155_v8 = vld [vmem:[#allocation19 + $0x38] sm:$0xff]  ;;  %v5156_v50 = vld [vmem:[#allocation19 + $0x40] sm:$0xff] }
 0xbab   : > { %8437 = vmatpush3.bf16.msra.mxu1 %v8436_v40  ;;  %8443 = vmatpush3.bf16.msra.mxu0 %v8442_v7  ;;  %v8478_v7 = vpack.c.bf16 %v4795_v53, %v4794_v10  ;;  %v4963_v40 = vld [vmem:[#allocation14 + $0x140] sm:$0xff]  ;;  %v5154_v57 = vld [vmem:[#allocation19 + $0x30] sm:$0xff]  ;;  %v5159_v53 = vld [vmem:[#allocation19 + $0x58] sm:$0xff] }
 0xbac   : > { %v4353_v11 = vpop.f32.mrb[222].mxu1  ;;  %v4455_v43 = vpop.f32.mrb[214].mxu0  ;;  %7697 = vmatprep.subr.mxu1 %v9269_v9  ;;  %7710 = vmatprep.subr.mxu0 %v9269_v9  ;;  %v8487_v38 = vpack.c.bf16 %v4964_v33, %v4963_v40  ;;  %v5157_v20 = vld [vmem:[#allocation19 + $0x48] sm:$0xff]  ;;  %v5158_v10 = vld [vmem:[#allocation19 + $0x50] sm:$0xff]  ;;  %v5160_v40 = vld [vmem:[#allocation19 + $0x60] sm:$0xff] }
 0xbad   : > { %v7653_v17 = vpop.f32.mrb[223].mxu1  ;;  %v7688_v4 = vpop.f32.mrb[215].mxu0  ;;  %v5161_v33 = vld [vmem:[#allocation19 + $0x68] sm:$0xff] }
 0xbae   : > { %v4968_v17 = vld [vmem:[#allocation14 + $0x168] sm:$0xff] }
 0xbaf   : > { %7698 = vmatpush3.msra.mxu1 %v4455_v43  ;;  %7711 = vmatpush3.msra.mxu0 %v4353_v11  ;;  %v8490_v11 = vpack.c.bf16 %v4966_v60, %v4965_v47  ;;  %v4967_v43 = vld [vmem:[#allocation14 + $0x160] sm:$0xff]  ;;  %v5162_v47 = vld [vmem:[#allocation19 + $0x70] sm:$0xff]  ;;  %v5245_v60 = vld [vmem:[#allocation22] sm:$0xff] }
 0xbb0   : > { %8444 = vmatprep.subr.bf16.mxu1 %v9267_v39  ;;  %7700 = vmatmul.mubr.msk.f32.vlgmr.msra.gmra.mrb[224].mxu1 %vm4461_vm6, %v4460_v54  ;;  %v8493_v4 = vpack.c.bf16 %v4968_v17, %v4967_v43  ;;  %v4969_v54 = vld [vmem:[#allocation14 + $0x170] sm:$0xff]  ;;  %v5247_v43 = vld [vmem:[#allocation22 + $0x10] sm:$0xff] }
 0xbb1   : > { %8446 = vmatpush3.bf16.msra.mxu1 %v8445_v48  ;;  %7735 = vmatprep.mubr.msk.f32.mxu1 %vm9268_vm3, %v9269_v9  ;;  %v4970_v48 = vld [vmem:[#allocation14 + $0x178] sm:$0xff] }
 0xbb2   : > { %8447 = vmatprep.subr.bf16.mxu1 %v9267_v39  ;;  %7713 = vmatmul.mubr.msk.f32.vlgmr.msra.gmra.mrb[216].mxu0 %vm4461_vm6, %v4357_v32  ;;  %v8496_v62 = vpack.c.bf16 %v4970_v48, %v4969_v54  ;;  %v4972_v32 = vld [vmem:[#allocation14 + $0x188] sm:$0xff]  ;;  %v5249_v48 = vld [vmem:[#allocation22 + $0x20] sm:$0xff] }
 0xbb3   : > { %8459 = vmatprep.subr.bf16.mxu0 %v9267_v39  ;;  %7760 = vmatprep.mubr.msk.f32.mxu0 %vm9268_vm3, %v9269_v9 }
 0xbb5   : > { %8449 = vmatpush3.bf16.msra.mxu1 %v8448_v21  ;;  %v8499_v21 = vpack.c.bf16 %v4972_v32, %v4971_v61  ;;  %v5251_v32 = vld [vmem:[#allocation22 + $0x30] sm:$0xff] }
 0xbb6   : > { %8450 = vmatprep.subr.bf16.mxu1 %v9267_v39 }
 0xbb9   : > { %8452 = vmatpush3.bf16.msra.mxu1 %v8451_v34 }
 0xbba   : > { %8453 = vmatprep.subr.bf16.mxu1 %v9267_v39 }
 0xbbd   : > { %8455 = vmatpush3.bf16.msra.mxu1 %v8454_v55 }
 0xbbe   : > { %8456 = vmatprep.subr.bf16.mxu1 %v9267_v39 }
 0xbc1   : > { %8458 = vmatpush3.bf16.msra.mxu1 %v8457_v51 }
 0xbc2   : > { %8480 = vmatprep.subr.bf16.mxu1 %v9267_v39 }
 0xbc4   : > { %7736 = vmatmul.mubr.msk.f32.vlgmr.msra.gmra.mrb[226].mxu1 %vm4251_vm5, %v10871_v15 }
 0xbc5   : > { %7738 = vmatprep.mubr.msk.f32.mxu1 %vm9268_vm3, %v9269_v9 }
 0xbc8   : > { %7739 = vmatmul.mubr.msk.f32.gmra.mrb[228].mxu1 %vm4251_vm5, %v10881_v29 }
 0xbc9   : > { %7741 = vmatprep.mubr.msk.f32.mxu1 %vm9268_vm3, %v9269_v9 }
 0xbcc   : > { %7742 = vmatmul.mubr.msk.f32.gmra.mrb[230].mxu1 %vm4251_vm5, %v10891_v22 }
 0xbcd   : > { %7744 = vmatprep.mubr.msk.f32.mxu1 %vm9268_vm3, %v9269_v9 }
 0xbd0   : > { %7745 = vmatmul.mubr.msk.f32.gmra.mrb[232].mxu1 %vm4251_vm5, %v10901_v16 }
 0xbd1   : > { %7747 = vmatprep.mubr.msk.f32.mxu1 %vm9268_vm3, %v9269_v9 }
 0xbd4   : > { %7748 = vmatmul.mubr.msk.f32.gmra.mrb[234].mxu1 %vm4251_vm5, %v10911_v46 }
 0xbd5   : > { %7808 = vmatprep.mubr.msk.f32.mxu1 %vm9268_vm3, %v9269_v9 }
 0xc83   : > { %v4531_v3 = vpop.f32.mrb[224].mxu1 }
 0xc84   : > { %v7701_v14 = vpop.f32.mrb[225].mxu1 }
 0xc85   : > { %v4604_v18 = vpop.f32.mrb[216].mxu0  ;;  %v4887_v14 = vld [vmem:[#allocation16 + $0x18] sm:$0xff] }
 0xc86   : > { %v10958_v28 = vadd.f32 %v4604_v18, %v4531_v3  ;;  %v7714_v23 = vpop.f32.mrb[217].mxu0 }
 0xc97   : > { %v4685_v35 = vpop.f32.mrb[226].mxu1 }
 0xc98   : > { %v7737_v12 = vpop.f32.mrb[227].mxu1 }
 0xc9b   : > { %v4690_v25 = vpop.f32.mrb[228].mxu1 }
 0xc9c   : > { %v8460_v27 = vpack.c.bf16 %v4690_v25, %v4685_v35  ;;  %v7740_v36 = vpop.f32.mrb[229].mxu1 }
 0xc9e   : > { %8461 = vmatpush3.bf16.msra.mxu0 %v8460_v27 }
 0xc9f   : > { %v4695_v37 = vpop.f32.mrb[230].mxu1  ;;  %8462 = vmatprep.subr.bf16.mxu0 %v9267_v39 }
 0xca0   : > { %v7743_v30 = vpop.f32.mrb[231].mxu1 }
 0xca3   : > { %v4700_v41 = vpop.f32.mrb[232].mxu1 }
 0xca4   : > { %v8463_v44 = vpack.c.bf16 %v4700_v41, %v4695_v37  ;;  %v7746_v1 = vpop.f32.mrb[233].mxu1  ;;  %v5148_v41 = vld [vmem:[#allocation19] sm:$0xff] }
 0xca6   : > { %8464 = vmatpush3.bf16.msra.mxu0 %v8463_v44  ;;  %v5149_v44 = vld [vmem:[#allocation19 + $0x8] sm:$0xff] }
 0xca7   : > { %v4705_v0 = vpop.f32.mrb[234].mxu1  ;;  %7758 = vmatprep.subr.mxu0 %v9269_v9 }
 0xca8   : > { %v7749_v5 = vpop.f32.mrb[235].mxu1 }
 0xca9   : > { %v5150_v5 = vld [vmem:[#allocation19 + $0x10] sm:$0xff] }
 0xcaa   : > { %7759 = vmatpush3.msra.mxu0 %v4705_v0  ;;  %v8508_v0 = vpack.c.bf16 %v5149_v44, %v5148_v41 }
 0xcab   : > { %7761 = vmatmul.mubr.msk.f32.vlgmr.msra.gmra.mrb[218].mxu0 %vm4461_vm6, %v4710_v59  ;;  %8465 = vmatprep.subr.bf16.mxu0 %v9267_v39  ;;  %v5151_v59 = vld [vmem:[#allocation19 + $0x18] sm:$0xff] }
 0xcac   : > { %8467 = vmatpush3.bf16.msra.mxu0 %v8466_v52  ;;  %7783 = vmatprep.mubr.msk.f32.mxu0 %vm9268_vm3, %v9269_v9  ;;  %v8511_v52 = vpack.c.bf16 %v5151_v59, %v5150_v5 }
 0xcad   : > { %8468 = vmatprep.subr.bf16.mxu0 %v9267_v39 }
 0xcb0   : > { %8470 = vmatpush3.bf16.msra.mxu0 %v8469_v24  ;;  %v8514_v24 = vpack.c.bf16 %v5153_v19, %v5152_v13 }
 0xcb1   : > { %8471 = vmatprep.subr.bf16.mxu0 %v9267_v39 }
 0xcb4   : > { %8473 = vmatpush3.bf16.msra.mxu0 %v8472_v49  ;;  %v8517_v49 = vpack.c.bf16 %v5155_v8, %v5154_v57 }
 0xcb5   : > { %8474 = vmatprep.subr.bf16.mxu0 %v9267_v39 }
 0xcb8   : > { %8476 = vmatpush3.bf16.msra.mxu0 %v8475_v6  ;;  %v8520_v6 = vpack.c.bf16 %v5157_v20, %v5156_v50 }
 0xcb9   : > { %8477 = vmatprep.subr.bf16.mxu0 %v9267_v39 }
 0xcbc   : > { %8479 = vmatpush3.bf16.msra.mxu0 %v8478_v7  ;;  %v8523_v7 = vpack.c.bf16 %v5159_v53, %v5158_v10 }
 0xcbd   : > { %8486 = vmatprep.subr.bf16.mxu0 %v9267_v39 }
 0xcbf   : > { %7784 = vmatmul.mubr.msk.f32.vlgmr.msra.gmra.mrb[220].mxu0 %vm4251_vm5, %v10871_v15 }
 0xcc0   : > { %8488 = vmatpush3.bf16.msra.mxu0 %v8487_v38  ;;  %7786 = vmatprep.mubr.msk.f32.mxu0 %vm9268_vm3, %v9269_v9  ;;  %v8526_v38 = vpack.c.bf16 %v5161_v33, %v5160_v40 }
 0xcc1   : > { %8489 = vmatprep.subr.bf16.mxu0 %v9267_v39 }
 0xcc3   : > { %7787 = vmatmul.mubr.msk.f32.gmra.mrb[222].mxu0 %vm4251_vm5, %v10881_v29 }
 0xcc4   : > { %8491 = vmatpush3.bf16.msra.mxu0 %v8490_v11  ;;  %7789 = vmatprep.mubr.msk.f32.mxu0 %vm9268_vm3, %v9269_v9  ;;  %v5246_v11 = vld [vmem:[#allocation22 + $0x8] sm:$0xff] }
 0xcc5   : > { %8492 = vmatprep.subr.bf16.mxu0 %v9267_v39  ;;  %v8529_v17 = vpack.c.bf16 %v5246_v11, %v5245_v60 }
 0xcc7   : > { %7790 = vmatmul.mubr.msk.f32.gmra.mrb[224].mxu0 %vm4251_vm5, %v10891_v22 }
 0xcc8   : > { %8494 = vmatpush3.bf16.msra.mxu0 %v8493_v4  ;;  %7792 = vmatprep.mubr.msk.f32.mxu0 %vm9268_vm3, %v9269_v9  ;;  %v5248_v4 = vld [vmem:[#allocation22 + $0x18] sm:$0xff] }
 0xcc9   : > { %8495 = vmatprep.subr.bf16.mxu0 %v9267_v39  ;;  %v8532_v54 = vpack.c.bf16 %v5248_v4, %v5247_v43 }
 0xccb   : > { %7793 = vmatmul.mubr.msk.f32.gmra.mrb[226].mxu0 %vm4251_vm5, %v10901_v16 }
 0xccc   : > { %8497 = vmatpush3.bf16.msra.mxu0 %v8496_v62  ;;  %7795 = vmatprep.mubr.msk.f32.mxu0 %vm9268_vm3, %v9269_v9  ;;  %v5250_v62 = vld [vmem:[#allocation22 + $0x28] sm:$0xff] }
 0xccd   : > { %8498 = vmatprep.subr.bf16.mxu0 %v9267_v39  ;;  %v8535_v61 = vpack.c.bf16 %v5250_v62, %v5249_v48 }
 0xccf   : > { %7796 = vmatmul.mubr.msk.f32.gmra.mrb[228].mxu0 %vm4251_vm5, %v10911_v46 }
 0xcd0   : > { %8500 = vmatpush3.bf16.msra.mxu0 %v8499_v21  ;;  %7831 = vmatprep.mubr.msk.f32.mxu0 %vm9268_vm3, %v9269_v9  ;;  %v5252_v21 = vld [vmem:[#allocation22 + $0x38] sm:$0xff] }
 0xcd1   : > { %8528 = vmatprep.subr.bf16.mxu0 %v9267_v39 }
 0xcd3   : > { %7832 = vmatmul.mubr.msk.f32.vlgmr.msra.gmra.mrb[230].mxu0 %vm4251_vm5, %v10871_v15 }
 0xcd4   : > { %7834 = vmatprep.mubr.msk.f32.mxu0 %vm9268_vm3, %v9269_v9  ;;  %8530 = vmatpush3.bf16.msra.mxu0 %v8529_v17 }
 0xcd5   : > { %8531 = vmatprep.subr.bf16.mxu0 %v9267_v39 }
 0xcd7   : > { %7835 = vmatmul.mubr.msk.f32.gmra.mrb[232].mxu0 %vm4251_vm5, %v10881_v29 }
 0xcd8   : > { %7837 = vmatprep.mubr.msk.f32.mxu0 %vm9268_vm3, %v9269_v9  ;;  %8533 = vmatpush3.bf16.msra.mxu0 %v8532_v54 }
 0xcd9   : > { %8534 = vmatprep.subr.bf16.mxu0 %v9267_v39 }
 0xcdb   : > { %7838 = vmatmul.mubr.msk.f32.gmra.mrb[234].mxu0 %vm4251_vm5, %v10891_v22 }
 0xcdc   : > { %7840 = vmatprep.mubr.msk.f32.mxu0 %vm9268_vm3, %v9269_v9  ;;  %8536 = vmatpush3.bf16.msra.mxu0 %v8535_v61 }
 0xcdd   : > { %8537 = vmatprep.subr.bf16.mxu0 %v9267_v39 }
 0xcdf   : > { %7841 = vmatmul.mubr.msk.f32.gmra.mrb[236].mxu0 %vm4251_vm5, %v10901_v16 }
 0xce0   : > { %7843 = vmatprep.mubr.msk.f32.mxu0 %vm9268_vm3, %v9269_v9 }
 0xce3   : > { %7844 = vmatmul.mubr.msk.f32.gmra.mrb[238].mxu0 %vm4251_vm5, %v10911_v46 }
 0xce4   : > { %7914 = vmatprep.mubr.msk.f32.mxu0 %vm9268_vm3, %v9269_v9 }
 0xd7e   : > { %v4780_v15 = vpop.f32.mrb[218].mxu0 }
 0xd7f   : > { %v11017_v29 = vadd.f32 %v4780_v15, %v10958_v28  ;;  %v7762_v22 = vpop.f32.mrb[219].mxu0  ;;  %v8538_v15 = vpack.c.bf16 %v5252_v21, %v5251_v32 }
 0xd81   : > { %8539 = vmatpush3.bf16.msra.mxu0 %v8538_v15 }
 0xd82   : > { %8540 = vmatprep.subr.bf16.mxu0 %v9267_v39 }
 0xd92   : > { %v4862_v63 = vpop.f32.mrb[220].mxu0 }
 0xd93   : > { %v7785_v2 = vpop.f32.mrb[221].mxu0 }
 0xd96   : > { %v4867_v34 = vpop.f32.mrb[222].mxu0 }
 0xd97   : > { %v8481_v58 = vpack.c.bf16 %v4867_v34, %v4862_v63  ;;  %v7788_v45 = vpop.f32.mrb[223].mxu0 }
 0xd99   : > { %8482 = vmatpush3.bf16.msra.mxu1 %v8481_v58  ;;  %v5875_v58 = vld [vmem:[#allocation17] ss:$0 sm:$0xff] }
 0xd9a   : > { %v4872_v16 = vpop.f32.mrb[224].mxu0  ;;  %8483 = vmatprep.subr.bf16.mxu1 %v9267_v39 }
 0xd9b   : > { %v7791_v55 = vpop.f32.mrb[225].mxu0 }
 0xd9e   : > { %v4877_v56 = vpop.f32.mrb[226].mxu0 }
 0xd9f   : > { %v8484_v46 = vpack.c.bf16 %v4877_v56, %v4872_v16  ;;  %v7794_v26 = vpop.f32.mrb[227].mxu0 }
 0xda0   : > { %v5254_v26 = vld [vmem:[#allocation22 + $0x48] sm:$0xff] }
 0xda1   : > { %8485 = vmatpush3.bf16.msra.mxu1 %v8484_v46  ;;  %v5253_v46 = vld [vmem:[#allocation22 + $0x40] sm:$0xff] }
 0xda2   : > { %v4882_v51 = vpop.f32.mrb[228].mxu0  ;;  %7806 = vmatprep.subr.mxu1 %v9269_v9 }
 0xda3   : > { %v7797_v3 = vpop.f32.mrb[229].mxu0 }
 0xda5   : > { %7807 = vmatpush3.msra.mxu1 %v4882_v51  ;;  %v8541_v51 = vpack.c.bf16 %v5254_v26, %v5253_v46 }
 0xda6   : > { %7809 = vmatmul.mubr.msk.f32.vlgmr.msra.gmra.mrb[236].mxu1 %vm4461_vm6, %v4887_v14  ;;  %v5039_v18 = vpop.f32.mrb[230].mxu0  ;;  %8501 = vmatprep.subr.bf16.mxu1 %v9267_v39 }
 0xda7   : > { %v7833_v28 = vpop.f32.mrb[231].mxu0  ;;  %7856 = vmatprep.mubr.msk.f32.mxu1 %vm9268_vm3, %v9269_v9  ;;  %8542 = vmatpush3.bf16.msra.mxu0 %v8541_v51 }
 0xda8   : > { %7912 = vmatprep.subr.mxu0 %v9269_v9 }
 0xdaa   : > { %v5044_v23 = vpop.f32.mrb[232].mxu0 }
 0xdab   : > { %v8502_v35 = vpack.c.bf16 %v5044_v23, %v5039_v18  ;;  %v7836_v12 = vpop.f32.mrb[233].mxu0  ;;  %v5878_v23 = vld [vmem:[#allocation23] ss:$0 sm:$0xff] }
 0xdad   : > { %8503 = vmatpush3.bf16.msra.mxu1 %v8502_v35 }
 0xdae   : > { %v5049_v25 = vpop.f32.mrb[234].mxu0  ;;  %8504 = vmatprep.subr.bf16.mxu1 %v9267_v39 }
 0xdaf   : > { %v7839_v27 = vpop.f32.mrb[235].mxu0 }
 0xdb2   : > { %v5054_v36 = vpop.f32.mrb[236].mxu0 }
 0xdb3   : > { %v8505_v37 = vpack.c.bf16 %v5054_v36, %v5049_v25  ;;  %v7842_v30 = vpop.f32.mrb[237].mxu0 }
 0xdb5   : > { %8506 = vmatpush3.bf16.msra.mxu1 %v8505_v37 }
 0xdb6   : > { %v5059_v1 = vpop.f32.mrb[238].mxu0  ;;  %7854 = vmatprep.subr.mxu1 %v9269_v9 }
 0xdb7   : > { %v7845_v42 = vpop.f32.mrb[239].mxu0 }
 0xdb9   : > { %7855 = vmatpush3.msra.mxu1 %v5059_v1 }
 0xdba   : > { %7857 = vmatmul.mubr.msk.f32.vlgmr.msra.gmra.mrb[238].mxu1 %vm4461_vm6, %v5064_v31  ;;  %8507 = vmatprep.subr.bf16.mxu1 %v9267_v39 }
 0xdbb   : > { %8509 = vmatpush3.bf16.msra.mxu1 %v8508_v0  ;;  %7889 = vmatprep.mubr.msk.f32.mxu1 %vm9268_vm3, %v9269_v9 }
 0xdbc   : > { %8510 = vmatprep.subr.bf16.mxu1 %v9267_v39 }
 0xdbf   : > { %8512 = vmatpush3.bf16.msra.mxu1 %v8511_v52 }
 0xdc0   : > { %8513 = vmatprep.subr.bf16.mxu1 %v9267_v39 }
 0xdc3   : > { %8515 = vmatpush3.bf16.msra.mxu1 %v8514_v24 }
 0xdc4   : > { %8516 = vmatprep.subr.bf16.mxu1 %v9267_v39 }
 0xdc7   : > { %8518 = vmatpush3.bf16.msra.mxu1 %v8517_v49 }
 0xdc8   : > { %8519 = vmatprep.subr.bf16.mxu1 %v9267_v39 }
 0xdcb   : > { %8521 = vmatpush3.bf16.msra.mxu1 %v8520_v6 }
 0xdcc   : > { %8522 = vmatprep.subr.bf16.mxu1 %v9267_v39 }
 0xdcf   : > { %8524 = vmatpush3.bf16.msra.mxu1 %v8523_v7 }
 0xdd0   : > { %8525 = vmatprep.subr.bf16.mxu1 %v9267_v39  ;;  %v5255_v39 = vld [vmem:[#allocation22 + $0x50] sm:$0xf] }
 0xdd1   : > { %7913 = vmatpush3.msk.msra.mxu0 %vm2920_vm1, %v5255_v39 }
 0xdd3   : > { %8527 = vmatpush3.bf16.msra.mxu1 %v8526_v38 }
 0xdd4   : > { %7887 = vmatprep.subr.mxu1 %v9269_v9 }
 0xdd7   : > { %7888 = vmatpush3.msra.mxu1 %v5162_v47 }
 0xe79   : > { %v4957_v22 = vpop.f32.mrb[236].mxu1 }
 0xe7a   : > { %v4961_v63 = vadd.f32 %v4957_v22, %v11017_v29  ;;  %v7810_v2 = vpop.f32.mrb[237].mxu1  ;;  %v5876_v29 = vld [vmem:[#allocation20] ss:$0 sm:$0xff] }
 0xe8d   : > { %v5134_v34 = vpop.f32.mrb[238].mxu1 }
 0xe8e   : > { %v5138_v45 = vadd.f32 %v5134_v34, %v4961_v63  ;;  %v7858_v16 = vpop.f32.mrb[239].mxu1 }
 0xe90   : > { %v5146_v55 = vadd.f32 %v5875_v58, %v5138_v45 }
 0xe92   : > { %v5147_v56 = vmax.f32 %v5146_v55, 0.0 }
 0xe94   : > { %7890 = vmatmul.mubr.msk.f32.vlgmr.msra.gmra.mrb[240].mxu1 %vm5170_vm7, %v5147_v56 }
 0xf67   : > { %v5240_v3 = vpop.f32.mrb[240].mxu1 }
 0xf68   : > { %v5241_v14 = vadd.f32 %v5876_v29, %v5240_v3  ;;  %v7891_v18 = vpop.f32.mrb[241].mxu1 }
 0xf6a   : > { %v5244_v28 = vmax.f32 %v5241_v14, 0.0 }
 0xf6c   : > { %7915 = vmatmul.mubr.msk.f32.vlgmr.msra.gmra.mrb[240].mxu0 %vm2877_vm2, %v5244_v28 }
0x103f   : > { %v5335_v35 = vpop.f32.mrb[240].mxu0 }
0x1040   : > { %v5336_v12 = vadd.f32 %v5878_v23, %v5335_v35  ;;  %v7916_v9 = vpop.f32.mrb[241].mxu0 }
0x1042   : > { %5339 = vst [vmem:[%s664_s24] sm:$0xff] %v5336_v12 }
0x1043   : > { %9166 = shalt.err (!%p9163_p4)
}
0x1044   : > { %s9167_s14 = scalar_lea.hbm %s11051_s25, 128  ;;  %s9171_s17 = scalar_lea.hbm %s11225_s2, 256 }
0x1045   : > { %p9168_p12 = scmp.ne.s32.totalorder %s11051_s25, %s9167_s14  ;;  %p9172_p0 = scmp.lt.u32.totalorder %s11051_s25, %s11225_s2 }
0x1046   : > { %p9173_p2 = scmp.lt.u32.totalorder %s9171_s17, %s9167_s14  ;;  %p9175_p6 = scmp.lt.u32.totalorder %s9167_s14, %s11051_s25 }
0x1047   : > { %p9169_p1 = pnand %p9168_p12, %p11226_p10 }
0x1048   : > { %p9174_p8 = por %p9173_p2, %p9172_p0 }
0x1049   : > { %p9170_p13 = pneg %p9169_p1 }
0x104a   : > { %p9176_p11 = por %p9175_p6, %p9174_p8 }
0x104c   : > { %p9177_p3 = pnand %p9176_p11, %p9170_p13 }
0x104e   : > { %9180 = shalt.err (!%p9177_p3)
}
0x104f   : > { %8597 = dma.vmem_to_hbm [thread:$0]  (%p11226_p10), %s11053_s21, 128, %s11051_s25, %s5341_s18  }
0x1050 PF: > { %s11227_s19 = sld [smem:[#allocation35_spill]]  ;;  %p11228_p5 = scmp.ne.s32.totalorder %s11158_s0, 0 }
0x1051   : > { %p11229_p9 = scmp.ge.s32.totalorder %s9247_s16, 2 }
0x1053   : > { %p8644_p7 = pnand %p11229_p9, %p11228_p5 }
0x1056   : > { %s5366_s28 = sand.u32 1, %s11227_s19  }
0x1057   : > { %s5367_s22 = scalar_lea.sflag [#allocation4], %s5366_s28 }
0x1058   : > { %9230 = dma.done.wait (!%p8644_p7), %s5367_s22, 128  }
0x1059   : > { %9232 = vsyncadd (!%p8644_p7), %s5367_s22, 4294967168  ;;  %s11230_s29 = sld [smem:[#allocation36_spill]]  ;;  %p34_p4 = scmp.ge.s32.totalorder %s9670_s23, 4  }
0x105a   : > { %s11231_s30 = smov %s9243_s15  ;;  %s11232_s15 = smov %s9682_s27 }
0x105b   : > { %s11233_s16 = smov %s9670_s23  ;;  %36 = sbr.rel (!%p34_p4) target bundleno = 18 (0x12), region = 197 }
0x1062   :  { %5372 = vsyncpa [#allocation3], 1 }
0x1063   :  { %5374 = vsyncpa [#allocation3 + $0x1], 1 }
0x1064   :  { %5375 = vsyncpa [#allocation6], 1 }
0x1065   :  { %5376 = vsyncpa [#allocation9], 1 }
0x1066   :  { %5377 = vsyncpa [#allocation12], 1 }
0x1067   :  { %5378 = vsyncpa [#allocation15], 1 }
0x1068   :  { %5379 = vsyncpa [#allocation18], 1 }
0x1069   :  { %5380 = vsyncpa [#allocation21], 1 }
0x106a   :  { %5381 = vsyncpa [#allocation24], 1 }
0x106b   :  { %5382 = vsyncpa [#allocation4], 1 }
0x106c   :  { %5384 = vsyncpa [#allocation4 + $0x1], 1 }

</bundles_post_ra>
